<compile_context>
chip_gen: v7x
topology: tpu7x:2x2x1
jax: 0.10.0
libtpu: 0.0.40
codegen_flags: <defaults>
</compile_context>

<pallas_src>
import functools

import jax
import jax.numpy as jnp
from jax.experimental import pallas as pl
from jax.experimental.pallas import tpu as pltpu


def _gps_kernel(h_ref, mask_ref,
                wqkv_ref, bqkv_ref, wo_ref, w1_ref, b1_ref, w2_ref, vec_ref,
                o_ref, attn_scr, *, heads):
    Bt, S, C = h_ref.shape
    Dh = C // heads
    M = Bt * S
    sm_scale = 1.0 / (Dh ** 0.5)

    x3 = h_ref[...]                                   # (Bt, S, C) f32
    x2 = x3.reshape(M, C)
    x2_bf = x2.astype(jnp.bfloat16)

    # ---- fused QKV projection: one (M, C) @ (C, 3C) MXU pass, f32 accumulation
    qkv = jnp.dot(x2_bf, wqkv_ref[...], preferred_element_type=jnp.float32)
    qkv = qkv + bqkv_ref[...]                         # (M, 3C)
    # lane-aligned (multiple-of-128) slices, cast to bf16 once for all heads
    q = qkv[:, 0 * C:1 * C].reshape(Bt, S, C).astype(jnp.bfloat16)
    k = qkv[:, 1 * C:2 * C].reshape(Bt, S, C).astype(jnp.bfloat16)
    v = qkv[:, 2 * C:3 * C].reshape(Bt, S, C).astype(jnp.bfloat16)

    # additive key-padding bias: 0 for valid keys, -1e9 for padded keys
    bias = (1.0 - mask_ref[...]) * (-1e9)             # (Bt, 1, S), broadcast over q

    # ---- multi-head attention, batched over the Bt graphs per head.
    # Head outputs are written into a (M, C) VMEM scratch so the output projection
    # is a single full-width K=C matmul (no per-head K=Dh out-proj dots).
    # TODO(synk): for large S, tile over keys flash-style (running max/denominator).
    for hh in range(heads):
        sl = slice(hh * Dh, (hh + 1) * Dh)            # static slice
        qh, kh, vh = q[:, :, sl], k[:, :, sl], v[:, :, sl]
        s = jnp.einsum('bqd,bkd->bqk', qh, kh,
                       preferred_element_type=jnp.float32) * sm_scale + bias
        s = s - jnp.max(s, axis=-1, keepdims=True)    # softmax kept in f32
        p = jnp.exp(s)
        p = p * pl.reciprocal(jnp.sum(p, axis=-1, keepdims=True), approx=True)
        ho = jnp.einsum('bqk,bkd->bqd', p.astype(jnp.bfloat16), vh,
                        preferred_element_type=jnp.float32)
        attn_scr[:, sl] = ho.reshape(M, Dh)

    # ---- fused per-channel vectors (rows of one (8, C) array -> one small DMA)
    vecs = vec_ref[...]
    bo, b2 = vecs[0:1, :], vecs[1:2, :]
    sc2, sh2 = vecs[2:3, :], vecs[3:4, :]
    sc3, sh3 = vecs[4:5, :], vecs[5:6, :]

    # ---- single full-width output projection
    attn = jnp.dot(attn_scr[...].astype(jnp.bfloat16), wo_ref[...],
                   preferred_element_type=jnp.float32) + bo

    # ---- residual + norm2 (BatchNorm1d eval folded into per-channel scale/shift)
    h = (attn + x2) * sc2 + sh2

    # ---- out = h + MLP(h);  MLP = Linear(C,2C) -> ReLU -> Linear(2C,C)
    m = jnp.dot(h.astype(jnp.bfloat16), w1_ref[...],
                preferred_element_type=jnp.float32) + b1_ref[...]
    m = jnp.maximum(m, 0.0)
    m = jnp.dot(m.astype(jnp.bfloat16), w2_ref[...],
                preferred_element_type=jnp.float32) + b2
    out = (h + m) * sc3 + sh3

    # ---- norm3 (folded) + lane-dense store (C is a multiple of 128)
    o_ref[...] = out.reshape(Bt, S, C).astype(o_ref.dtype)


def gps_conv_dense(h_dense, maskf, params, heads, graphs_per_block=4):
    """Fused GPSConv kernel on dense-batched inputs. Returns (B, S, C) float32."""
    B, S, C = h_dense.shape
    Bt = min(graphs_per_block, B)
    Bp = -(-B // Bt) * Bt                      # pad #graphs to a multiple of Bt
    if Bp != B:
        h_dense = jnp.pad(h_dense, ((0, Bp - B), (0, 0), (0, 0)))
        maskf = jnp.pad(maskf, ((0, Bp - B), (0, 0), (0, 0)))

    kernel = functools.partial(_gps_kernel, heads=heads)

    def const(shape):
        # same block every grid step -> Pallas keeps the weight resident in VMEM
        return pl.BlockSpec(shape, lambda b: (0,) * len(shape))

    in_specs = [
        pl.BlockSpec((Bt, S, C), lambda b: (b, 0, 0)),   # h_dense: Bt graphs / step
        pl.BlockSpec((Bt, 1, S), lambda b: (b, 0, 0)),   # key-padding mask
        const((C, 3 * C)), const((1, 3 * C)),            # fused QKV weight / bias
        const((C, C)),                                   # out-proj weight
        const((C, 2 * C)), const((1, 2 * C)),            # MLP w1 / b1
        const((2 * C, C)),                               # MLP w2
        const((8, C)),                                   # stacked bo,b2,sc2,sh2,sc3,sh3
    ]
    out = pl.pallas_call(
        kernel,
        out_shape=jax.ShapeDtypeStruct((Bp, S, C), jnp.float32),
        grid_spec=pltpu.PrefetchScalarGridSpec(
            num_scalar_prefetch=0,
            grid=(Bp // Bt,),                 # even grid -> both v7x TensorCores used
            in_specs=in_specs,
            out_specs=pl.BlockSpec((Bt, S, C), lambda b: (b, 0, 0)),
            scratch_shapes=[pltpu.VMEM((Bt * S, C), jnp.float32)],
        ),
        compiler_params=pltpu.CompilerParams(
            dimension_semantics=("parallel",),
            vmem_limit_bytes=48 * 1024 * 1024,
        ),
    )(h_dense, maskf, *params)
    return out[:B]


def to_dense_batch(x, batch, B, S):
    """Equivalent of torch_geometric.utils.to_dense_batch for sorted `batch`."""
    N, C = x.shape
    counts = jnp.bincount(batch, length=B)
    offsets = jnp.concatenate(
        [jnp.zeros((1,), jnp.int32), jnp.cumsum(counts)[:-1].astype(jnp.int32)])
    pos = jnp.arange(N, dtype=jnp.int32) - offsets[batch]
    dense = jnp.zeros((B, S, C), x.dtype).at[batch, pos].set(x)
    mask = jnp.zeros((B, S), bool).at[batch, pos].set(True)
    return dense, mask, pos


def reference(h_dense, maskf, params, heads):
    """Pure-JAX reference mirroring the kernel math (bf16 matmul inputs, f32 acc)."""
    wqkv, bqkv, wo, w1, b1, w2, vecs = params
    B, S, C = h_dense.shape
    Dh = C // heads
    bo, b2 = vecs[0:1], vecs[1:2]
    sc2, sh2 = vecs[2:3], vecs[3:4]
    sc3, sh3 = vecs[4:5], vecs[5:6]

    x2 = h_dense.reshape(B * S, C)
    qkv = jnp.dot(x2.astype(jnp.bfloat16), wqkv,
                  preferred_element_type=jnp.float32) + bqkv
    q = qkv[:, :C].reshape(B, S, heads, Dh)
    k = qkv[:, C:2 * C].reshape(B, S, heads, Dh)
    v = qkv[:, 2 * C:].reshape(B, S, heads, Dh)
    s = jnp.einsum('bqhd,bkhd->bhqk',
                   q.astype(jnp.bfloat16), k.astype(jnp.bfloat16),
                   preferred_element_type=jnp.float32) / (Dh ** 0.5)
    s = s + ((1.0 - maskf) * (-1e9))[:, :, None, :]
    p = jax.nn.softmax(s, axis=-1)
    o = jnp.einsum('bhqk,bkhd->bqhd',
                   p.astype(jnp.bfloat16), v.astype(jnp.bfloat16),
                   preferred_element_type=jnp.float32).reshape(B * S, C)
    attn = jnp.dot(o.astype(jnp.bfloat16), wo,
                   preferred_element_type=jnp.float32) + bo
    h = (attn + x2) * sc2 + sh2
    m = jnp.dot(h.astype(jnp.bfloat16), w1,
                preferred_element_type=jnp.float32) + b1
    m = jnp.maximum(m, 0.0)
    m = jnp.dot(m.astype(jnp.bfloat16), w2,
                preferred_element_type=jnp.float32) + b2
    out = (h + m) * sc3 + sh3
    return out.reshape(B, S, C)


if __name__ == "__main__":
    C, heads = 128, 4                        # lane-dense channel dim (multiple of 128)
    nodes = [13, 16, 9, 11, 16, 7, 14, 10]   # nodes per graph
    B, S, N = len(nodes), max(nodes), sum(nodes)

    key = jax.random.PRNGKey(0)
    ks = jax.random.split(key, 24)

    def init(k, shape, scale=0.1):
        return (jax.random.normal(k, shape) * scale).astype(jnp.float32)

    x = jax.random.normal(ks[0], (N, C), jnp.float32)
    batch = jnp.concatenate(
        [jnp.full((n,), i, jnp.int32) for i, n in enumerate(nodes)])
    # edge_index is unused when conv=None and att_type='transformer'.

    # MultiheadAttention weights, stored transposed (y = x @ W) and fused q|k|v.
    wq, wk, wv, wo = (init(ks[i], (C, C)) for i in range(1, 5))
    bq, bk, bv, bo = (init(ks[i], (1, C)) for i in range(5, 9))
    wqkv = jnp.concatenate([wq, wk, wv], axis=1)       # (C, 3C)
    bqkv = jnp.concatenate([bq, bk, bv], axis=1)       # (1, 3C)
    # MLP
    w1 = init(ks[9], (C, 2 * C)); b1 = init(ks[10], (1, 2 * C))
    w2 = init(ks[11], (2 * C, C)); b2 = init(ks[12], (1, C))

    # BatchNorm1d (eval) -> folded per-channel scale/shift
    eps = 1e-5
    def bn_fold(kw, kb, km, kv_):
        w = 1.0 + init(kw, (1, C))
        b_ = init(kb, (1, C))
        rm = init(km, (1, C))
        rv = 1.0 + jnp.abs(init(kv_, (1, C)))
        scale = w / jnp.sqrt(rv + eps)
        return scale, b_ - rm * scale
    sc2, sh2 = bn_fold(ks[13], ks[14], ks[15], ks[16])
    sc3, sh3 = bn_fold(ks[17], ks[18], ks[19], ks[20])

    # Stack the six per-channel (1,C) vectors into one (8,C) array (1 DMA, not 6).
    vecs = jnp.concatenate(
        [bo, b2, sc2, sh2, sc3, sh3, jnp.zeros((2, C), jnp.float32)], axis=0)

    bf = jnp.bfloat16
    params = (wqkv.astype(bf), bqkv, wo.astype(bf),
              w1.astype(bf), b1, w2.astype(bf), vecs)

    # to_dense_batch glue (plain JAX), fused Pallas kernel, gather-back (== h[mask]).
    h_dense, mask, pos = to_dense_batch(x, batch, B, S)
    maskf = mask.astype(jnp.float32).reshape(B, 1, S)

    out_dense = gps_conv_dense(h_dense, maskf, params, heads, graphs_per_block=4)
    out_nodes = jax.block_until_ready(out_dense[batch, pos])        # (N, C)

    ref_nodes = reference(h_dense, maskf, params, heads)[batch, pos]
    assert out_nodes.shape == (N, C)
    err = float(jnp.max(jnp.abs(out_nodes - ref_nodes)))
    ref_scale = float(jnp.max(jnp.abs(ref_nodes)))
    assert err <= 1e-2 * ref_scale + 1e-2, f"mismatch vs reference: {err} (scale {ref_scale})"

    # TODO(synk): the optional MessagePassing `conv` branch (conv=None here), the
    # 'mamba' att_type, and training-mode dropout / batch-statistic norms are omitted.
    print("KERNEL_OK")
</pallas_src>

<mosaic_0001>
module attributes {stable_mosaic.version = 11 : i64} {
  func.func @_gps_kernel(%arg0: i32, %arg1: memref<4x16x128xf32, #tpu.memory_space<vmem>>, %arg2: memref<4x1x16xf32, #tpu.memory_space<vmem>>, %arg3: memref<128x384xbf16, #tpu.memory_space<vmem>>, %arg4: memref<1x384xf32, #tpu.memory_space<vmem>>, %arg5: memref<128x128xbf16, #tpu.memory_space<vmem>>, %arg6: memref<128x256xbf16, #tpu.memory_space<vmem>>, %arg7: memref<1x256xf32, #tpu.memory_space<vmem>>, %arg8: memref<256x128xbf16, #tpu.memory_space<vmem>>, %arg9: memref<8x128xf32, #tpu.memory_space<vmem>>, %arg10: memref<4x16x128xf32, #tpu.memory_space<vmem>>, %arg11: memref<64x128xf32, #tpu.memory_space<vmem>>) attributes {dimension_semantics = [#tpu.dimension_semantics<parallel>], iteration_bounds = array<i64: 2>, scalar_prefetch = 0 : i64, scratch_operands = 1 : i64, tpu.core_type = #tpu.core_type<tc>, window_params = [{transform_indices = @transform_0, window_bounds = array<i64: 4, 16, 128>}, {transform_indices = @transform_1, window_bounds = array<i64: 4, 1, 16>}, {pipeline_mode = #tpu.pipeline_mode<synchronous>, transform_indices = @transform_2, window_bounds = array<i64: 128, 384>}, {pipeline_mode = #tpu.pipeline_mode<synchronous>, transform_indices = @transform_3, window_bounds = array<i64: 1, 384>}, {pipeline_mode = #tpu.pipeline_mode<synchronous>, transform_indices = @transform_4, window_bounds = array<i64: 128, 128>}, {pipeline_mode = #tpu.pipeline_mode<synchronous>, transform_indices = @transform_5, window_bounds = array<i64: 128, 256>}, {pipeline_mode = #tpu.pipeline_mode<synchronous>, transform_indices = @transform_6, window_bounds = array<i64: 1, 256>}, {pipeline_mode = #tpu.pipeline_mode<synchronous>, transform_indices = @transform_7, window_bounds = array<i64: 256, 128>}, {pipeline_mode = #tpu.pipeline_mode<synchronous>, transform_indices = @transform_8, window_bounds = array<i64: 8, 128>}, {transform_indices = @transform_9, window_bounds = array<i64: 4, 16, 128>}]} {
    %c0 = arith.constant 0 : index
    %c0_0 = arith.constant 0 : index
    %c0_1 = arith.constant 0 : index
    %0 = vector.load %arg1[%c0, %c0_0, %c0_1] : memref<4x16x128xf32, #tpu.memory_space<vmem>>, vector<4x16x128xf32>
    %1 = vector.shape_cast %0 : vector<4x16x128xf32> to vector<64x128xf32>
    %2 = arith.truncf %1 : vector<64x128xf32> to vector<64x128xbf16>
    %c0_2 = arith.constant 0 : index
    %c0_3 = arith.constant 0 : index
    %3 = vector.load %arg3[%c0_2, %c0_3] : memref<128x384xbf16, #tpu.memory_space<vmem>>, vector<128x384xbf16>
    %cst = arith.constant dense<0.000000e+00> : vector<64x384xf32>
    %4 = tpu.matmul %2, %3, %cst {dimension_numbers = #tpu.dot_dimension_numbers<[1], [0], [0], [1], [0, 0, 1, 1], [], []>} : vector<64x128xbf16>, vector<128x384xbf16>, vector<64x384xf32> -> vector<64x384xf32>
    %c0_4 = arith.constant 0 : index
    %c0_5 = arith.constant 0 : index
    %5 = vector.load %arg4[%c0_4, %c0_5] : memref<1x384xf32, #tpu.memory_space<vmem>>, vector<1x384xf32>
    %6 = vector.broadcast %5 : vector<1x384xf32> to vector<64x384xf32>
    %7 = arith.addf %4, %6 : vector<64x384xf32>
    %8 = vector.extract_strided_slice %7 {offsets = [0, 0], sizes = [64, 128], strides = [1, 1]} : vector<64x384xf32> to vector<64x128xf32>
    %9 = vector.shape_cast %8 : vector<64x128xf32> to vector<4x16x128xf32>
    %10 = arith.truncf %9 : vector<4x16x128xf32> to vector<4x16x128xbf16>
    %11 = vector.extract_strided_slice %7 {offsets = [0, 128], sizes = [64, 128], strides = [1, 1]} : vector<64x384xf32> to vector<64x128xf32>
    %12 = vector.shape_cast %11 : vector<64x128xf32> to vector<4x16x128xf32>
    %13 = arith.truncf %12 : vector<4x16x128xf32> to vector<4x16x128xbf16>
    %14 = vector.extract_strided_slice %7 {offsets = [0, 256], sizes = [64, 128], strides = [1, 1]} : vector<64x384xf32> to vector<64x128xf32>
    %15 = vector.shape_cast %14 : vector<64x128xf32> to vector<4x16x128xf32>
    %16 = arith.truncf %15 : vector<4x16x128xf32> to vector<4x16x128xbf16>
    %c0_6 = arith.constant 0 : index
    %c0_7 = arith.constant 0 : index
    %c0_8 = arith.constant 0 : index
    %17 = vector.load %arg2[%c0_6, %c0_7, %c0_8] : memref<4x1x16xf32, #tpu.memory_space<vmem>>, vector<4x1x16xf32>
    %cst_9 = arith.constant 1.000000e+00 : f32
    %18 = vector.broadcast %cst_9 : f32 to vector<4x1x16xf32>
    %19 = arith.subf %18, %17 : vector<4x1x16xf32>
    %cst_10 = arith.constant -1.000000e+09 : f32
    %20 = vector.broadcast %cst_10 : f32 to vector<4x1x16xf32>
    %21 = arith.mulf %19, %20 : vector<4x1x16xf32>
    %22 = vector.extract_strided_slice %10 {offsets = [0, 0, 0], sizes = [4, 16, 32], strides = [1, 1, 1]} : vector<4x16x128xbf16> to vector<4x16x32xbf16>
    %23 = vector.extract_strided_slice %13 {offsets = [0, 0, 0], sizes = [4, 16, 32], strides = [1, 1, 1]} : vector<4x16x128xbf16> to vector<4x16x32xbf16>
    %24 = vector.extract_strided_slice %16 {offsets = [0, 0, 0], sizes = [4, 16, 32], strides = [1, 1, 1]} : vector<4x16x128xbf16> to vector<4x16x32xbf16>
    "tpu.trace_start"() <{level = 10 : i32, message = "bqd,bkd->bqk"}> : () -> ()
    %cst_11 = arith.constant dense<0.000000e+00> : vector<4x16x16xf32>
    %25 = tpu.matmul %22, %23, %cst_11 {dimension_numbers = #tpu.dot_dimension_numbers<[2], [2], [1], [1], [0, 0, 0, 1, 1, 1], [0], [0]>} : vector<4x16x32xbf16>, vector<4x16x32xbf16>, vector<4x16x16xf32> -> vector<4x16x16xf32>
    "tpu.trace_stop"() : () -> ()
    %cst_12 = arith.constant 0.176776692 : f32
    %26 = vector.broadcast %cst_12 : f32 to vector<4x16x16xf32>
    %27 = arith.mulf %25, %26 : vector<4x16x16xf32>
    %28 = vector.broadcast %21 : vector<4x1x16xf32> to vector<4x16x16xf32>
    %29 = arith.addf %27, %28 : vector<4x16x16xf32>
    %cst_13 = arith.constant dense<0xFF800000> : vector<4x16xf32>
    %30 = vector.multi_reduction <maximumf>, %29, %cst_13 [2] : vector<4x16x16xf32> to vector<4x16xf32>
    %31 = vector.shape_cast %30 : vector<4x16xf32> to vector<4x16x1xf32>
    %32 = vector.broadcast %31 : vector<4x16x1xf32> to vector<4x16x16xf32>
    %33 = arith.subf %29, %32 : vector<4x16x16xf32>
    %34 = math.exp %33 : vector<4x16x16xf32>
    %cst_14 = arith.constant dense<0.000000e+00> : vector<4x16xf32>
    %35 = vector.multi_reduction <add>, %34, %cst_14 [2] : vector<4x16x16xf32> to vector<4x16xf32>
    %36 = vector.shape_cast %35 : vector<4x16xf32> to vector<4x16x1xf32>
    %37 = tpu.reciprocal %36 {approx = true} : vector<4x16x1xf32> -> vector<4x16x1xf32>
    %38 = vector.broadcast %37 : vector<4x16x1xf32> to vector<4x16x16xf32>
    %39 = arith.mulf %34, %38 : vector<4x16x16xf32>
    %40 = arith.truncf %39 : vector<4x16x16xf32> to vector<4x16x16xbf16>
    "tpu.trace_start"() <{level = 10 : i32, message = "bqk,bkd->bqd"}> : () -> ()
    %cst_15 = arith.constant dense<0.000000e+00> : vector<4x16x32xf32>
    %41 = tpu.matmul %40, %24, %cst_15 {dimension_numbers = #tpu.dot_dimension_numbers<[2], [1], [1], [2], [0, 0, 0, 1, 1, 2], [0], [0]>} : vector<4x16x16xbf16>, vector<4x16x32xbf16>, vector<4x16x32xf32> -> vector<4x16x32xf32>
    "tpu.trace_stop"() : () -> ()
    %42 = vector.shape_cast %41 : vector<4x16x32xf32> to vector<64x32xf32>
    %c0_16 = arith.constant 0 : index
    %c0_17 = arith.constant 0 : index
    %43 = vector.load %arg11[%c0_16, %c0_17] : memref<64x128xf32, #tpu.memory_space<vmem>>, vector<64x32xf32>
    tpu.vector_store %arg11[%c0_16, %c0_17], %42 {strides = array<i32>} : memref<64x128xf32, #tpu.memory_space<vmem>>, vector<64x32xf32>,
    %44 = vector.extract_strided_slice %10 {offsets = [0, 0, 32], sizes = [4, 16, 32], strides = [1, 1, 1]} : vector<4x16x128xbf16> to vector<4x16x32xbf16>
    %45 = vector.extract_strided_slice %13 {offsets = [0, 0, 32], sizes = [4, 16, 32], strides = [1, 1, 1]} : vector<4x16x128xbf16> to vector<4x16x32xbf16>
    %46 = vector.extract_strided_slice %16 {offsets = [0, 0, 32], sizes = [4, 16, 32], strides = [1, 1, 1]} : vector<4x16x128xbf16> to vector<4x16x32xbf16>
    "tpu.trace_start"() <{level = 10 : i32, message = "bqd,bkd->bqk"}> : () -> ()
    %cst_18 = arith.constant dense<0.000000e+00> : vector<4x16x16xf32>
    %47 = tpu.matmul %44, %45, %cst_18 {dimension_numbers = #tpu.dot_dimension_numbers<[2], [2], [1], [1], [0, 0, 0, 1, 1, 1], [0], [0]>} : vector<4x16x32xbf16>, vector<4x16x32xbf16>, vector<4x16x16xf32> -> vector<4x16x16xf32>
    "tpu.trace_stop"() : () -> ()
    %cst_19 = arith.constant 0.176776692 : f32
    %48 = vector.broadcast %cst_19 : f32 to vector<4x16x16xf32>
    %49 = arith.mulf %47, %48 : vector<4x16x16xf32>
    %50 = vector.broadcast %21 : vector<4x1x16xf32> to vector<4x16x16xf32>
    %51 = arith.addf %49, %50 : vector<4x16x16xf32>
    %cst_20 = arith.constant dense<0xFF800000> : vector<4x16xf32>
    %52 = vector.multi_reduction <maximumf>, %51, %cst_20 [2] : vector<4x16x16xf32> to vector<4x16xf32>
    %53 = vector.shape_cast %52 : vector<4x16xf32> to vector<4x16x1xf32>
    %54 = vector.broadcast %53 : vector<4x16x1xf32> to vector<4x16x16xf32>
    %55 = arith.subf %51, %54 : vector<4x16x16xf32>
    %56 = math.exp %55 : vector<4x16x16xf32>
    %cst_21 = arith.constant dense<0.000000e+00> : vector<4x16xf32>
    %57 = vector.multi_reduction <add>, %56, %cst_21 [2] : vector<4x16x16xf32> to vector<4x16xf32>
    %58 = vector.shape_cast %57 : vector<4x16xf32> to vector<4x16x1xf32>
    %59 = tpu.reciprocal %58 {approx = true} : vector<4x16x1xf32> -> vector<4x16x1xf32>
    %60 = vector.broadcast %59 : vector<4x16x1xf32> to vector<4x16x16xf32>
    %61 = arith.mulf %56, %60 : vector<4x16x16xf32>
    %62 = arith.truncf %61 : vector<4x16x16xf32> to vector<4x16x16xbf16>
    "tpu.trace_start"() <{level = 10 : i32, message = "bqk,bkd->bqd"}> : () -> ()
    %cst_22 = arith.constant dense<0.000000e+00> : vector<4x16x32xf32>
    %63 = tpu.matmul %62, %46, %cst_22 {dimension_numbers = #tpu.dot_dimension_numbers<[2], [1], [1], [2], [0, 0, 0, 1, 1, 2], [0], [0]>} : vector<4x16x16xbf16>, vector<4x16x32xbf16>, vector<4x16x32xf32> -> vector<4x16x32xf32>
    "tpu.trace_stop"() : () -> ()
    %64 = vector.shape_cast %63 : vector<4x16x32xf32> to vector<64x32xf32>
    %c0_23 = arith.constant 0 : index
    %c32 = arith.constant 32 : index
    %65 = vector.load %arg11[%c0_23, %c32] : memref<64x128xf32, #tpu.memory_space<vmem>>, vector<64x32xf32>
    tpu.vector_store %arg11[%c0_23, %c32], %64 {strides = array<i32>} : memref<64x128xf32, #tpu.memory_space<vmem>>, vector<64x32xf32>,
    %66 = vector.extract_strided_slice %10 {offsets = [0, 0, 64], sizes = [4, 16, 32], strides = [1, 1, 1]} : vector<4x16x128xbf16> to vector<4x16x32xbf16>
    %67 = vector.extract_strided_slice %13 {offsets = [0, 0, 64], sizes = [4, 16, 32], strides = [1, 1, 1]} : vector<4x16x128xbf16> to vector<4x16x32xbf16>
    %68 = vector.extract_strided_slice %16 {offsets = [0, 0, 64], sizes = [4, 16, 32], strides = [1, 1, 1]} : vector<4x16x128xbf16> to vector<4x16x32xbf16>
    "tpu.trace_start"() <{level = 10 : i32, message = "bqd,bkd->bqk"}> : () -> ()
    %cst_24 = arith.constant dense<0.000000e+00> : vector<4x16x16xf32>
    %69 = tpu.matmul %66, %67, %cst_24 {dimension_numbers = #tpu.dot_dimension_numbers<[2], [2], [1], [1], [0, 0, 0, 1, 1, 1], [0], [0]>} : vector<4x16x32xbf16>, vector<4x16x32xbf16>, vector<4x16x16xf32> -> vector<4x16x16xf32>
    "tpu.trace_stop"() : () -> ()
    %cst_25 = arith.constant 0.176776692 : f32
    %70 = vector.broadcast %cst_25 : f32 to vector<4x16x16xf32>
    %71 = arith.mulf %69, %70 : vector<4x16x16xf32>
    %72 = vector.broadcast %21 : vector<4x1x16xf32> to vector<4x16x16xf32>
    %73 = arith.addf %71, %72 : vector<4x16x16xf32>
    %cst_26 = arith.constant dense<0xFF800000> : vector<4x16xf32>
    %74 = vector.multi_reduction <maximumf>, %73, %cst_26 [2] : vector<4x16x16xf32> to vector<4x16xf32>
    %75 = vector.shape_cast %74 : vector<4x16xf32> to vector<4x16x1xf32>
    %76 = vector.broadcast %75 : vector<4x16x1xf32> to vector<4x16x16xf32>
    %77 = arith.subf %73, %76 : vector<4x16x16xf32>
    %78 = math.exp %77 : vector<4x16x16xf32>
    %cst_27 = arith.constant dense<0.000000e+00> : vector<4x16xf32>
    %79 = vector.multi_reduction <add>, %78, %cst_27 [2] : vector<4x16x16xf32> to vector<4x16xf32>
    %80 = vector.shape_cast %79 : vector<4x16xf32> to vector<4x16x1xf32>
    %81 = tpu.reciprocal %80 {approx = true} : vector<4x16x1xf32> -> vector<4x16x1xf32>
    %82 = vector.broadcast %81 : vector<4x16x1xf32> to vector<4x16x16xf32>
    %83 = arith.mulf %78, %82 : vector<4x16x16xf32>
    %84 = arith.truncf %83 : vector<4x16x16xf32> to vector<4x16x16xbf16>
    "tpu.trace_start"() <{level = 10 : i32, message = "bqk,bkd->bqd"}> : () -> ()
    %cst_28 = arith.constant dense<0.000000e+00> : vector<4x16x32xf32>
    %85 = tpu.matmul %84, %68, %cst_28 {dimension_numbers = #tpu.dot_dimension_numbers<[2], [1], [1], [2], [0, 0, 0, 1, 1, 2], [0], [0]>} : vector<4x16x16xbf16>, vector<4x16x32xbf16>, vector<4x16x32xf32> -> vector<4x16x32xf32>
    "tpu.trace_stop"() : () -> ()
    %86 = vector.shape_cast %85 : vector<4x16x32xf32> to vector<64x32xf32>
    %c0_29 = arith.constant 0 : index
    %c64 = arith.constant 64 : index
    %87 = vector.load %arg11[%c0_29, %c64] : memref<64x128xf32, #tpu.memory_space<vmem>>, vector<64x32xf32>
    tpu.vector_store %arg11[%c0_29, %c64], %86 {strides = array<i32>} : memref<64x128xf32, #tpu.memory_space<vmem>>, vector<64x32xf32>,
    %88 = vector.extract_strided_slice %10 {offsets = [0, 0, 96], sizes = [4, 16, 32], strides = [1, 1, 1]} : vector<4x16x128xbf16> to vector<4x16x32xbf16>
    %89 = vector.extract_strided_slice %13 {offsets = [0, 0, 96], sizes = [4, 16, 32], strides = [1, 1, 1]} : vector<4x16x128xbf16> to vector<4x16x32xbf16>
    %90 = vector.extract_strided_slice %16 {offsets = [0, 0, 96], sizes = [4, 16, 32], strides = [1, 1, 1]} : vector<4x16x128xbf16> to vector<4x16x32xbf16>
    "tpu.trace_start"() <{level = 10 : i32, message = "bqd,bkd->bqk"}> : () -> ()
    %cst_30 = arith.constant dense<0.000000e+00> : vector<4x16x16xf32>
    %91 = tpu.matmul %88, %89, %cst_30 {dimension_numbers = #tpu.dot_dimension_numbers<[2], [2], [1], [1], [0, 0, 0, 1, 1, 1], [0], [0]>} : vector<4x16x32xbf16>, vector<4x16x32xbf16>, vector<4x16x16xf32> -> vector<4x16x16xf32>
    "tpu.trace_stop"() : () -> ()
    %cst_31 = arith.constant 0.176776692 : f32
    %92 = vector.broadcast %cst_31 : f32 to vector<4x16x16xf32>
    %93 = arith.mulf %91, %92 : vector<4x16x16xf32>
    %94 = vector.broadcast %21 : vector<4x1x16xf32> to vector<4x16x16xf32>
    %95 = arith.addf %93, %94 : vector<4x16x16xf32>
    %cst_32 = arith.constant dense<0xFF800000> : vector<4x16xf32>
    %96 = vector.multi_reduction <maximumf>, %95, %cst_32 [2] : vector<4x16x16xf32> to vector<4x16xf32>
    %97 = vector.shape_cast %96 : vector<4x16xf32> to vector<4x16x1xf32>
    %98 = vector.broadcast %97 : vector<4x16x1xf32> to vector<4x16x16xf32>
    %99 = arith.subf %95, %98 : vector<4x16x16xf32>
    %100 = math.exp %99 : vector<4x16x16xf32>
    %cst_33 = arith.constant dense<0.000000e+00> : vector<4x16xf32>
    %101 = vector.multi_reduction <add>, %100, %cst_33 [2] : vector<4x16x16xf32> to vector<4x16xf32>
    %102 = vector.shape_cast %101 : vector<4x16xf32> to vector<4x16x1xf32>
    %103 = tpu.reciprocal %102 {approx = true} : vector<4x16x1xf32> -> vector<4x16x1xf32>
    %104 = vector.broadcast %103 : vector<4x16x1xf32> to vector<4x16x16xf32>
    %105 = arith.mulf %100, %104 : vector<4x16x16xf32>
    %106 = arith.truncf %105 : vector<4x16x16xf32> to vector<4x16x16xbf16>
    "tpu.trace_start"() <{level = 10 : i32, message = "bqk,bkd->bqd"}> : () -> ()
    %cst_34 = arith.constant dense<0.000000e+00> : vector<4x16x32xf32>
    %107 = tpu.matmul %106, %90, %cst_34 {dimension_numbers = #tpu.dot_dimension_numbers<[2], [1], [1], [2], [0, 0, 0, 1, 1, 2], [0], [0]>} : vector<4x16x16xbf16>, vector<4x16x32xbf16>, vector<4x16x32xf32> -> vector<4x16x32xf32>
    "tpu.trace_stop"() : () -> ()
    %108 = vector.shape_cast %107 : vector<4x16x32xf32> to vector<64x32xf32>
    %c0_35 = arith.constant 0 : index
    %c96 = arith.constant 96 : index
    %109 = vector.load %arg11[%c0_35, %c96] : memref<64x128xf32, #tpu.memory_space<vmem>>, vector<64x32xf32>
    tpu.vector_store %arg11[%c0_35, %c96], %108 {strides = array<i32>} : memref<64x128xf32, #tpu.memory_space<vmem>>, vector<64x32xf32>,
    %c0_36 = arith.constant 0 : index
    %c0_37 = arith.constant 0 : index
    %110 = vector.load %arg9[%c0_36, %c0_37] : memref<8x128xf32, #tpu.memory_space<vmem>>, vector<8x128xf32>
    %111 = vector.extract_strided_slice %110 {offsets = [0, 0], sizes = [1, 128], strides = [1, 1]} : vector<8x128xf32> to vector<1x128xf32>
    %112 = vector.extract_strided_slice %110 {offsets = [1, 0], sizes = [1, 128], strides = [1, 1]} : vector<8x128xf32> to vector<1x128xf32>
    %113 = vector.extract_strided_slice %110 {offsets = [2, 0], sizes = [1, 128], strides = [1, 1]} : vector<8x128xf32> to vector<1x128xf32>
    %114 = vector.extract_strided_slice %110 {offsets = [3, 0], sizes = [1, 128], strides = [1, 1]} : vector<8x128xf32> to vector<1x128xf32>
    %115 = vector.extract_strided_slice %110 {offsets = [4, 0], sizes = [1, 128], strides = [1, 1]} : vector<8x128xf32> to vector<1x128xf32>
    %116 = vector.extract_strided_slice %110 {offsets = [5, 0], sizes = [1, 128], strides = [1, 1]} : vector<8x128xf32> to vector<1x128xf32>
    %c0_38 = arith.constant 0 : index
    %c0_39 = arith.constant 0 : index
    %117 = vector.load %arg11[%c0_38, %c0_39] : memref<64x128xf32, #tpu.memory_space<vmem>>, vector<64x128xf32>
    %118 = arith.truncf %117 : vector<64x128xf32> to vector<64x128xbf16>
    %c0_40 = arith.constant 0 : index
    %c0_41 = arith.constant 0 : index
    %119 = vector.load %arg5[%c0_40, %c0_41] : memref<128x128xbf16, #tpu.memory_space<vmem>>, vector<128x128xbf16>
    %cst_42 = arith.constant dense<0.000000e+00> : vector<64x128xf32>
    %120 = tpu.matmul %118, %119, %cst_42 {dimension_numbers = #tpu.dot_dimension_numbers<[1], [0], [0], [1], [0, 0, 1, 1], [], []>} : vector<64x128xbf16>, vector<128x128xbf16>, vector<64x128xf32> -> vector<64x128xf32>
    %121 = vector.broadcast %111 : vector<1x128xf32> to vector<64x128xf32>
    %122 = arith.addf %120, %121 : vector<64x128xf32>
    %123 = arith.addf %122, %1 : vector<64x128xf32>
    %124 = vector.broadcast %113 : vector<1x128xf32> to vector<64x128xf32>
    %125 = arith.mulf %123, %124 : vector<64x128xf32>
    %126 = vector.broadcast %114 : vector<1x128xf32> to vector<64x128xf32>
    %127 = arith.addf %125, %126 : vector<64x128xf32>
    %128 = arith.truncf %127 : vector<64x128xf32> to vector<64x128xbf16>
    %c0_43 = arith.constant 0 : index
    %c0_44 = arith.constant 0 : index
    %129 = vector.load %arg6[%c0_43, %c0_44] : memref<128x256xbf16, #tpu.memory_space<vmem>>, vector<128x256xbf16>
    %cst_45 = arith.constant dense<0.000000e+00> : vector<64x256xf32>
    %130 = tpu.matmul %128, %129, %cst_45 {dimension_numbers = #tpu.dot_dimension_numbers<[1], [0], [0], [1], [0, 0, 1, 1], [], []>} : vector<64x128xbf16>, vector<128x256xbf16>, vector<64x256xf32> -> vector<64x256xf32>
    %c0_46 = arith.constant 0 : index
    %c0_47 = arith.constant 0 : index
    %131 = vector.load %arg7[%c0_46, %c0_47] : memref<1x256xf32, #tpu.memory_space<vmem>>, vector<1x256xf32>
    %132 = vector.broadcast %131 : vector<1x256xf32> to vector<64x256xf32>
    %133 = arith.addf %130, %132 : vector<64x256xf32>
    %cst_48 = arith.constant 0.000000e+00 : f32
    %134 = vector.broadcast %cst_48 : f32 to vector<64x256xf32>
    %135 = arith.maximumf %133, %134 : vector<64x256xf32>
    %136 = arith.truncf %135 : vector<64x256xf32> to vector<64x256xbf16>
    %c0_49 = arith.constant 0 : index
    %c0_50 = arith.constant 0 : index
    %137 = vector.load %arg8[%c0_49, %c0_50] : memref<256x128xbf16, #tpu.memory_space<vmem>>, vector<256x128xbf16>
    %cst_51 = arith.constant dense<0.000000e+00> : vector<64x128xf32>
    %138 = tpu.matmul %136, %137, %cst_51 {dimension_numbers = #tpu.dot_dimension_numbers<[1], [0], [0], [1], [0, 0, 1, 1], [], []>} : vector<64x256xbf16>, vector<256x128xbf16>, vector<64x128xf32> -> vector<64x128xf32>
    %139 = vector.broadcast %112 : vector<1x128xf32> to vector<64x128xf32>
    %140 = arith.addf %138, %139 : vector<64x128xf32>
    %141 = arith.addf %127, %140 : vector<64x128xf32>
    %142 = vector.broadcast %115 : vector<1x128xf32> to vector<64x128xf32>
    %143 = arith.mulf %141, %142 : vector<64x128xf32>
    %144 = vector.broadcast %116 : vector<1x128xf32> to vector<64x128xf32>
    %145 = arith.addf %143, %144 : vector<64x128xf32>
    %146 = vector.shape_cast %145 : vector<64x128xf32> to vector<4x16x128xf32>
    %c0_52 = arith.constant 0 : index
    %c0_53 = arith.constant 0 : index
    %c0_54 = arith.constant 0 : index
    %147 = vector.load %arg10[%c0_52, %c0_53, %c0_54] : memref<4x16x128xf32, #tpu.memory_space<vmem>>, vector<4x16x128xf32>
    tpu.vector_store %arg10[%c0_52, %c0_53, %c0_54], %146 {strides = array<i32>} : memref<4x16x128xf32, #tpu.memory_space<vmem>>, vector<4x16x128xf32>,
    return
  }
  func.func @transform_0(%arg0: i32) -> (i32, i32, i32) {
    %c0_i32 = arith.constant 0 : i32
    %c0_i32_0 = arith.constant 0 : i32
    %c0_i32_1 = arith.constant 0 : i32
    return %arg0, %c0_i32, %c0_i32_0 : i32, i32, i32
  }
  func.func @transform_1(%arg0: i32) -> (i32, i32, i32) {
    %c0_i32 = arith.constant 0 : i32
    %c0_i32_0 = arith.constant 0 : i32
    %c0_i32_1 = arith.constant 0 : i32
    return %arg0, %c0_i32, %c0_i32_0 : i32, i32, i32
  }
  func.func @transform_2(%arg0: i32) -> (i32, i32) {
    %c0_i32 = arith.constant 0 : i32
    %c0_i32_0 = arith.constant 0 : i32
    %c0_i32_1 = arith.constant 0 : i32
    return %c0_i32, %c0_i32_0 : i32, i32
  }
  func.func @transform_3(%arg0: i32) -> (i32, i32) {
    %c0_i32 = arith.constant 0 : i32
    %c0_i32_0 = arith.constant 0 : i32
    %c0_i32_1 = arith.constant 0 : i32
    return %c0_i32, %c0_i32_0 : i32, i32
  }
  func.func @transform_4(%arg0: i32) -> (i32, i32) {
    %c0_i32 = arith.constant 0 : i32
    %c0_i32_0 = arith.constant 0 : i32
    %c0_i32_1 = arith.constant 0 : i32
    return %c0_i32, %c0_i32_0 : i32, i32
  }
  func.func @transform_5(%arg0: i32) -> (i32, i32) {
    %c0_i32 = arith.constant 0 : i32
    %c0_i32_0 = arith.constant 0 : i32
    %c0_i32_1 = arith.constant 0 : i32
    return %c0_i32, %c0_i32_0 : i32, i32
  }
  func.func @transform_6(%arg0: i32) -> (i32, i32) {
    %c0_i32 = arith.constant 0 : i32
    %c0_i32_0 = arith.constant 0 : i32
    %c0_i32_1 = arith.constant 0 : i32
    return %c0_i32, %c0_i32_0 : i32, i32
  }
  func.func @transform_7(%arg0: i32) -> (i32, i32) {
    %c0_i32 = arith.constant 0 : i32
    %c0_i32_0 = arith.constant 0 : i32
    %c0_i32_1 = arith.constant 0 : i32
    return %c0_i32, %c0_i32_0 : i32, i32
  }
  func.func @transform_8(%arg0: i32) -> (i32, i32) {
    %c0_i32 = arith.constant 0 : i32
    %c0_i32_0 = arith.constant 0 : i32
    %c0_i32_1 = arith.constant 0 : i32
    return %c0_i32, %c0_i32_0 : i32, i32
  }
  func.func @transform_9(%arg0: i32) -> (i32, i32, i32) {
    %c0_i32 = arith.constant 0 : i32
    %c0_i32_0 = arith.constant 0 : i32
    %c0_i32_1 = arith.constant 0 : i32
    return %arg0, %c0_i32, %c0_i32_0 : i32, i32, i32
  }
}

</mosaic_0001>

<bundles_post_ra>
// kernel: tpu_custom_call.1
= control target key start
LH: loop header
LB: loop body
LE: loop exit
PB: predicated region body
PF: predicated region fallthrough
CT: control target
= control target key end

     0   :  { %s5902_s0 = inlined_call_operand.hbm [shape: f32[8,16,128], index: 0, kind: input, shape index: {}]   ;;  %s5903_s1 = inlined_call_operand.hbm [shape: f32[8,1,16], index: 1, kind: input, shape index: {}]   ;;  %s5904_s2 = inlined_call_operand.hbm [shape: bf16[128,384], index: 2, kind: input, shape index: {}]   ;;  %s5905_s3 = inlined_call_operand.vmem [shape: f32[1,384], index: 3, kind: input, shape index: {}]   ;;  %s5906_s4 = inlined_call_operand.hbm [shape: bf16[128,128], index: 4, kind: input, shape index: {}]   ;;  %s5907_s5 = inlined_call_operand.hbm [shape: bf16[128,256], index: 5, kind: input, shape index: {}]   ;;  %s5908_s6 = inlined_call_operand.vmem [shape: f32[1,256], index: 6, kind: input, shape index: {}]   ;;  %s5909_s7 = inlined_call_operand.hbm [shape: bf16[256,128], index: 7, kind: input, shape index: {}]   ;;  %s5910_s8 = inlined_call_operand.vmem [shape: f32[8,128], index: 8, kind: input, shape index: {}]   ;;  %s5911_s9 = inlined_call_operand.hbm [shape: f32[8,16,128], index: 9, kind: output, shape index: {}]  }
   0x1   :  { %5921 = sst [smem:[#allocation23_spill]] %s5902_s0 }
   0x2   :  { %5922 = sst [smem:[#allocation24_spill]] %s5904_s2 }
   0x3   :  { %5923 = sst [smem:[#allocation25_spill]] %s5906_s4 }
   0x4   :  { %5924 = sst [smem:[#allocation26_spill]] %s5907_s5 }
   0x5   :  { %5925 = sst [smem:[#allocation27_spill]] %s5909_s7 }
   0x6   :  { %14 = vsyncpa [#allocation4], 0 }
   0x7   :  { %16 = vsyncpa [#allocation4 + $0x1], 0 }
   0x8   :  { %17 = vsyncpa [#allocation7], 0 }
   0x9   :  { %19 = vsyncpa [#allocation7 + $0x1], 0 }
   0xa   :  { %20 = vsyncpa [#allocation10], 0 }
   0xb   :  { %21 = vsyncpa [#allocation13], 0 }
   0xc   :  { %22 = vsyncpa [#allocation5], 0 }
   0xd   :  { %24 = vsyncpa [#allocation5 + $0x1], 0  ;;  %s4885_s30 = smov 0   ;;  %s4887_s10 = smov 0  }
   0xe   :  { %s4889_s11 = smov 0   ;;  %s4891_s12 = smov 0  }
   0xf LB: > { %5926 = sst [smem:[#allocation21_spill]] %s4798_s30  ;;  %s4906_s13 = sadd.s32 4294967295, %s4810_s12   ;;  %s4810_s12 = sphi %s4891_s12, %s5961_s12   ;;  %s4806_s11 = sphi %s4889_s11, %s5960_s11   ;;  %s4802_s10 = sphi %s4887_s10, %s5959_s10   ;;  %s4798_s30 = sphi %s4885_s30, %s5958_s30  }
  0x10   : > { %s3719_s14 = sadd.s32 4294967294, %s4810_s12   ;;  %p50_p0 = scmp.ne.s32.totalorder %s4802_s10, %s4798_s30 }
  0x11   : > { %p5912_p1 = scmp.eq.s32.totalorder %s4906_s13, 0  ;;  %p253_p3 = scmp.eq.s32.totalorder %s3719_s14, 1 }
  0x12   : > { %p3720_p5 = scmp.ge.s32.totalorder %s4810_s12, 1  ;;  %p260_p7 = scmp.lt.s32.totalorder %s4810_s12, 3 }
  0x13   : > { %p4915_p4 = por %p5912_p1, %p50_p0  ;;  %p4920_p6 = por %p253_p3, %p50_p0 }
  0x14   : > { %p4925_p8 = pnand %p3720_p5, %p260_p7  ;;  %s4812_s18 = smov [#allocation8]  }
  0x15   : > { %s5927_s15 = scalar_select %p4915_p4, 1, 0 }
  0x16   : > { %s5928_s16 = scalar_select %p4920_p6, 1, 0 }
  0x17   : > { %s5930_s17 = scalar_select %p4925_p8, 1, 0 }
  0x18   : > { %5929 = sst [smem:[#allocation22_spill]] %s5928_s16  ;;  %s272_s19 = sshll.u32 %s4812_s18, 4  ;;  %s4929_s19 = int_to_ptr.vmem [resolvable:$true] %s272_s19 }
  0x19   : > { %p4254_p9 = pneg %p4925_p8  ;;  %s4813_s21 = smov [#allocation9]  }
  0x1a   : > { %s288_s22 = sshll.u32 %s4813_s21, 4  ;;  %s5932_s2 = sld [smem:[#allocation24_spill]]  ;;  %s4940_s22 = int_to_ptr.vmem [resolvable:$true] %s288_s22 }
  0x1b   : > { %p4936_p11 = pnand %p4254_p9, %p5912_p1 }
  0x1d   : > { %p4950_p13 = pneg %p4936_p11 }
  0x20   : > { %s4556_s25 = scalar_lea.hbm %s5932_s2, 3072 }
  0x21   : > { %p4557_p12 = scmp.ne.s32.totalorder %s5932_s2, %s4556_s25  ;;  %p4563_p5 = scmp.lt.u32.totalorder %s4556_s25, %s5932_s2 }
  0x23   : > { %p4559_p0 = pnand %p4950_p13, %p4557_p12 }
  0x25   : > { %p4560_p3 = pneg %p4559_p0 }
  0x27   : > { %p4565_p7 = pnand %p4563_p5, %p4560_p3 }
  0x29   : > { %4568 = shalt.err (!%p4565_p7)
}
  0x2a   : > { %s4569_s18 = scalar_lea.vmem %s4929_s19, 3072  ;;  %p4577_p2 = scmp.lt.s32.totalorder %s4929_s19, %s4929_s19 }
  0x2b   : > { %p4570_p9 = scmp.ne.s32.totalorder %s4929_s19, %s4569_s18  ;;  %p4578_p6 = scmp.lt.s32.totalorder %s4569_s18, %s4569_s18 }
  0x2d   : > { %p4572_p10 = pnand %p4570_p9, %p4950_p13  ;;  %p4579_p12 = por %p4578_p6, %p4577_p2 }
  0x2f   : > { %p4573_p1 = pneg %p4572_p10 }
  0x31   : > { %p4580_p0 = pnand %p4579_p12, %p4573_p1 }
  0x33   : > { %4583 = shalt.err (!%p4580_p0)
}
  0x34   : > { %s4814_s21 = smov 192   ;;  %s4815_s23 = smov 12  }
  0x35   : > { %4257 = dma.hbm_to_vmem [thread:$0]  (!%p4936_p11), %s5932_s2, 3072, %s4929_s19, [#allocation7], %s4814_s21, %s4814_s21, %s4815_s23  }
  0x36   : > { %s5934_s4 = sld [smem:[#allocation25_spill]] }
  0x3c   : > { %s4584_s29 = scalar_lea.hbm %s5934_s4, 1024 }
  0x3d   : > { %p4585_p2 = scmp.ne.s32.totalorder %s5934_s4, %s4584_s29  ;;  %p4591_p10 = scmp.lt.u32.totalorder %s4584_s29, %s5934_s4 }
  0x3f   : > { %p4587_p1 = pnand %p4585_p2, %p4950_p13 }
  0x41   : > { %p4588_p6 = pneg %p4587_p1 }
  0x43   : > { %p4593_p3 = pnand %p4591_p10, %p4588_p6 }
  0x45   : > { %4596 = shalt.err (!%p4593_p3)
}
  0x46   : > { %s4597_s19 = scalar_lea.vmem %s4940_s22, 1024  ;;  %p4605_p12 = scmp.lt.s32.totalorder %s4940_s22, %s4940_s22 }
  0x47   : > { %p4598_p5 = scmp.ne.s32.totalorder %s4940_s22, %s4597_s19  ;;  %p4606_p0 = scmp.lt.s32.totalorder %s4597_s19, %s4597_s19 }
  0x49   : > { %p4600_p7 = pnand %p4598_p5, %p4950_p13  ;;  %p4607_p2 = por %p4606_p0, %p4605_p12 }
  0x4b   : > { %p4601_p9 = pneg %p4600_p7 }
  0x4d   : > { %p4608_p1 = pnand %p4607_p2, %p4601_p9 }
  0x4f   : > { %4611 = shalt.err (!%p4608_p1)
}
  0x50   : > { %s5917_s16 = smov 64   ;;  %s5918_s30 = smov 4  }
  0x51   : > { %4260 = dma.hbm_to_vmem [thread:$0]  (!%p4936_p11), %s5934_s4, 1024, %s4940_s22, [#allocation10], %s5917_s16, %s5917_s16, %s5918_s30  }
  0x52   : > { %s4818_s24 = smov [#allocation11]   ;;  %s5935_s5 = sld [smem:[#allocation26_spill]] }
  0x53   : > { %s301_s25 = sshll.u32 %s4818_s24, 4  ;;  %s302_s25 = int_to_ptr.vmem [resolvable:$true] %s301_s25 }
  0x58   : > { %s4612_s29 = scalar_lea.hbm %s5935_s5, 2048 }
  0x59   : > { %p4613_p6 = scmp.ne.s32.totalorder %s5935_s5, %s4612_s29  ;;  %p4619_p5 = scmp.lt.u32.totalorder %s4612_s29, %s5935_s5 }
  0x5b   : > { %p4615_p10 = pnand %p4613_p6, %p4950_p13 }
  0x5d   : > { %p4616_p3 = pneg %p4615_p10 }
  0x5f   : > { %p4621_p7 = pnand %p4619_p5, %p4616_p3 }
  0x61   : > { %4624 = shalt.err (!%p4621_p7)
}
  0x62   : > { %s4625_s22 = scalar_lea.vmem %s302_s25, 2048  ;;  %p4633_p2 = scmp.lt.s32.totalorder %s302_s25, %s302_s25 }
  0x63   : > { %p4626_p9 = scmp.ne.s32.totalorder %s302_s25, %s4625_s22  ;;  %p4634_p1 = scmp.lt.s32.totalorder %s4625_s22, %s4625_s22 }
  0x65   : > { %p4628_p12 = pnand %p4626_p9, %p4950_p13  ;;  %p4635_p4 = por %p4634_p1, %p4633_p2 }
  0x67   : > { %p4629_p0 = pneg %p4628_p12 }
  0x69   : > { %p4636_p8 = pnand %p4635_p4, %p4629_p0 }
  0x6b   : > { %4639 = shalt.err (!%p4636_p8)
}
  0x6c   : > { %s5919_s21 = smov 128   ;;  %s5920_s23 = smov 8  }
  0x6d   : > { %4263 = dma.hbm_to_vmem [thread:$0]  (!%p4936_p11), %s5935_s5, 2048, %s302_s25, [#allocation10], %s5919_s21, %s5919_s21, %s5920_s23  }
  0x6e   : > { %s4821_s26 = smov [#allocation12]   ;;  %s5936_s7 = sld [smem:[#allocation27_spill]] }
  0x6f   : > { %s317_s27 = sshll.u32 %s4821_s26, 4  ;;  %s318_s27 = int_to_ptr.vmem [resolvable:$true] %s317_s27 }
  0x74   : > { %s4640_s18 = scalar_lea.hbm %s5936_s7, 2048 }
  0x75   : > { %p4641_p4 = scmp.ne.s32.totalorder %s5936_s7, %s4640_s18  ;;  %p4647_p10 = scmp.lt.u32.totalorder %s4640_s18, %s5936_s7 }
  0x77   : > { %p4643_p8 = pnand %p4641_p4, %p4950_p13 }
  0x79   : > { %p4644_p6 = pneg %p4643_p8 }
  0x7b   : > { %p4649_p3 = pnand %p4647_p10, %p4644_p6 }
  0x7d   : > { %4652 = shalt.err (!%p4649_p3)
}
  0x7e   : > { %s4653_s25 = scalar_lea.vmem %s318_s27, 2048  ;;  %p4661_p12 = scmp.lt.s32.totalorder %s318_s27, %s318_s27 }
  0x7f   : > { %p4654_p5 = scmp.ne.s32.totalorder %s318_s27, %s4653_s25  ;;  %p4662_p0 = scmp.lt.s32.totalorder %s4653_s25, %s4653_s25 }
  0x81   : > { %p4656_p7 = pnand %p4654_p5, %p4950_p13  ;;  %p4663_p2 = por %p4662_p0, %p4661_p12 }
  0x83   : > { %p4657_p9 = pneg %p4656_p7 }
  0x85   : > { %p4664_p1 = pnand %p4663_p2, %p4657_p9 }
  0x87   : > { %4667 = shalt.err (!%p4664_p1)
}
  0x88   : > { %s5937_s2 = smov 4   ;;  %s5938_s24 = smov 64  }
  0x89   : > { %4266 = dma.hbm_to_vmem [thread:$0]  (!%p4936_p11), %s5936_s7, 2048, %s318_s27, [#allocation13], %s5938_s24, %s5938_s24, %s5937_s2  }
  0x8a   : > { %s5040_s28 = sadd.s32 1, %s4810_s12   ;;  %s37_s20 = sadd.s32 1, %s4806_s11 }
  0x8b   : > { %s34_s26 = ssub.s32 %s4810_s12, %s5040_s28  ;;  %p44_p13 = scmp.ne.s32.totalorder %s4806_s11, %s4802_s10 }
  0x8c   : > { %p35_p4 = scmp.eq.s32.totalorder %s34_s26, 0  ;;  %p45_p8 = scmp.eq.s32.totalorder %s4810_s12, 0 }
  0x8d   : > { %p5939_p6 = scmp.eq.s32.totalorder %s4906_s13, 1  ;;  %p4282_p3 = scmp.lt.s32.totalorder %s4810_s12, 2 }
  0x8e   : > { %s5056_s14 = scalar_select %p35_p4, %s4806_s11, %s37_s20  }
  0x8f   : > { %p5050_p10 = por %p5939_p6, %p44_p13  ;;  %p46_p5 = por %p45_p8, %p44_p13 }
  0x90   : > { %s5059_s18 = sand.u32 1, %s4806_s11   ;;  %s3844_s19 = sshll.u32 %s4810_s12, 10 }
  0x91   : > { %s3726_s27 = sshll.u32 %s5059_s18, 6  ;;  %s5941_s0 = sld [smem:[#allocation23_spill]] }
  0x92   : > { %s338_s24 = scalar_lea.vmem [#allocation3], %s3726_s27  ;;  %p5070_p11 = pnand %p4282_p3, %p46_p5 }
  0x93   : > { %s346_s16 = sshll.u32 %s338_s24, 4  ;;  %s3730_s26 = sshll.u32 %s5059_s18, 2  ;;  %s5068_s16 = int_to_ptr.vmem [resolvable:$true] %s346_s16 }
  0x94   : > { %s335_s21 = scalar_lea.sflag [#allocation4], %s5059_s18  ;;  %p4670_p9 = pneg %p5070_p11 }
  0x97   : > { %s5066_s2 = scalar_lea.hbm %s5941_s0, %s3844_s19  ;;  %s4673_s25 = scalar_lea.hbm %s5941_s0, 2048 }
  0x98   : > { %s4668_s22 = scalar_lea.hbm %s5066_s2, 1024  ;;  %p4674_p2 = scmp.lt.u32.totalorder %s5066_s2, %s5941_s0 }
  0x99   : > { %p4669_p7 = scmp.ne.s32.totalorder %s5066_s2, %s4668_s22  ;;  %p4675_p1 = scmp.lt.u32.totalorder %s4673_s25, %s4668_s22 }
  0x9a   : > { %p4677_p4 = scmp.lt.u32.totalorder %s4668_s22, %s5066_s2 }
  0x9b   : > { %p4671_p12 = pnand %p4670_p9, %p4669_p7  ;;  %p4676_p13 = por %p4675_p1, %p4674_p2 }
  0x9d   : > { %p4672_p0 = pneg %p4671_p12  ;;  %p4678_p8 = por %p4677_p4, %p4676_p13 }
  0x9f   : > { %p4679_p6 = pnand %p4678_p8, %p4672_p0 }
  0xa1   : > { %4682 = shalt.err (!%p4679_p6)
}
  0xa2   : > { %s4683_s20 = scalar_lea.vmem %s5068_s16, 1024  ;;  %s4822_s27 = smov [#allocation3]  }
  0xa3   : > { %p4684_p3 = scmp.ne.s32.totalorder %s5068_s16, %s4683_s20  ;;  %s4688_s19 = sshll.u32 %s4822_s27, 4  ;;  %s4689_s19 = int_to_ptr.vmem [resolvable:$false] %s4688_s19 }
  0xa4   : > { %s4690_s23 = scalar_lea.vmem %s4689_s19, 2048  ;;  %p4691_p12 = scmp.lt.s32.totalorder %s5068_s16, %s4689_s19 }
  0xa5   : > { %p4686_p5 = pnand %p4684_p3, %p4670_p9  ;;  %p4692_p2 = scmp.lt.s32.totalorder %s4690_s23, %s4683_s20 }
  0xa7   : > { %p4687_p7 = pneg %p4686_p5  ;;  %p4693_p1 = por %p4692_p2, %p4691_p12 }
  0xa9   : > { %p4694_p13 = pnand %p4693_p1, %p4687_p7 }
  0xab   : > { %4697 = shalt.err (!%p4694_p13)
}
  0xac   : > { %s5943_s22 = smov 8   ;;  %s5944_s25 = smov 128  }
  0xad   : > { %4270 = dma.hbm_to_vmem [thread:$0]  (!%p5070_p11), %s5066_s2, 1024, %s5068_s16, %s335_s21, %s5944_s25, %s5944_s25, %s5943_s22  }
  0xae   : > { %s3845_s24 = sshll.u32 %s4810_s12, 6  ;;  %s360_s23 = scalar_lea.vmem [#allocation6], %s3730_s26 }
  0xaf   : > { %s5111_s19 = scalar_lea.hbm %s5903_s1, %s3845_s24  ;;  %s367_s0 = sshll.u32 %s360_s23, 4  ;;  %s5115_s0 = int_to_ptr.vmem [resolvable:$true] %s367_s0 }
  0xb0   : > { %s5945_s4 = sand.u32 1, %s4810_s12   ;;  %s4698_s7 = scalar_lea.hbm %s5111_s19, 64 }
  0xb1   : > { %s5119_s5 = scalar_lea.sflag [#allocation7], %s5945_s4  ;;  %p4699_p0 = scmp.ne.s32.totalorder %s5111_s19, %s4698_s7 }
  0xb2   : > { %s4703_s18 = scalar_lea.hbm %s5903_s1, 128  ;;  %p4704_p6 = scmp.lt.u32.totalorder %s5111_s19, %s5903_s1 }
  0xb3   : > { %p4701_p4 = pnand %p4699_p0, %p4670_p9  ;;  %p4705_p3 = scmp.lt.u32.totalorder %s4703_s18, %s4698_s7 }
  0xb4   : > { %p4707_p7 = scmp.lt.u32.totalorder %s4698_s7, %s5111_s19 }
  0xb5   : > { %p4702_p8 = pneg %p4701_p4  ;;  %p4706_p5 = por %p4705_p3, %p4704_p6 }
  0xb7   : > { %p4708_p12 = por %p4707_p7, %p4706_p5 }
  0xb9   : > { %p4709_p2 = pnand %p4708_p12, %p4702_p8 }
  0xbb   : > { %4712 = shalt.err (!%p4709_p2)
}
  0xbc   : > { %s4713_s4 = scalar_lea.vmem %s5115_s0, 64  ;;  %s4823_s26 = smov [#allocation6]  }
  0xbd   : > { %p4714_p1 = scmp.ne.s32.totalorder %s5115_s0, %s4713_s4  ;;  %s4718_s25 = sshll.u32 %s4823_s26, 4  ;;  %s4719_s25 = int_to_ptr.vmem [resolvable:$false] %s4718_s25 }
  0xbe   : > { %s4720_s24 = scalar_lea.vmem %s4719_s25, 128  ;;  %p4721_p4 = scmp.lt.s32.totalorder %s5115_s0, %s4719_s25 }
  0xbf   : > { %p4716_p13 = pnand %p4714_p1, %p4670_p9  ;;  %p4722_p6 = scmp.lt.s32.totalorder %s4720_s24, %s4713_s4 }
  0xc1   : > { %p4717_p0 = pneg %p4716_p13  ;;  %p4723_p3 = por %p4722_p6, %p4721_p4 }
  0xc3   : > { %p4724_p5 = pnand %p4723_p3, %p4717_p0 }
  0xc5   : > { %4727 = shalt.err (!%p4724_p5)
}
  0xc6   : > { %s4824_s7 = smov 16   ;;  %s4825_s27 = smov 1  }
  0xc7   : > { %4273 = dma.hbm_to_vmem [thread:$0]  (!%p5070_p11), %s5111_s19, 64, %s5115_s0, %s5119_s5, %s4824_s7, %s4824_s7, %s4825_s27  }
  0xc8   : > { %p5946_p9 = scmp.ne.s32.totalorder %s5930_s17, 0 }
  0xc9   : > { %s5148_s20 = sand.u32 (!%p5946_p9), 1, %s4802_s10   ;;  %p5947_p8 = scmp.ne.s32.totalorder (!%p5946_p9), %s5927_s15, 0 }
  0xca   : > { %379 = sbr.rel (%p5946_p9) target bundleno = 3883 (0xf2b), region = 56  ;;  %s3734_s23 = sshll.u32 (!%p5946_p9), %s5148_s20, 6 }
  0xcb   : > { %s382_s21 = scalar_lea.sflag (!%p5946_p9), [#allocation4], %s5148_s20  ;;  %s5154_s2 = scalar_lea.vmem (!%p5946_p9), [#allocation3], %s3734_s23 }
  0xd1   : > { %4773 = dma.done.wait (%p5947_p8), %s382_s21, 1024  }
  0xd2   : > { %4775 = vsyncadd (%p5947_p8), %s382_s21, 4294966272  ;;  %s390_s0 = sand.u32 1, %s4906_s13   ;;  %s3735_s5 = sshll.u32 %s5148_s20, 2 }
  0xd3   : > { %s391_s17 = scalar_lea.sflag [#allocation7], %s390_s0  ;;  %s5162_s30 = scalar_lea.vmem [#allocation6], %s3735_s5 }
  0xd4   : > { %4777 = dma.done.wait (%p5947_p8), %s391_s17, 64  }
  0xd5   : > { %4779 = vsyncadd (%p5947_p8), %s391_s17, 4294967232  ;;  %p5948_p11 = scmp.eq.s32.totalorder %s4906_s13, 0 }
  0xd7   : > { %4781 = dma.done.wait (%p5948_p11), [#allocation7], 3072   ;;  %p5949_p7 = pmov %p5948_p11 }
  0xd9   : > { %4783 = vsyncadd (%p5949_p7), [#allocation7], 4294964224  ;;  %p5950_p12 = pmov %p5949_p7 }
  0xda   : > { %p5951_p2 = pmov %p5949_p7 }
  0xdb   : > { %4785 = dma.done.wait (%p5950_p12), [#allocation10], 3072  }
  0xdc   : > { %4787 = vsyncadd (%p5951_p2), [#allocation10], 4294964224  ;;  %p5952_p1 = pmov %p5951_p2 }
  0xde   : > { %4789 = dma.done.wait (%p5952_p1), [#allocation13], 2048   ;;  %p5953_p13 = pmov %p5952_p1 }
  0xdf   : > { %v4826_v0 = vmov 0   ;;  %v4340_v1 = vld [vmem:[#allocation8 + $0x4] ss:$12 sps:$4 sm:$0xff]   ;;  %v4342_v2 = vld [vmem:[#allocation8] ss:$12 sps:$4 sm:$0xff]   ;;  %v454_v8 = vld [vmem:[%s5154_s2] sm:$0xff]  ;;  %v500_v38 = vlaneseq }
  0xe0   : > { %4791 = vsyncadd (%p5953_p13), [#allocation13], 4294965248  ;;  %675 = vmatprep.mubr.bf16.mxu0 %v4826_v0  ;;  %643 = vmatprep.subr.bf16.mxu0 %v4340_v1  ;;  %v4343_v3 = vld [vmem:[#allocation8 + $0x1c] ss:$12 sps:$4 sm:$0xff]   ;;  %v4345_v4 = vld [vmem:[#allocation8 + $0x18] ss:$12 sps:$4 sm:$0xff]  }
  0xe1   : > { %644 = vmatpush1.bf16.msra.mxu0 %v4342_v2  ;;  %v4346_v5 = vld [vmem:[#allocation8 + $0x34] ss:$12 sps:$4 sm:$0xff]   ;;  %v4348_v6 = vld [vmem:[#allocation8 + $0x30] ss:$12 sps:$4 sm:$0xff]   ;;  %v4349_v7 = vld [vmem:[#allocation8 + $0x4c] ss:$12 sps:$4 sm:$0xff]  }
  0xe2   : > { %645 = vmatprep.subr.bf16.mxu0 %v4343_v3  ;;  %v4351_v9 = vld [vmem:[#allocation8 + $0x48] ss:$12 sps:$4 sm:$0xff]   ;;  %v455_v10 = vld [vmem:[%s5154_s2 + $0x8] sm:$0xff]  ;;  %v4360_v20 = vld [vmem:[#allocation8 + $0x90] ss:$12 sps:$4 sm:$0xff]   ;;  %v4827_v37 = vmov 0.0  }
  0xe3   : > { %v4352_v11 = vld [vmem:[#allocation8 + $0x64] ss:$12 sps:$4 sm:$0xff]   ;;  %v462_v12 = vpack.c.bf16 %v455_v10, %v454_v8  ;;  %v4354_v13 = vld [vmem:[#allocation8 + $0x60] ss:$12 sps:$4 sm:$0xff]   ;;  %v4364_v14 = vld [vmem:[#allocation8 + $0x8] ss:$12 sps:$4 sm:$0xff]  }
  0xe4   : > { %v4365_v15 = vld [vmem:[#allocation8 + $0x20] ss:$12 sps:$4 sm:$0xff]   ;;  %v4355_v16 = vld [vmem:[#allocation8 + $0x7c] ss:$12 sps:$4 sm:$0xff]   ;;  %3976 = vmatprep.subr.bf16.mxu1 %v4364_v14  ;;  %v4366_v17 = vld [vmem:[#allocation8 + $0x38] ss:$12 sps:$4 sm:$0xff]  }
  0xe5   : > { %646 = vmatpush1.bf16.msra.mxu0 %v4345_v4  ;;  %3992 = vmatprep.mubr.bf16.mxu1 %v462_v12  ;;  %v4357_v18 = vld [vmem:[#allocation8 + $0x78] ss:$12 sps:$4 sm:$0xff]   ;;  %v4358_v19 = vld [vmem:[#allocation8 + $0x94] ss:$12 sps:$4 sm:$0xff]   ;;  %v4367_v21 = vld [vmem:[#allocation8 + $0x50] ss:$12 sps:$4 sm:$0xff]  }
  0xe6   : > { %647 = vmatprep.subr.bf16.mxu0 %v4346_v5  ;;  %3977 = vmatpush3.bf16.msra.mxu1 %v4364_v14  ;;  %v4361_v22 = vld [vmem:[#allocation8 + $0xac] ss:$12 sps:$4 sm:$0xff]   ;;  %v4368_v23 = vld [vmem:[#allocation8 + $0x68] ss:$12 sps:$4 sm:$0xff]   ;;  %v4371_v29 = vld [vmem:[#allocation8 + $0xb0] ss:$12 sps:$4 sm:$0xff]  }
  0xe7   : > { %3978 = vmatprep.subr.bf16.mxu1 %v4365_v15  ;;  %v4363_v24 = vld [vmem:[#allocation8 + $0xa8] ss:$12 sps:$4 sm:$0xff]   ;;  %v4369_v25 = vld [vmem:[#allocation8 + $0x80] ss:$12 sps:$4 sm:$0xff]   ;;  %v4370_v26 = vld [vmem:[#allocation8 + $0x98] ss:$12 sps:$4 sm:$0xff]  }
  0xe8   : > { %v456_v27 = vld [vmem:[%s5154_s2 + $0x10] sm:$0xff]  ;;  %v457_v28 = vld [vmem:[%s5154_s2 + $0x18] sm:$0xff]  ;;  %v458_v31 = vld [vmem:[%s5154_s2 + $0x20] sm:$0xff]  ;;  %vm4828_vm0 = vmmov 0   ;;  %v5198_v39 = vshrl.u32 %v500_v38, 7  ;;  %vm805_vm1 = vcmask 261120  }
  0xe9   : > { %648 = vmatpush1.bf16.msra.mxu0 %v4348_v6  ;;  %v463_v30 = vpack.c.bf16 %v457_v28, %v456_v27  ;;  %v459_v32 = vld [vmem:[%s5154_s2 + $0x28] sm:$0xff]  ;;  %v460_v34 = vld [vmem:[%s5154_s2 + $0x30] sm:$0xff]  ;;  %v461_v35 = vld [vmem:[%s5154_s2 + $0x38] sm:$0xff]  ;;  %vm1034_vm2 = vcmask 130048   ;;  %s4829_s18 = smov 96   ;;  %s4830_s16 = smov 64  }
  0xea   : > { %649 = vmatprep.subr.bf16.mxu0 %v4349_v7  ;;  %3979 = vmatpush3.bf16.msra.mxu1 %v4365_v15  ;;  %v464_v33 = vpack.c.bf16 %v459_v32, %v458_v31  ;;  %v465_v36 = vpack.c.bf16 %v461_v35, %v460_v34  ;;  %v5201_v40 = vsub.s32 0, %v5198_v39  ;;  %v498_v41 = vld [vmem:[%s5905_s3] sm:$0x7]  ;;  %v5207_v42 = vsub.s32 1, %v5198_v39  ;;  %s4831_s22 = smov 32   ;;  %s5835_s7 = scalar_lea.vmem [#allocation14], %s3734_s23 }
  0xeb   : > { %3980 = vmatprep.subr.bf16.mxu1 %v4366_v17  ;;  %v510_v55 = vsub.s32 2, %v5198_v39  ;;  %vm1855_vm3 = vcmask 523520   ;;  %vm2396_vm4 = vcmask 785920   ;;  %vm2937_vm5 = vcmask 1048320   ;;  %s3847_s27 = sshll.u32 %s4906_s13, 10  ;;  %s3585_s23 = sshll.u32 %s5835_s7, 4  ;;  %s5856_s23 = int_to_ptr.vmem [resolvable:$true] %s3585_s23 }
  0xec   : > { %v5210_v43 = vrot.slane %v498_v41, %v5201_v40  ;;  %v5213_v45 = vrot.slane %v498_v41, %v5207_v42  ;;  %s5854_s0 = scalar_lea.hbm %s5911_s9, %s3847_s27  ;;  %s3571_s5 = scalar_lea.sflag [#allocation5], %s5148_s20 }
  0xed   : > { %650 = vmatpush1.bf16.msra.mxu0 %v4351_v9  ;;  %v511_v63 = vrot.slane %v498_v41, %v510_v55  ;;  %s4728_s17 = scalar_lea.vmem %s5856_s23, 1024  ;;  %s4832_s13 = smov [#allocation14]  }
  0xee   : > { %651 = vmatprep.subr.bf16.mxu0 %v4352_v11  ;;  %3981 = vmatpush3.bf16.msra.mxu1 %v4366_v17  ;;  %p4729_p0 = scmp.ne.s32.totalorder %s5856_s23, %s4728_s17 }
  0xef   : > { %3982 = vmatprep.subr.bf16.mxu1 %v4367_v21 }
  0xf0   : > { %p4730_p4 = pnand %p4729_p0, %p5050_p10 }
  0xf1   : > { %652 = vmatpush1.bf16.msra.mxu0 %v4354_v13 }
  0xf2   : > { %653 = vmatprep.subr.bf16.mxu0 %v4355_v16  ;;  %3983 = vmatpush3.bf16.msra.mxu1 %v4367_v21  ;;  %p4731_p6 = pneg %p4730_p4 }
  0xf3   : > { %3984 = vmatprep.subr.bf16.mxu1 %v4368_v23 }
  0xf5   : > { %654 = vmatpush1.bf16.msra.mxu0 %v4357_v18 }
  0xf6   : > { %655 = vmatprep.subr.bf16.mxu0 %v4358_v19  ;;  %3985 = vmatpush3.bf16.msra.mxu1 %v4368_v23 }
  0xf7   : > { %3986 = vmatprep.subr.bf16.mxu1 %v4369_v25 }
  0xf9   : > { %656 = vmatpush1.bf16.msra.mxu0 %v4360_v20 }
  0xfa   : > { %657 = vmatprep.subr.bf16.mxu0 %v4361_v22  ;;  %3987 = vmatpush3.bf16.msra.mxu1 %v4369_v25 }
  0xfb   : > { %3988 = vmatprep.subr.bf16.mxu1 %v4370_v26 }
  0xfd   : > { %658 = vmatpush1.bf16.msra.mxu0 %v4363_v24 }
  0xfe   : > { %3989 = vmatpush3.bf16.msra.mxu1 %v4370_v26  ;;  %4012 = vmatprep.subr.bf16.mxu0 %v4827_v37 }
  0xff   : > { %3990 = vmatprep.subr.bf16.mxu1 %v4371_v29 }
 0x100   : > { %676 = vmatmul.mubr.bf16.vlgmr.msra.gmra.mrb[0].mxu0 %v462_v12 }
 0x101   : > { %685 = vmatprep.mubr.bf16.mxu0 %v4826_v0 }
 0x102   : > { %3991 = vmatpush3.bf16.msra.mxu1 %v4371_v29 }
 0x103   : > { %4000 = vmatprep.subr.bf16.mxu1 %v4827_v37 }
 0x105   : > { %3993 = vmatmul.mubr.bf16.vlgmr.msra.gmra.mrb[0].mxu1 %v463_v30 }
 0x106   : > { %3996 = vmatprep.mubr.bf16.mxu1 %v464_v33 }
 0x108   : > { %686 = vmatmul.mubr.bf16.gmra.mrb[4].mxu0 %v463_v30 }
 0x109   : > { %695 = vmatprep.mubr.bf16.mxu0 %v4826_v0 }
 0x10d   : > { %3997 = vmatmul.mubr.bf16.gmra.mrb[4].mxu1 %v465_v36 }
 0x10e   : > { %4002 = vmatprep.mubr.msk.bf16.mxu1 %vm4828_vm0, %v4827_v37 }
 0x110   : > { %696 = vmatmul.mubr.bf16.gmra.mrb[8].mxu0 %v464_v33 }
 0x111   : > { %705 = vmatprep.mubr.bf16.mxu0 %v4826_v0 }
 0x118   : > { %706 = vmatmul.mubr.bf16.gmra.mrb[12].mxu0 %v465_v36 }
 0x119   : > { %4014 = vmatprep.mubr.msk.bf16.mxu0 %vm4828_vm0, %v4827_v37 }
 0x1d3   : > { %v677_v44 = vpop.f32.mrb[0].mxu0 }
 0x1d4   : > { %v679_v46 = vpop.f32.mrb[1].mxu0  ;;  %v678_v48 = vadd.f32 %v677_v44, %v5210_v43 }
 0x1d5   : > { %v681_v47 = vpop.f32.mrb[2].mxu0  ;;  %v680_v51 = vadd.f32 %v679_v46, %v5213_v45 }
 0x1d6   : > { %v682_v49 = vadd.f32 %v681_v47, %v5210_v43  ;;  %v683_v50 = vpop.f32.mrb[3].mxu0 }
 0x1d7   : > { %v684_v52 = vadd.f32 %v683_v50, %v5213_v45 }
 0x1d8   : > { %v5219_v53 = vpack.c.bf16 %v682_v49, %v678_v48  ;;  %v3994_v5 = vpop.f32.mrb[0].mxu1 }
 0x1d9   : > { %v5221_v54 = vpack.c.bf16 %v684_v52, %v680_v51  ;;  %v759_v6 = vadd.f32 %v3994_v5, %v511_v63  ;;  %v750_v7 = vpop.f32.mrb[1].mxu1 }
 0x1da   : > { %v751_v10 = vadd.f32 %v750_v7, %v511_v63  ;;  %v3995_v11 = vpop.f32.mrb[2].mxu1 }
 0x1db   : > { %v687_v56 = vpop.f32.mrb[4].mxu0  ;;  %v810_v57 = vsel %vm805_vm1, %v5221_v54, 0  ;;  %v762_v13 = vadd.f32 %v3995_v11, %v511_v63  ;;  %v753_v14 = vpop.f32.mrb[3].mxu1 }
 0x1dc   : > { %v689_v58 = vpop.f32.mrb[5].mxu0  ;;  %4001 = vmatpush3.bf16.xpose.msra.mxu1 %v810_v57  ;;  %v688_v60 = vadd.f32 %v687_v56, %v5210_v43  ;;  %v754_v16 = vadd.f32 %v753_v14, %v511_v63 }
 0x1dd   : > { %v691_v59 = vpop.f32.mrb[6].mxu0  ;;  %4006 = vmatprep.subr.bf16.mxu1 %v4827_v37  ;;  %v690_v1 = vadd.f32 %v689_v58, %v5213_v45  ;;  %v5246_v20 = vpack.c.bf16 %v762_v13, %v759_v6  ;;  %v794_v58 = vld [vmem:[%s5162_s30 + $0x1] sm:$0x1] }
 0x1de   : > { %v692_v61 = vadd.f32 %v691_v59, %v5210_v43  ;;  %v693_v62 = vpop.f32.mrb[7].mxu0  ;;  %v5250_v23 = vpack.c.bf16 %v754_v16, %v751_v10 }
 0x1df   : > { %v694_v2 = vadd.f32 %v693_v62, %v5213_v45 }
 0x1e0   : > { %v5233_v3 = vpack.c.bf16 %v692_v61, %v688_v60  ;;  %v3998_v26 = vpop.f32.mrb[4].mxu1  ;;  %v798_v60 = vsub.f32 1.0, %v794_v58 }
 0x1e1   : > { %v5235_v4 = vpack.c.bf16 %v694_v2, %v690_v1  ;;  %v775_v27 = vadd.f32 %v3998_v26, %v511_v63  ;;  %v766_v28 = vpop.f32.mrb[5].mxu1  ;;  %v796_v26 = vld [vmem:[%s5162_s30 + $0x3] sm:$0x1] }
 0x1e2   : > { %v767_v31 = vadd.f32 %v766_v28, %v511_v63  ;;  %v3999_v32 = vpop.f32.mrb[6].mxu1  ;;  %v802_v7 = vmul.f32 -1e+09, %v798_v60 }
 0x1e3   : > { %v697_v8 = vpop.f32.mrb[8].mxu0  ;;  %4003 = vmatmul.mubr.msk.bf16.vlgmr.msra.gmra.mrb[8].mxu1 %vm805_vm1, %v5219_v53  ;;  %v857_v9 = vsel %vm805_vm1, %v5235_v4, 0  ;;  %v778_v35 = vadd.f32 %v3999_v32, %v511_v63  ;;  %v769_v36 = vpop.f32.mrb[7].mxu1 }
 0x1e4   : > { %v699_v12 = vpop.f32.mrb[9].mxu0  ;;  %4007 = vmatpush3.bf16.xpose.msra.mxu1 %v857_v9  ;;  %4008 = vmatprep.mubr.msk.bf16.mxu1 %vm4828_vm0, %v4827_v37  ;;  %v698_v17 = vadd.f32 %v697_v8, %v5210_v43  ;;  %v770_v44 = vadd.f32 %v769_v36, %v511_v63  ;;  %v795_v8 = vld [vmem:[%s5162_s30 + $0x2] sm:$0x1]  ;;  %v5300_v11 = vrot.slane %v802_v7, %v5201_v40 }
 0x1e5   : > { %v701_v15 = vpop.f32.mrb[10].mxu0  ;;  %4018 = vmatprep.subr.bf16.mxu1 %v4827_v37  ;;  %v700_v21 = vadd.f32 %v699_v12, %v5213_v45  ;;  %v5266_v48 = vpack.c.bf16 %v778_v35, %v775_v27  ;;  %v799_v12 = vsub.f32 1.0, %v795_v8 }
 0x1e6   : > { %v702_v18 = vadd.f32 %v701_v15, %v5210_v43  ;;  %v703_v19 = vpop.f32.mrb[11].mxu0  ;;  %v5269_v50 = vpack.c.bf16 %v770_v44, %v767_v31 }
 0x1e7   : > { %v704_v22 = vadd.f32 %v703_v19, %v5213_v45 }
 0x1e8   : > { %v5252_v24 = vpack.c.bf16 %v702_v18, %v698_v17 }
 0x1e9   : > { %v5254_v25 = vpack.c.bf16 %v704_v22, %v700_v21  ;;  %v803_v22 = vmul.f32 -1e+09, %v799_v12 }
 0x1eb   : > { %v707_v29 = vpop.f32.mrb[12].mxu0  ;;  %4009 = vmatmul.mubr.msk.bf16.vlgmr.msra.gmra.mrb[12].mxu1 %vm805_vm1, %v5233_v3  ;;  %v904_v30 = vsel %vm805_vm1, %v5254_v25, 0 }
 0x1ec   : > { %v708_v33 = vadd.f32 %v707_v29, %v5210_v43  ;;  %v709_v34 = vpop.f32.mrb[13].mxu0  ;;  %4013 = vmatpush3.bf16.xpose.msra.mxu0 %v904_v30  ;;  %4020 = vmatprep.mubr.msk.bf16.mxu1 %vm4828_vm0, %v4827_v37  ;;  %v5308_v29 = vrot.slane %v803_v22, %v5201_v40  ;;  %v800_v30 = vsub.f32 1.0, %v796_v26 }
 0x1ed   : > { %v710_v38 = vadd.f32 %v709_v34, %v5213_v45  ;;  %v711_v41 = vpop.f32.mrb[14].mxu0  ;;  %4024 = vmatprep.subr.bf16.mxu0 %v4827_v37 }
 0x1ee   : > { %v712_v46 = vadd.f32 %v711_v41, %v5210_v43  ;;  %v713_v47 = vpop.f32.mrb[15].mxu0  ;;  %v793_v43 = vld [vmem:[%s5162_s30] sm:$0x1]  ;;  %v804_v44 = vmul.f32 -1e+09, %v800_v30  ;;  %s4732_s30 = sshll.u32 %s4832_s13, 4  ;;  %s4733_s30 = int_to_ptr.vmem [resolvable:$false] %s4732_s30 }
 0x1ef   : > { %v714_v49 = vadd.f32 %v713_v47, %v5213_v45  ;;  %v797_v45 = vsub.f32 1.0, %v793_v43  ;;  %s4734_s15 = scalar_lea.vmem %s4733_s30, 2048  ;;  %p4735_p3 = scmp.lt.s32.totalorder %s5856_s23, %s4733_s30 }
 0x1f0   : > { %v5271_v51 = vpack.c.bf16 %v712_v46, %v708_v33  ;;  %p4736_p5 = scmp.lt.s32.totalorder %s4734_s15, %s4728_s17 }
 0x1f1   : > { %v5273_v52 = vpack.c.bf16 %v714_v49, %v710_v38  ;;  %v801_v57 = vmul.f32 -1e+09, %v797_v45 }
 0x1f2   : > { %p4737_p9 = por %p4736_p5, %p4735_p3 }
 0x1f3   : > { %4015 = vmatmul.mubr.msk.bf16.vlgmr.msra.gmra.mrb[16].mxu0 %vm805_vm1, %v5252_v24  ;;  %v951_v56 = vsel %vm805_vm1, %v5273_v52, 0  ;;  %v5293_v59 = vrot.slane %v801_v57, %v5201_v40 }
 0x1f4   : > { %4019 = vmatpush3.bf16.xpose.msra.mxu1 %v951_v56  ;;  %4025 = vmatpush3.bf16.msra.mxu0 %v5250_v23  ;;  %v5316_v56 = vrot.slane %v804_v44, %v5201_v40  ;;  %p4738_p8 = pnand %p4737_p9, %p4731_p6 }
 0x1f5   : > { %4030 = vmatprep.subr.bf16.mxu1 %v4827_v37  ;;  %4026 = vmatprep.mubr.msk.bf16.mxu0 %vm4828_vm0, %v4827_v37 }
 0x1f6   : > { %4036 = vmatprep.subr.bf16.mxu0 %v4827_v37 }
 0x1fb   : > { %4021 = vmatmul.mubr.msk.bf16.vlgmr.msra.gmra.mrb[16].mxu1 %vm805_vm1, %v5271_v51 }
 0x1fc   : > { %4031 = vmatpush3.bf16.msra.mxu1 %v5246_v20  ;;  %4032 = vmatprep.mubr.msk.bf16.mxu1 %vm4828_vm0, %v4827_v37 }
 0x1fd   : > { %4042 = vmatprep.subr.bf16.mxu1 %v4827_v37 }
 0x2b6   : > { %v846_v61 = vpop.f32.mrb[8].mxu1 }
 0x2b7   : > { %v994_v62 = vmul.f32 0.17677669, %v846_v61  ;;  %v4004_v63 = vpop.f32.mrb[9].mxu1 }
 0x2b8   : > { %v849_v1 = vpop.f32.mrb[10].mxu1 }
 0x2b9   : > { %v995_v2 = vmul.f32 0.17677669, %v849_v1  ;;  %v4005_v5 = vpop.f32.mrb[11].mxu1  ;;  %v1026_v6 = vadd.f32 %v5293_v59, %v994_v62 }
 0x2bb   : > { %v1035_v9 = vsel %vm1034_vm2, %v1026_v6, -inf  ;;  %v1027_v10 = vadd.f32 %v5293_v59, %v995_v2 }
 0x2bc   : > { %1036 = vmax.xlane.f32.xlu0 %v1035_v9 }
 0x2bd   : > { %v1038_v16 = vsel %vm1034_vm2, %v1027_v10, -inf }
 0x2be   : > { %v893_v13 = vpop.f32.mrb[12].mxu1 }
 0x2bf   : > { %v996_v14 = vmul.f32 0.17677669, %v893_v13  ;;  %v4010_v15 = vpop.f32.mrb[13].mxu1 }
 0x2c0   : > { %1039 = vmax.xlane.f32.xlu0 %v1038_v16  ;;  %v896_v17 = vpop.f32.mrb[14].mxu1 }
 0x2c1   : > { %v997_v18 = vmul.f32 0.17677669, %v896_v17  ;;  %v4011_v19 = vpop.f32.mrb[15].mxu1  ;;  %v1028_v21 = vadd.f32 %v5300_v11, %v996_v14 }
 0x2c3   : > { %v1041_v27 = vsel %vm1034_vm2, %v1028_v21, -inf  ;;  %v1029_v28 = vadd.f32 %v5300_v11, %v997_v18 }
 0x2c4   : > { %1042 = vmax.xlane.f32.xlu1 %v1041_v27 }
 0x2c5   : > { %v1044_v34 = vsel %vm1034_vm2, %v1029_v28, -inf }
 0x2c6   : > { %v940_v31 = vpop.f32.mrb[16].mxu0 }
 0x2c7   : > { %v998_v32 = vmul.f32 0.17677669, %v940_v31  ;;  %v4016_v33 = vpop.f32.mrb[17].mxu0 }
 0x2c8   : > { %v943_v35 = vpop.f32.mrb[18].mxu0  ;;  %1045 = vmax.xlane.f32.xlu1 %v1044_v34 }
 0x2c9   : > { %v999_v36 = vmul.f32 0.17677669, %v943_v35  ;;  %v4017_v38 = vpop.f32.mrb[19].mxu0  ;;  %v1030_v41 = vadd.f32 %v5308_v29, %v998_v32 }
 0x2cb   : > { %v1047_v46 = vsel %vm1034_vm2, %v1030_v41, -inf  ;;  %v1031_v47 = vadd.f32 %v5308_v29, %v999_v36 }
 0x2cc   : > { %1048 = vmax.xlane.f32.xlu0 %v1047_v46 }
 0x2cd   : > { %v1050_v49 = vsel %vm1034_vm2, %v1031_v47, -inf }
 0x2ce   : > { %1051 = vmax.xlane.f32.xlu1 %v1050_v49  ;;  %v987_v43 = vpop.f32.mrb[16].mxu1 }
 0x2cf   : > { %v1000_v45 = vmul.f32 0.17677669, %v987_v43  ;;  %v4022_v57 = vpop.f32.mrb[17].mxu1 }
 0x2d0   : > { %v990_v58 = vpop.f32.mrb[18].mxu1 }
 0x2d1   : > { %v1001_v60 = vmul.f32 0.17677669, %v990_v58  ;;  %v1032_v61 = vadd.f32 %v5316_v56, %v1000_v45  ;;  %v4023_v62 = vpop.f32.mrb[19].mxu1 }
 0x2d3   : > { %v1053_v63 = vsel %vm1034_vm2, %v1032_v61, -inf  ;;  %v1033_v1 = vadd.f32 %v5316_v56, %v1001_v60 }
 0x2d4   : > { %1054 = vmax.xlane.f32.xlu0 %v1053_v63 }
 0x2d5   : > { %v1056_v2 = vsel %vm1034_vm2, %v1033_v1, -inf }
 0x2d6   : > { %1057 = vmax.xlane.f32.xlu1 %v1056_v2 }
 0x349   : > { %v1037_v5 = vpop.xlane.xlu0 %1036 }
 0x34a   : > { %v1059_v7 = vsub.f32 %v1026_v6, %v1037_v5 }
 0x34c   : > { %v1067_v8 = vmul.f32 1.442695, %v1059_v7 }
 0x34d   : > { %v1040_v9 = vpop.xlane.xlu0 %1039 }
 0x34e   : > { %4420 = vpow2.f32 %v1067_v8  ;;  %v1060_v12 = vsub.f32 %v1027_v10, %v1040_v9 }
 0x350   : > { %v1069_v13 = vmul.f32 1.442695, %v1060_v12 }
 0x351   : > { %v1043_v14 = vpop.xlane.xlu1 %1042 }
 0x352   : > { %4422 = vpow2.f32 %v1069_v13  ;;  %v1061_v15 = vsub.f32 %v1028_v21, %v1043_v14 }
 0x354   : > { %v1071_v16 = vmul.f32 1.442695, %v1061_v15 }
 0x355   : > { %v1046_v17 = vpop.xlane.xlu1 %1045 }
 0x356   : > { %4424 = vpow2.f32 %v1071_v16  ;;  %v1062_v18 = vsub.f32 %v1029_v28, %v1046_v17 }
 0x358   : > { %v4421_v19 = vpop.eup %4420  ;;  %v1073_v22 = vmul.f32 1.442695, %v1062_v18 }
 0x359   : > { %v1049_v26 = vpop.xlane.xlu0 %1048  ;;  %v1083_v27 = vsel %vm1034_vm2, %v4421_v19, 0.0 }
 0x35a   : > { %4426 = vpow2.f32 %v1073_v22  ;;  %v1063_v30 = vsub.f32 %v1030_v41, %v1049_v26  ;;  %1084 = vadd.xlane.f32.xlu0 %v1083_v27 }
 0x35b   : > { %v1052_v6 = vpop.xlane.xlu1 %1051 }
 0x35c   : > { %v4423_v31 = vpop.eup %4422  ;;  %v1075_v32 = vmul.f32 1.442695, %v1063_v30  ;;  %v1064_v10 = vsub.f32 %v1031_v47, %v1052_v6 }
 0x35d   : > { %v1086_v33 = vsel %vm1034_vm2, %v4423_v31, 0.0 }
 0x35e   : > { %4428 = vpow2.f32 %v1075_v32  ;;  %v1077_v21 = vmul.f32 1.442695, %v1064_v10  ;;  %1087 = vadd.xlane.f32.xlu1 %v1086_v33 }
 0x360   : > { %v4425_v34 = vpop.eup %4424  ;;  %4430 = vpow2.f32 %v1077_v21 }
 0x361   : > { %v1055_v28 = vpop.xlane.xlu0 %1054  ;;  %v1089_v35 = vsel %vm1034_vm2, %v4425_v34, 0.0 }
 0x362   : > { %v1065_v36 = vsub.f32 %v1032_v61, %v1055_v28  ;;  %1090 = vadd.xlane.f32.xlu0 %v1089_v35 }
 0x363   : > { %v1058_v58 = vpop.xlane.xlu1 %1057 }
 0x364   : > { %v4427_v38 = vpop.eup %4426  ;;  %v1079_v44 = vmul.f32 1.442695, %v1065_v36  ;;  %v1066_v60 = vsub.f32 %v1033_v1, %v1058_v58 }
 0x365   : > { %v1092_v41 = vsel %vm1034_vm2, %v4427_v38, 0.0 }
 0x366   : > { %4432 = vpow2.f32 %v1079_v44  ;;  %1093 = vadd.xlane.f32.xlu1 %v1092_v41  ;;  %v1081_v61 = vmul.f32 1.442695, %v1066_v60 }
 0x368   : > { %v4429_v46 = vpop.eup %4428  ;;  %4434 = vpow2.f32 %v1081_v61 }
 0x369   : > { %v1095_v47 = vsel %vm1034_vm2, %v4429_v46, 0.0 }
 0x36a   : > { %v4431_v49 = vpop.eup %4430  ;;  %1096 = vadd.xlane.f32.xlu0 %v1095_v47 }
 0x36b   : > { %v1098_v43 = vsel %vm1034_vm2, %v4431_v49, 0.0 }
 0x36c   : > { %1099 = vadd.xlane.f32.xlu1 %v1098_v43 }
 0x370   : > { %v5328_v45 = vpop.eup %4432 }
 0x371   : > { %v1101_v57 = vsel %vm1034_vm2, %v5328_v45, 0.0 }
 0x372   : > { %1102 = vadd.xlane.f32.xlu0 %v1101_v57  ;;  %v5342_v62 = vpop.eup %4434 }
 0x373   : > { %v1104_v63 = vsel %vm1034_vm2, %v5342_v62, 0.0 }
 0x37d   : > { %1368 = vrot.lane.b32.xlu1 %v5235_v4, %s4829_s18 }
 0x381   : > { %1312 = vrot.lane.b32.xlu1 %v5219_v53, %s4829_s18 }
 0x388   : > { %1315 = vrot.lane.b32.xlu0 %v5221_v54, %s4829_s18 }
 0x38c   : > { %1365 = vrot.lane.b32.xlu0 %v5233_v3, %s4829_s18 }
 0x390   : > { %1418 = vrot.lane.b32.xlu0 %v5252_v24, %s4829_s18 }
 0x3a5   : > { %1105 = vadd.xlane.f32.xlu1 %v1104_v63 }
 0x3b6   : > { %1421 = vrot.lane.b32.xlu1 %v5254_v25, %s4829_s18 }
 0x3ba   : > { %1474 = vrot.lane.b32.xlu1 %v5273_v52, %s4829_s18 }
 0x3be   : > { %1471 = vrot.lane.b32.xlu1 %v5271_v51, %s4829_s18 }
 0x3e7   : > { %v1085_v1 = vpop.xlane.xlu0 %1084 }
 0x3e8   : > { %4436 = vrcp.f32 %v1085_v1 }
 0x3eb   : > { %v1088_v2 = vpop.xlane.xlu1 %1087 }
 0x3ec   : > { %4438 = vrcp.f32 %v1088_v2 }
 0x3ef   : > { %v1091_v5 = vpop.xlane.xlu0 %1090 }
 0x3f0   : > { %4440 = vrcp.f32 %v1091_v5 }
 0x3f2   : > { %v4437_v8 = vpop.eup %4436 }
 0x3f3   : > { %v1094_v7 = vpop.xlane.xlu1 %1093  ;;  %v1115_v12 = vmul.f32 %v4437_v8, %v4421_v19 }
 0x3f4   : > { %4442 = vrcp.f32 %v1094_v7 }
 0x3f6   : > { %v4439_v9 = vpop.eup %4438 }
 0x3f7   : > { %v1116_v13 = vmul.f32 %v4439_v9, %v4423_v31  ;;  %v1097_v14 = vpop.xlane.xlu0 %1096 }
 0x3f8   : > { %4444 = vrcp.f32 %v1097_v14 }
 0x3f9   : > { %v1100_v15 = vpop.xlane.xlu1 %1099  ;;  %v1123_v16 = vpack.c.bf16 %v1116_v13, %v1115_v12 }
 0x3fa   : > { %4446 = vrcp.f32 %v1100_v15  ;;  %v4441_v17 = vpop.eup %4440 }
 0x3fb   : > { %4027 = vmatmul.mubr.msk.bf16.vlgmr.msra.gmra.mrb[20].mxu0 %vm1034_vm2, %v1123_v16  ;;  %v1117_v22 = vmul.f32 %v4441_v17, %v4425_v34 }
 0x3fc   : > { %4037 = vmatpush3.bf16.msra.mxu0 %v5269_v50  ;;  %4038 = vmatprep.mubr.msk.bf16.mxu0 %vm4828_vm0, %v4827_v37 }
 0x3fd   : > { %4048 = vmatprep.subr.bf16.mxu0 %v4827_v37  ;;  %v1369_v34 = vpop.permute.xlu1 %1368 }
 0x3fe   : > { %v4443_v18 = vpop.eup %4442  ;;  %v1374_v58 = vsel %vm805_vm1, %v1369_v34, 0 }
 0x3ff   : > { %v1118_v26 = vmul.f32 %v4443_v18, %v4427_v38  ;;  %v1103_v19 = vpop.xlane.xlu0 %1102 }
 0x400   : > { %4448 = vrcp.f32 %v1103_v19 }
 0x401   : > { %v1124_v27 = vpack.c.bf16 %v1118_v26, %v1117_v22  ;;  %v1313_v28 = vpop.permute.xlu1 %1312 }
 0x402   : > { %v4445_v30 = vpop.eup %4444 }
 0x403   : > { %4033 = vmatmul.mubr.msk.bf16.vlgmr.msra.gmra.mrb[20].mxu1 %vm1034_vm2, %v1124_v27  ;;  %v1119_v31 = vmul.f32 %v4445_v30, %v4429_v46  ;;  %v1316_v10 = vpop.permute.xlu0 %1315 }
 0x404   : > { %v4447_v6 = vpop.eup %4446  ;;  %4043 = vmatpush3.bf16.msra.mxu1 %v5266_v48  ;;  %4044 = vmatprep.mubr.msk.bf16.mxu1 %vm4828_vm0, %v4827_v37  ;;  %v1321_v21 = vsel %vm805_vm1, %v1316_v10, 0 }
 0x405   : > { %v1120_v32 = vmul.f32 %v4447_v6, %v4431_v49  ;;  %4054 = vmatprep.subr.bf16.mxu1 %v4827_v37 }
 0x407   : > { %v1125_v33 = vpack.c.bf16 %v1120_v32, %v1119_v31  ;;  %v1366_v44 = vpop.permute.xlu0 %1365 }
 0x409   : > { %4039 = vmatmul.mubr.msk.bf16.vlgmr.msra.gmra.mrb[24].mxu0 %vm1034_vm2, %v1125_v33 }
 0x40a   : > { %4049 = vmatpush3.bf16.xpose.msra.mxu0 %v1321_v21  ;;  %4050 = vmatprep.mubr.msk.bf16.mxu0 %vm4828_vm0, %v4827_v37  ;;  %v4449_v41 = vpop.eup %4448 }
 0x40b   : > { %4060 = vmatprep.subr.bf16.mxu0 %v4827_v37  ;;  %v1121_v47 = vmul.f32 %v4449_v41, %v5328_v45  ;;  %v1419_v49 = vpop.permute.xlu0 %1418 }
 0x411   : > { %4051 = vmatmul.mubr.msk.bf16.vlgmr.msra.gmra.mrb[28].mxu0 %vm805_vm1, %v1313_v28 }
 0x412   : > { %4062 = vmatprep.mubr.msk.bf16.mxu0 %vm4828_vm0, %v4827_v37 }
 0x432   : > { %v1106_v35 = vpop.xlane.xlu1 %1105 }
 0x433   : > { %4450 = vrcp.f32 %v1106_v35 }
 0x436   : > { %v1422_v36 = vpop.permute.xlu1 %1421 }
 0x437   : > { %v1427_v38 = vsel %vm805_vm1, %v1422_v36, 0 }
 0x438   : > { %4061 = vmatpush3.bf16.xpose.msra.mxu0 %v1427_v38 }
 0x439   : > { %4072 = vmatprep.subr.bf16.mxu0 %v4827_v37 }
 0x43a   : > { %v1475_v45 = vpop.permute.xlu1 %1474 }
 0x43b   : > { %v1480_v60 = vsel %vm805_vm1, %v1475_v45, 0 }
 0x43d   : > { %v4451_v46 = vpop.eup %4450 }
 0x43e   : > { %v1122_v43 = vmul.f32 %v4451_v46, %v5342_v62  ;;  %v1472_v61 = vpop.permute.xlu1 %1471 }
 0x43f   : > { %4063 = vmatmul.mubr.msk.bf16.vlgmr.msra.gmra.mrb[32].mxu0 %vm805_vm1, %v1419_v49 }
 0x440   : > { %v1126_v57 = vpack.c.bf16 %v1122_v43, %v1121_v47  ;;  %4074 = vmatprep.mubr.msk.bf16.mxu0 %vm4828_vm0, %v4827_v37 }
 0x442   : > { %4045 = vmatmul.mubr.msk.bf16.vlgmr.msra.gmra.mrb[24].mxu1 %vm1034_vm2, %v1126_v57 }
 0x443   : > { %4055 = vmatpush3.bf16.xpose.msra.mxu1 %v1374_v58  ;;  %4056 = vmatprep.mubr.msk.bf16.mxu1 %vm4828_vm0, %v4827_v37 }
 0x444   : > { %4066 = vmatprep.subr.bf16.mxu1 %v4827_v37 }
 0x44a   : > { %4057 = vmatmul.mubr.msk.bf16.vlgmr.msra.gmra.mrb[28].mxu1 %vm805_vm1, %v1366_v44 }
 0x44b   : > { %4067 = vmatpush3.bf16.xpose.msra.mxu1 %v1480_v60  ;;  %4068 = vmatprep.mubr.msk.bf16.mxu1 %vm4828_vm0, %v4827_v37 }
 0x44c   : > { %4078 = vmatprep.subr.bf16.mxu1 %v4827_v37 }
 0x452   : > { %4069 = vmatmul.mubr.msk.bf16.vlgmr.msra.gmra.mrb[32].mxu1 %vm805_vm1, %v1472_v61 }
 0x453   : > { %4080 = vmatprep.mubr.msk.bf16.mxu1 %vm4828_vm0, %v4827_v37 }
 0x4ce   : > { %v1164_v62 = vpop.f32.mrb[20].mxu0 }
 0x4cf   : > { %1303 = vst.msk [vmem:[#allocation2] sm:$0xff] %vm805_vm1, %v1164_v62  ;;  %v4028_v63 = vpop.f32.mrb[21].mxu0 }
 0x4d0   : > { %v1167_v1 = vpop.f32.mrb[22].mxu0 }
 0x4d1   : > { %1304 = vst.msk [vmem:[#allocation2 + $0x8] sm:$0xff] %vm805_vm1, %v1167_v1  ;;  %v4029_v2 = vpop.f32.mrb[23].mxu0 }
 0x4d6   : > { %v1208_v5 = vpop.f32.mrb[20].mxu1 }
 0x4d7   : > { %1305 = vst.msk [vmem:[#allocation2 + $0x10] sm:$0xff] %vm805_vm1, %v1208_v5  ;;  %v4034_v7 = vpop.f32.mrb[21].mxu1 }
 0x4d8   : > { %v1211_v8 = vpop.f32.mrb[22].mxu1 }
 0x4d9   : > { %1306 = vst.msk [vmem:[#allocation2 + $0x18] sm:$0xff] %vm805_vm1, %v1211_v8  ;;  %v4035_v9 = vpop.f32.mrb[23].mxu1 }
 0x4dc   : > { %v1252_v12 = vpop.f32.mrb[24].mxu0 }
 0x4dd   : > { %1307 = vst.msk [vmem:[#allocation2 + $0x20] sm:$0xff] %vm805_vm1, %v1252_v12  ;;  %v4040_v13 = vpop.f32.mrb[25].mxu0 }
 0x4de   : > { %v1255_v14 = vpop.f32.mrb[26].mxu0 }
 0x4df   : > { %1308 = vst.msk [vmem:[#allocation2 + $0x28] sm:$0xff] %vm805_vm1, %v1255_v14  ;;  %v4041_v15 = vpop.f32.mrb[27].mxu0 }
 0x4e4   : > { %v1357_v16 = vpop.f32.mrb[28].mxu0 }
 0x4e5   : > { %v1523_v17 = vmul.f32 0.17677669, %v1357_v16  ;;  %v4052_v18 = vpop.f32.mrb[29].mxu0 }
 0x4e6   : > { %v1360_v22 = vpop.f32.mrb[30].mxu0 }
 0x4e7   : > { %v1524_v26 = vmul.f32 0.17677669, %v1360_v22  ;;  %v4053_v19 = vpop.f32.mrb[31].mxu0  ;;  %v1531_v27 = vadd.f32 %v1523_v17, %v5293_v59 }
 0x4e9   : > { %v1539_v30 = vsel %vm1034_vm2, %v1531_v27, -inf  ;;  %v1532_v6 = vadd.f32 %v1524_v26, %v5293_v59 }
 0x4ea   : > { %1540 = vmax.xlane.f32.xlu0 %v1539_v30 }
 0x4eb   : > { %v1542_v31 = vsel %vm1034_vm2, %v1532_v6, -inf }
 0x4ec   : > { %1543 = vmax.xlane.f32.xlu1 %v1542_v31 }
 0x512   : > { %v1463_v32 = vpop.f32.mrb[32].mxu0 }
 0x513   : > { %v4064_v10 = vpop.f32.mrb[33].mxu0  ;;  %v1527_v60 = vmul.f32 0.17677669, %v1463_v32 }
 0x514   : > { %v1466_v33 = vpop.f32.mrb[34].mxu0 }
 0x515   : > { %v1528_v21 = vmul.f32 0.17677669, %v1466_v33  ;;  %v1296_v34 = vpop.f32.mrb[24].mxu1  ;;  %v4065_v28 = vpop.f32.mrb[35].mxu0  ;;  %v1535_v7 = vadd.f32 %v1527_v60, %v5308_v29 }
 0x516   : > { %1309 = vst.msk [vmem:[#allocation2 + $0x30] sm:$0xff] %vm805_vm1, %v1296_v34  ;;  %v4046_v35 = vpop.f32.mrb[25].mxu1 }
 0x517   : > { %v1299_v36 = vpop.f32.mrb[26].mxu1  ;;  %v1536_v38 = vadd.f32 %v1528_v21, %v5308_v29  ;;  %v1551_v12 = vsel %vm1034_vm2, %v1535_v7, -inf }
 0x518   : > { %1310 = vst.msk [vmem:[#allocation2 + $0x38] sm:$0xff] %vm805_vm1, %v1299_v36  ;;  %v4047_v44 = vpop.f32.mrb[27].mxu1 }
 0x519   : > { %v1554_v41 = vsel %vm1034_vm2, %v1536_v38, -inf }
 0x51a   : > { %1555 = vmax.xlane.f32.xlu1 %v1554_v41 }
 0x51d   : > { %v1410_v46 = vpop.f32.mrb[28].mxu1 }
 0x51e   : > { %v1525_v47 = vmul.f32 0.17677669, %v1410_v46  ;;  %v4058_v49 = vpop.f32.mrb[29].mxu1 }
 0x51f   : > { %v1413_v43 = vpop.f32.mrb[30].mxu1 }
 0x520   : > { %v1526_v57 = vmul.f32 0.17677669, %v1413_v43  ;;  %v4059_v58 = vpop.f32.mrb[31].mxu1  ;;  %v1533_v45 = vadd.f32 %v1525_v47, %v5300_v11 }
 0x522   : > { %v1545_v61 = vsel %vm1034_vm2, %v1533_v45, -inf  ;;  %v1534_v62 = vadd.f32 %v1526_v57, %v5300_v11 }
 0x523   : > { %1546 = vmax.xlane.f32.xlu0 %v1545_v61 }
 0x524   : > { %v1548_v5 = vsel %vm1034_vm2, %v1534_v62, -inf }
 0x525   : > { %v1516_v63 = vpop.f32.mrb[32].mxu1 }
 0x526   : > { %v1529_v1 = vmul.f32 0.17677669, %v1516_v63  ;;  %v4070_v2 = vpop.f32.mrb[33].mxu1 }
 0x527   : > { %1549 = vmax.xlane.f32.xlu0 %v1548_v5  ;;  %v1519_v8 = vpop.f32.mrb[34].mxu1 }
 0x528   : > { %v4071_v9 = vpop.f32.mrb[35].mxu1  ;;  %v1537_v13 = vadd.f32 %v1529_v1, %v5316_v56  ;;  %v1530_v15 = vmul.f32 0.17677669, %v1519_v8 }
 0x52a   : > { %v1557_v14 = vsel %vm1034_vm2, %v1537_v13, -inf  ;;  %v5419_v16 = vadd.f32 %v1530_v15, %v5316_v56 }
 0x52b   : > { %1680 = vrot.lane.b32.xlu1 %v5246_v20, %s4829_s18  ;;  %1552 = vmax.xlane.f32.xlu0 %v1551_v12 }
 0x52c   : > { %v1560_v17 = vsel %vm1034_vm2, %v5419_v16, -inf }
 0x52f   : > { %1728 = vrot.lane.b32.xlu1 %v5269_v50, %s4829_s18  ;;  %1558 = vmax.xlane.f32.xlu0 %v1557_v14 }
 0x545   : > { %1632 = vrot.lane.b32.xlu0 %v5250_v23, %s4829_s18 }
 0x553   : > { %1561 = vmax.xlane.f32.xlu1 %v1560_v17 }
 0x564   : > { %1776 = vrot.lane.b32.xlu1 %v5266_v48, %s4829_s18 }
 0x577   : > { %v1541_v18 = vpop.xlane.xlu0 %1540 }
 0x578   : > { %v1563_v22 = vsub.f32 %v1531_v27, %v1541_v18 }
 0x579   : > { %v1544_v26 = vpop.xlane.xlu1 %1543 }
 0x57a   : > { %v1571_v19 = vmul.f32 1.442695, %v1563_v22  ;;  %v1564_v30 = vsub.f32 %v1532_v6, %v1544_v26 }
 0x57c   : > { %4452 = vpow2.f32 %v1571_v19  ;;  %v1573_v31 = vmul.f32 1.442695, %v1564_v30 }
 0x57e   : > { %4454 = vpow2.f32 %v1573_v31 }
 0x586   : > { %v5425_v32 = vpop.eup %4452 }
 0x587   : > { %v1587_v10 = vsel %vm1034_vm2, %v5425_v32, 0.0 }
 0x588   : > { %v5429_v33 = vpop.eup %4454  ;;  %1588 = vadd.xlane.f32.xlu0 %v1587_v10 }
 0x589   : > { %v1590_v21 = vsel %vm1034_vm2, %v5429_v33, 0.0 }
 0x58a   : > { %1591 = vadd.xlane.f32.xlu1 %v1590_v21 }
 0x5a7   : > { %v1556_v34 = vpop.xlane.xlu1 %1555 }
 0x5a8   : > { %v1568_v35 = vsub.f32 %v1536_v38, %v1556_v34 }
 0x5aa   : > { %v1581_v46 = vmul.f32 1.442695, %v1568_v35 }
 0x5ab   : > { %v1681_v27 = vpop.permute.xlu1 %1680 }
 0x5ac   : > { %4079 = vmatpush3.bf16.msra.mxu1 %v1681_v27 }
 0x5ad   : > { %4090 = vmatprep.subr.bf16.mxu1 %v4827_v37 }
 0x5b0   : > { %v1547_v6 = vpop.xlane.xlu0 %1546 }
 0x5b1   : > { %v1565_v28 = vsub.f32 %v1533_v45, %v1547_v6 }
 0x5b3   : > { %v1575_v36 = vmul.f32 1.442695, %v1565_v28 }
 0x5b4   : > { %v1550_v44 = vpop.xlane.xlu0 %1549 }
 0x5b5   : > { %4456 = vpow2.f32 %v1575_v36  ;;  %v1566_v41 = vsub.f32 %v1534_v62, %v1550_v44 }
 0x5b7   : > { %v1577_v47 = vmul.f32 1.442695, %v1566_v41 }
 0x5b8   : > { %v1553_v49 = vpop.xlane.xlu0 %1552 }
 0x5b9   : > { %4458 = vpow2.f32 %v1577_v47  ;;  %v1567_v43 = vsub.f32 %v1535_v7, %v1553_v49 }
 0x5ba   : > { %4460 = vpow2.f32 %v1581_v46 }
 0x5bb   : > { %v1579_v57 = vmul.f32 1.442695, %v1567_v43 }
 0x5bc   : > { %v1559_v58 = vpop.xlane.xlu0 %1558 }
 0x5bd   : > { %4462 = vpow2.f32 %v1579_v57  ;;  %v1569_v60 = vsub.f32 %v1537_v13, %v1559_v58  ;;  %v1729_v13 = vpop.permute.xlu1 %1728 }
 0x5bf   : > { %v4457_v61 = vpop.eup %4456  ;;  %v1583_v63 = vmul.f32 1.442695, %v1569_v60 }
 0x5c0   : > { %v1633_v1 = vpop.permute.xlu0 %1632  ;;  %v1593_v45 = vsel %vm1034_vm2, %v4457_v61, 0.0 }
 0x5c1   : > { %4464 = vpow2.f32 %v1583_v63  ;;  %1594 = vadd.xlane.f32.xlu0 %v1593_v45  ;;  %4073 = vmatpush3.bf16.msra.mxu0 %v1633_v1 }
 0x5c2   : > { %4084 = vmatprep.subr.bf16.mxu0 %v4827_v37 }
 0x5c3   : > { %v4459_v38 = vpop.eup %4458 }
 0x5c4   : > { %v1596_v62 = vsel %vm1034_vm2, %v4459_v38, 0.0  ;;  %v4461_v2 = vpop.eup %4460 }
 0x5c5   : > { %1597 = vadd.xlane.f32.xlu1 %v1596_v62  ;;  %v1602_v8 = vsel %vm1034_vm2, %v4461_v2, 0.0 }
 0x5c7   : > { %v4463_v5 = vpop.eup %4462 }
 0x5c8   : > { %v1599_v7 = vsel %vm1034_vm2, %v4463_v5, 0.0 }
 0x5c9   : > { %1600 = vadd.xlane.f32.xlu0 %v1599_v7  ;;  %1603 = vadd.xlane.f32.xlu1 %v1602_v8 }
 0x5cb   : > { %v5439_v9 = vpop.eup %4464 }
 0x5cc   : > { %v1605_v12 = vsel %vm1034_vm2, %v5439_v9, 0.0 }
 0x5cd   : > { %1606 = vadd.xlane.f32.xlu0 %v1605_v12 }
 0x5da   : > { %1917 = vrot.lane.b32.xlu1 %v5235_v4, %s4830_s16 }
 0x5e0   : > { %v1562_v14 = vpop.xlane.xlu1 %1561 }
 0x5e1   : > { %v1570_v15 = vsub.f32 %v5419_v16, %v1562_v14 }
 0x5e3   : > { %1866 = vrot.lane.b32.xlu0 %v5221_v54, %s4830_s16  ;;  %v1585_v17 = vmul.f32 1.442695, %v1570_v15 }
 0x5e4   : > { %v1777_v26 = vpop.permute.xlu1 %1776 }
 0x5e5   : > { %4466 = vpow2.f32 %v1585_v17 }
 0x5e7   : > { %1864 = vrot.lane.b32.xlu0 %v5219_v53, %s4830_s16 }
 0x5eb   : > { %1915 = vrot.lane.b32.xlu0 %v5233_v3, %s4830_s16 }
 0x5ef   : > { %1966 = vrot.lane.b32.xlu0 %v5252_v24, %s4830_s16  ;;  %v5454_v18 = vpop.eup %4466 }
 0x5f0   : > { %v1608_v22 = vsel %vm1034_vm2, %v5454_v18, 0.0 }
 0x5fe   : > { %1609 = vadd.xlane.f32.xlu1 %v1608_v22 }
 0x60f   : > { %1968 = vrot.lane.b32.xlu1 %v5254_v25, %s4830_s16 }
 0x613   : > { %2019 = vrot.lane.b32.xlu1 %v5273_v52, %s4830_s16 }
 0x615   : > { %v1589_v16 = vpop.xlane.xlu0 %1588 }
 0x616   : > { %4468 = vrcp.f32 %v1589_v16 }
 0x617   : > { %2017 = vrot.lane.b32.xlu1 %v5271_v51, %s4830_s16  ;;  %v1592_v19 = vpop.xlane.xlu1 %1591 }
 0x618   : > { %4470 = vrcp.f32 %v1592_v19 }
 0x620   : > { %v4469_v30 = vpop.eup %4468 }
 0x621   : > { %v1619_v10 = vmul.f32 %v4469_v30, %v5425_v32 }
 0x622   : > { %v4471_v31 = vpop.eup %4470 }
 0x623   : > { %v1620_v21 = vmul.f32 %v4471_v31, %v5429_v33 }
 0x625   : > { %v1627_v34 = vpack.c.bf16 %v1620_v21, %v1619_v10 }
 0x627   : > { %4075 = vmatmul.mubr.msk.bf16.vlgmr.msra.gmra.mrb[36].mxu0 %vm1034_vm2, %v1627_v34 }
 0x628   : > { %4085 = vmatpush3.bf16.msra.mxu0 %v1729_v13  ;;  %4086 = vmatprep.mubr.msk.bf16.mxu0 %vm4828_vm0, %v4827_v37 }
 0x629   : > { %4096 = vmatprep.subr.bf16.mxu0 %v4827_v37 }
 0x64e   : > { %v1595_v27 = vpop.xlane.xlu0 %1594 }
 0x64f   : > { %4472 = vrcp.f32 %v1595_v27 }
 0x652   : > { %v1598_v6 = vpop.xlane.xlu1 %1597 }
 0x653   : > { %4474 = vrcp.f32 %v1598_v6 }
 0x656   : > { %v1601_v28 = vpop.xlane.xlu0 %1600  ;;  %v1604_v35 = vpop.xlane.xlu1 %1603 }
 0x657   : > { %4476 = vrcp.f32 %v1601_v28 }
 0x658   : > { %4478 = vrcp.f32 %v1604_v35 }
 0x659   : > { %v4473_v32 = vpop.eup %4472 }
 0x65a   : > { %v1621_v33 = vmul.f32 %v4473_v32, %v4457_v61  ;;  %v1607_v41 = vpop.xlane.xlu0 %1606  ;;  %v1918_v1 = vpop.permute.xlu1 %1917 }
 0x65b   : > { %4480 = vrcp.f32 %v1607_v41  ;;  %v1923_v15 = vsel %vm805_vm1, %v1918_v1, 0 }
 0x65d   : > { %v4475_v36 = vpop.eup %4474 }
 0x65e   : > { %v1622_v44 = vmul.f32 %v4475_v36, %v4459_v38  ;;  %v1867_v58 = vpop.permute.xlu0 %1866 }
 0x65f   : > { %v1872_v63 = vsel %vm805_vm1, %v1867_v58, 0 }
 0x660   : > { %v1628_v46 = vpack.c.bf16 %v1622_v44, %v1621_v33 }
 0x661   : > { %v4477_v47 = vpop.eup %4476 }
 0x662   : > { %v4479_v49 = vpop.eup %4478  ;;  %v1623_v43 = vmul.f32 %v4477_v47, %v4463_v5  ;;  %4081 = vmatmul.mubr.msk.bf16.vlgmr.msra.gmra.mrb[36].mxu1 %vm1034_vm2, %v1628_v46  ;;  %v1865_v61 = vpop.permute.xlu0 %1864 }
 0x663   : > { %v1624_v57 = vmul.f32 %v4479_v49, %v4461_v2  ;;  %4091 = vmatpush3.bf16.msra.mxu1 %v1777_v26  ;;  %4092 = vmatprep.mubr.msk.bf16.mxu1 %vm4828_vm0, %v4827_v37 }
 0x664   : > { %4102 = vmatprep.subr.bf16.mxu1 %v4827_v37 }
 0x665   : > { %v1629_v60 = vpack.c.bf16 %v1624_v57, %v1623_v43  ;;  %v4481_v5 = vpop.eup %4480 }
 0x666   : > { %v1916_v2 = vpop.permute.xlu0 %1915  ;;  %v1625_v8 = vmul.f32 %v4481_v5, %v5439_v9 }
 0x667   : > { %4087 = vmatmul.mubr.msk.bf16.vlgmr.msra.gmra.mrb[40].mxu0 %vm1034_vm2, %v1629_v60 }
 0x668   : > { %4097 = vmatpush3.bf16.xpose.msra.mxu0 %v1872_v63  ;;  %4098 = vmatprep.mubr.msk.bf16.mxu0 %vm4828_vm0, %v4827_v37 }
 0x669   : > { %4108 = vmatprep.subr.bf16.mxu0 %v4827_v37 }
 0x66a   : > { %v1967_v12 = vpop.permute.xlu0 %1966 }
 0x66f   : > { %4099 = vmatmul.mubr.msk.bf16.vlgmr.msra.gmra.mrb[44].mxu0 %vm805_vm1, %v1865_v61 }
 0x670   : > { %4110 = vmatprep.mubr.msk.bf16.mxu0 %vm4828_vm0, %v4827_v37 }
 0x68b   : > { %v1610_v45 = vpop.xlane.xlu1 %1609 }
 0x68c   : > { %4482 = vrcp.f32 %v1610_v45 }
 0x68f   : > { %v1969_v38 = vpop.permute.xlu1 %1968 }
 0x690   : > { %v1974_v62 = vsel %vm805_vm1, %v1969_v38, 0 }
 0x691   : > { %4109 = vmatpush3.bf16.xpose.msra.mxu0 %v1974_v62 }
 0x692   : > { %4120 = vmatprep.subr.bf16.mxu0 %v4827_v37 }
 0x693   : > { %v2020_v9 = vpop.permute.xlu1 %2019 }
 0x694   : > { %v2025_v17 = vsel %vm805_vm1, %v2020_v9, 0 }
 0x696   : > { %v4483_v7 = vpop.eup %4482 }
 0x697   : > { %v1626_v13 = vmul.f32 %v4483_v7, %v5454_v18  ;;  %v2018_v18 = vpop.permute.xlu1 %2017 }
 0x698   : > { %4111 = vmatmul.mubr.msk.bf16.vlgmr.msra.gmra.mrb[48].mxu0 %vm805_vm1, %v1967_v12 }
 0x699   : > { %v1630_v14 = vpack.c.bf16 %v1626_v13, %v1625_v8  ;;  %4122 = vmatprep.mubr.msk.bf16.mxu0 %vm4828_vm0, %v4827_v37 }
 0x69b   : > { %4093 = vmatmul.mubr.msk.bf16.vlgmr.msra.gmra.mrb[40].mxu1 %vm1034_vm2, %v1630_v14 }
 0x69c   : > { %4103 = vmatpush3.bf16.xpose.msra.mxu1 %v1923_v15  ;;  %4104 = vmatprep.mubr.msk.bf16.mxu1 %vm4828_vm0, %v4827_v37 }
 0x69d   : > { %4114 = vmatprep.subr.bf16.mxu1 %v4827_v37 }
 0x6a3   : > { %4105 = vmatmul.mubr.msk.bf16.vlgmr.msra.gmra.mrb[44].mxu1 %vm805_vm1, %v1916_v2 }
 0x6a4   : > { %4115 = vmatpush3.bf16.xpose.msra.mxu1 %v2025_v17  ;;  %4116 = vmatprep.mubr.msk.bf16.mxu1 %vm4828_vm0, %v4827_v37 }
 0x6a5   : > { %4126 = vmatprep.subr.bf16.mxu1 %v4827_v37 }
 0x6ab   : > { %4117 = vmatmul.mubr.msk.bf16.vlgmr.msra.gmra.mrb[48].mxu1 %vm805_vm1, %v2018_v18 }
 0x6ac   : > { %4128 = vmatprep.mubr.msk.bf16.mxu1 %vm4828_vm0, %v4827_v37 }
 0x6fa   : > { %v5502_v22 = vpop.f32.mrb[36].mxu0 }
 0x6fb   : > { %v4076_v26 = vpop.f32.mrb[37].mxu0 }
 0x6fc   : > { %v5504_v16 = vpop.f32.mrb[38].mxu0 }
 0x6fd   : > { %v4077_v19 = vpop.f32.mrb[39].mxu0 }
 0x735   : > { %v5506_v30 = vpop.f32.mrb[36].mxu1 }
 0x736   : > { %v4082_v31 = vpop.f32.mrb[37].mxu1 }
 0x737   : > { %v5508_v10 = vpop.f32.mrb[38].mxu1 }
 0x738   : > { %v4083_v21 = vpop.f32.mrb[39].mxu1 }
 0x73a   : > { %v5510_v34 = vpop.f32.mrb[40].mxu0 }
 0x73b   : > { %v4088_v27 = vpop.f32.mrb[41].mxu0 }
 0x73c   : > { %v5512_v6 = vpop.f32.mrb[42].mxu0 }
 0x73d   : > { %v4089_v28 = vpop.f32.mrb[43].mxu0 }
 0x742   : > { %v1908_v35 = vpop.f32.mrb[44].mxu0 }
 0x743   : > { %v2068_v32 = vmul.f32 0.17677669, %v1908_v35  ;;  %v4100_v36 = vpop.f32.mrb[45].mxu0 }
 0x744   : > { %v1911_v33 = vpop.f32.mrb[46].mxu0 }
 0x745   : > { %v2069_v44 = vmul.f32 0.17677669, %v1911_v33  ;;  %v4101_v41 = vpop.f32.mrb[47].mxu0  ;;  %v2076_v46 = vadd.f32 %v2068_v32, %v5293_v59 }
 0x747   : > { %v2084_v47 = vsel %vm1034_vm2, %v2076_v46, -inf  ;;  %v2077_v49 = vadd.f32 %v2069_v44, %v5293_v59 }
 0x748   : > { %2085 = vmax.xlane.f32.xlu0 %v2084_v47 }
 0x749   : > { %v2087_v43 = vsel %vm1034_vm2, %v2077_v49, -inf }
 0x74a   : > { %2088 = vmax.xlane.f32.xlu1 %v2087_v43 }
 0x76b   : > { %v2010_v57 = vpop.f32.mrb[48].mxu0 }
 0x76c   : > { %v4112_v58 = vpop.f32.mrb[49].mxu0  ;;  %v2072_v17 = vmul.f32 0.17677669, %v2010_v57 }
 0x76d   : > { %v2013_v60 = vpop.f32.mrb[50].mxu0 }
 0x76e   : > { %v2073_v63 = vmul.f32 0.17677669, %v2013_v60  ;;  %v5518_v61 = vpop.f32.mrb[40].mxu1  ;;  %v4113_v1 = vpop.f32.mrb[51].mxu0  ;;  %v2080_v28 = vadd.f32 %v2072_v17, %v5308_v29 }
 0x76f   : > { %v4094_v45 = vpop.f32.mrb[41].mxu1 }
 0x770   : > { %v5520_v38 = vpop.f32.mrb[42].mxu1  ;;  %v2081_v62 = vadd.f32 %v2073_v63, %v5308_v29  ;;  %v2096_v33 = vsel %vm1034_vm2, %v2080_v28, -inf }
 0x771   : > { %v4095_v2 = vpop.f32.mrb[43].mxu1 }
 0x772   : > { %v2099_v5 = vsel %vm1034_vm2, %v2081_v62, -inf }
 0x773   : > { %2100 = vmax.xlane.f32.xlu1 %v2099_v5 }
 0x776   : > { %v1959_v7 = vpop.f32.mrb[44].mxu1 }
 0x777   : > { %v2070_v8 = vmul.f32 0.17677669, %v1959_v7  ;;  %v4106_v12 = vpop.f32.mrb[45].mxu1 }
 0x778   : > { %v1962_v13 = vpop.f32.mrb[46].mxu1 }
 0x779   : > { %v2071_v14 = vmul.f32 0.17677669, %v1962_v13  ;;  %v4107_v15 = vpop.f32.mrb[47].mxu1  ;;  %v2078_v9 = vadd.f32 %v2070_v8, %v5300_v11 }
 0x77b   : > { %v2090_v18 = vsel %vm1034_vm2, %v2078_v9, -inf  ;;  %v2079_v26 = vadd.f32 %v2071_v14, %v5300_v11 }
 0x77c   : > { %2091 = vmax.xlane.f32.xlu0 %v2090_v18 }
 0x77d   : > { %v2093_v27 = vsel %vm1034_vm2, %v2079_v26, -inf }
 0x77e   : > { %v2061_v19 = vpop.f32.mrb[48].mxu1 }
 0x77f   : > { %v2074_v31 = vmul.f32 0.17677669, %v2061_v19  ;;  %v4118_v21 = vpop.f32.mrb[49].mxu1 }
 0x780   : > { %2094 = vmax.xlane.f32.xlu0 %v2093_v27  ;;  %v2064_v35 = vpop.f32.mrb[50].mxu1 }
 0x781   : > { %v2075_v32 = vmul.f32 0.17677669, %v2064_v35  ;;  %v4119_v36 = vpop.f32.mrb[51].mxu1  ;;  %v2082_v41 = vadd.f32 %v2074_v31, %v5316_v56 }
 0x783   : > { %v2083_v44 = vadd.f32 %v2075_v32, %v5316_v56  ;;  %v2102_v43 = vsel %vm1034_vm2, %v2082_v41, -inf }
 0x784   : > { %2097 = vmax.xlane.f32.xlu0 %v2096_v33 }
 0x785   : > { %v2105_v47 = vsel %vm1034_vm2, %v2083_v44, -inf }
 0x786   : > { %2106 = vmax.xlane.f32.xlu1 %v2105_v47 }
 0x788   : > { %2103 = vmax.xlane.f32.xlu0 %v2102_v43 }
 0x797   : > { %2223 = vrot.lane.b32.xlu1 %v5246_v20, %s4830_s16 }
 0x79b   : > { %2270 = vrot.lane.b32.xlu1 %v5269_v50, %s4830_s16 }
 0x79e   : > { %2176 = vrot.lane.b32.xlu0 %v5250_v23, %s4830_s16 }
 0x79f   : > { %2317 = vrot.lane.b32.xlu1 %v5266_v48, %s4830_s16 }
 0x7d5   : > { %v2086_v57 = vpop.xlane.xlu0 %2085 }
 0x7d6   : > { %v2108_v58 = vsub.f32 %v2076_v46, %v2086_v57 }
 0x7d7   : > { %v2089_v60 = vpop.xlane.xlu1 %2088 }
 0x7d8   : > { %v2116_v63 = vmul.f32 1.442695, %v2108_v58  ;;  %v2109_v1 = vsub.f32 %v2077_v49, %v2089_v60 }
 0x7da   : > { %4484 = vpow2.f32 %v2116_v63  ;;  %v2118_v45 = vmul.f32 1.442695, %v2109_v1 }
 0x7dc   : > { %4486 = vpow2.f32 %v2118_v45 }
 0x7e4   : > { %v5542_v2 = vpop.eup %4484 }
 0x7e5   : > { %v2132_v5 = vsel %vm1034_vm2, %v5542_v2, 0.0 }
 0x7e6   : > { %v5546_v7 = vpop.eup %4486  ;;  %2133 = vadd.xlane.f32.xlu0 %v2132_v5 }
 0x7e7   : > { %v2135_v8 = vsel %vm1034_vm2, %v5546_v7, 0.0 }
 0x7e8   : > { %2136 = vadd.xlane.f32.xlu1 %v2135_v8 }
 0x800   : > { %v2101_v12 = vpop.xlane.xlu1 %2100 }
 0x801   : > { %v2113_v14 = vsub.f32 %v2081_v62, %v2101_v12 }
 0x803   : > { %v2126_v18 = vmul.f32 1.442695, %v2113_v14 }
 0x809   : > { %v2092_v46 = vpop.xlane.xlu0 %2091 }
 0x80a   : > { %v2110_v13 = vsub.f32 %v2078_v9, %v2092_v46 }
 0x80c   : > { %v2120_v49 = vmul.f32 1.442695, %v2110_v13 }
 0x80d   : > { %v2095_v15 = vpop.xlane.xlu0 %2094 }
 0x80e   : > { %4488 = vpow2.f32 %v2120_v49  ;;  %v2111_v17 = vsub.f32 %v2079_v26, %v2095_v15 }
 0x810   : > { %v2122_v19 = vmul.f32 1.442695, %v2111_v17 }
 0x811   : > { %v2098_v31 = vpop.xlane.xlu0 %2097 }
 0x812   : > { %4490 = vpow2.f32 %v2122_v19  ;;  %v2112_v21 = vsub.f32 %v2080_v28, %v2098_v31 }
 0x813   : > { %v2107_v27 = vpop.xlane.xlu1 %2106  ;;  %4492 = vpow2.f32 %v2126_v18 }
 0x814   : > { %v2124_v35 = vmul.f32 1.442695, %v2112_v21  ;;  %v2115_v32 = vsub.f32 %v2083_v44, %v2107_v27 }
 0x815   : > { %v2104_v36 = vpop.xlane.xlu0 %2103 }
 0x816   : > { %4494 = vpow2.f32 %v2124_v35  ;;  %v2130_v33 = vmul.f32 1.442695, %v2115_v32  ;;  %v2114_v47 = vsub.f32 %v2082_v41, %v2104_v36 }
 0x817   : > { %v2224_v43 = vpop.permute.xlu1 %2223 }
 0x818   : > { %v5550_v9 = vpop.eup %4488  ;;  %4496 = vpow2.f32 %v2130_v33  ;;  %v2128_v62 = vmul.f32 1.442695, %v2114_v47  ;;  %4127 = vmatpush3.bf16.msra.mxu1 %v2224_v43 }
 0x819   : > { %v2177_v26 = vpop.permute.xlu0 %2176  ;;  %v2138_v57 = vsel %vm1034_vm2, %v5550_v9, 0.0  ;;  %4138 = vmatprep.subr.bf16.mxu1 %v4827_v37 }
 0x81a   : > { %4498 = vpow2.f32 %v2128_v62  ;;  %2139 = vadd.xlane.f32.xlu0 %v2138_v57  ;;  %4121 = vmatpush3.bf16.msra.mxu0 %v2177_v26 }
 0x81b   : > { %4132 = vmatprep.subr.bf16.mxu0 %v4827_v37 }
 0x81c   : > { %v4491_v28 = vpop.eup %4490 }
 0x81d   : > { %v2141_v44 = vsel %vm1034_vm2, %v4491_v28, 0.0  ;;  %v4493_v41 = vpop.eup %4492 }
 0x81e   : > { %2142 = vadd.xlane.f32.xlu1 %v2141_v44  ;;  %v2147_v63 = vsel %vm1034_vm2, %v4493_v41, 0.0 }
 0x820   : > { %v4495_v58 = vpop.eup %4494 }
 0x821   : > { %v2144_v60 = vsel %vm1034_vm2, %v4495_v58, 0.0 }
 0x822   : > { %v5559_v1 = vpop.eup %4496  ;;  %2145 = vadd.xlane.f32.xlu0 %v2144_v60  ;;  %2148 = vadd.xlane.f32.xlu1 %v2147_v63 }
 0x823   : > { %v2153_v8 = vsel %vm1034_vm2, %v5559_v1, 0.0 }
 0x824   : > { %v4499_v45 = vpop.eup %4498 }
 0x825   : > { %v2150_v5 = vsel %vm1034_vm2, %v4499_v45, 0.0 }
 0x826   : > { %2151 = vadd.xlane.f32.xlu0 %v2150_v5  ;;  %2154 = vadd.xlane.f32.xlu1 %v2153_v8 }
 0x837   : > { %2458 = vrot.lane.b32.xlu1 %v5235_v4, %s4831_s22  ;;  %v2271_v4 = vpop.permute.xlu1 %2270 }
 0x83b   : > { %2456 = vrot.lane.b32.xlu1 %v5233_v3, %s4831_s22  ;;  %v2318_v3 = vpop.permute.xlu1 %2317 }
 0x83c   : > { %2407 = vrot.lane.b32.xlu0 %v5221_v54, %s4831_s22 }
 0x83f   : > { %2560 = vrot.lane.b32.xlu1 %v5273_v52, %s4831_s22 }
 0x840   : > { %2405 = vrot.lane.b32.xlu0 %v5219_v53, %s4831_s22 }
 0x843   : > { %2558 = vrot.lane.b32.xlu1 %v5271_v51, %s4831_s22 }
 0x844   : > { %2509 = vrot.lane.b32.xlu0 %v5254_v25, %s4831_s22 }
 0x848   : > { %2507 = vrot.lane.b32.xlu0 %v5252_v24, %s4831_s22 }
 0x873   : > { %v2134_v12 = vpop.xlane.xlu0 %2133 }
 0x874   : > { %4500 = vrcp.f32 %v2134_v12 }
 0x875   : > { %v2137_v54 = vpop.xlane.xlu1 %2136 }
 0x876   : > { %4502 = vrcp.f32 %v2137_v54 }
 0x87e   : > { %v4501_v46 = vpop.eup %4500 }
 0x87f   : > { %v2164_v13 = vmul.f32 %v4501_v46, %v5542_v2 }
 0x880   : > { %v4503_v52 = vpop.eup %4502 }
 0x881   : > { %v2165_v53 = vmul.f32 %v4503_v52, %v5546_v7 }
 0x883   : > { %v2172_v14 = vpack.c.bf16 %v2165_v53, %v2164_v13 }
 0x885   : > { %4123 = vmatmul.mubr.msk.bf16.vlgmr.msra.gmra.mrb[52].mxu0 %vm1034_vm2, %v2172_v14 }
 0x886   : > { %4133 = vmatpush3.bf16.msra.mxu0 %v2271_v4  ;;  %4134 = vmatprep.mubr.msk.bf16.mxu0 %vm4828_vm0, %v4827_v37 }
 0x887   : > { %4144 = vmatprep.subr.bf16.mxu0 %v4827_v37 }
 0x8a7   : > { %v2140_v24 = vpop.xlane.xlu0 %2139 }
 0x8a8   : > { %4504 = vrcp.f32 %v2140_v24 }
 0x8ab   : > { %v2143_v25 = vpop.xlane.xlu1 %2142 }
 0x8ac   : > { %4506 = vrcp.f32 %v2143_v25 }
 0x8af   : > { %v2146_v51 = vpop.xlane.xlu0 %2145  ;;  %v2149_v49 = vpop.xlane.xlu1 %2148 }
 0x8b0   : > { %4508 = vrcp.f32 %v2146_v51 }
 0x8b1   : > { %4510 = vrcp.f32 %v2149_v49 }
 0x8b2   : > { %v4505_v7 = vpop.eup %4504 }
 0x8b3   : > { %v2152_v2 = vpop.xlane.xlu0 %2151  ;;  %v2155_v15 = vpop.xlane.xlu1 %2154  ;;  %v2166_v18 = vmul.f32 %v4505_v7, %v5550_v9 }
 0x8b4   : > { %4512 = vrcp.f32 %v2152_v2 }
 0x8b5   : > { %4514 = vrcp.f32 %v2155_v15 }
 0x8b6   : > { %v4507_v17 = vpop.eup %4506 }
 0x8b7   : > { %v2167_v19 = vmul.f32 %v4507_v17, %v4491_v28  ;;  %v2408_v31 = vpop.permute.xlu0 %2407  ;;  %v2459_v33 = vpop.permute.xlu1 %2458 }
 0x8b8   : > { %v2413_v28 = vsel %vm805_vm1, %v2408_v31, 0 }
 0x8b9   : > { %v2173_v21 = vpack.c.bf16 %v2167_v19, %v2166_v18 }
 0x8ba   : > { %v4509_v27 = vpop.eup %4508 }
 0x8bb   : > { %v4511_v35 = vpop.eup %4510  ;;  %v2168_v32 = vmul.f32 %v4509_v27, %v4495_v58  ;;  %4129 = vmatmul.mubr.msk.bf16.vlgmr.msra.gmra.mrb[52].mxu1 %vm1034_vm2, %v2173_v21  ;;  %v2406_v26 = vpop.permute.xlu0 %2405  ;;  %v2464_v58 = vsel %vm805_vm1, %v2459_v33, 0 }
 0x8bc   : > { %v2169_v36 = vmul.f32 %v4511_v35, %v4493_v41  ;;  %4139 = vmatpush3.bf16.msra.mxu1 %v2318_v3  ;;  %4140 = vmatprep.mubr.msk.bf16.mxu1 %vm4828_vm0, %v4827_v37  ;;  %v2457_v41 = vpop.permute.xlu1 %2456 }
 0x8bd   : > { %4150 = vmatprep.subr.bf16.mxu1 %v4827_v37 }
 0x8be   : > { %v4513_v47 = vpop.eup %4512  ;;  %v2174_v43 = vpack.c.bf16 %v2169_v36, %v2168_v32 }
 0x8bf   : > { %v4515_v62 = vpop.eup %4514  ;;  %v2170_v9 = vmul.f32 %v4513_v47, %v4499_v45  ;;  %v2510_v60 = vpop.permute.xlu0 %2509 }
 0x8c0   : > { %v2171_v57 = vmul.f32 %v4515_v62, %v5559_v1  ;;  %4135 = vmatmul.mubr.msk.bf16.vlgmr.msra.gmra.mrb[56].mxu0 %vm1034_vm2, %v2174_v43  ;;  %v2515_v63 = vsel %vm805_vm1, %v2510_v60, 0  ;;  %v2561_v1 = vpop.permute.xlu1 %2560 }
 0x8c1   : > { %4145 = vmatpush3.bf16.xpose.msra.mxu0 %v2413_v28  ;;  %4146 = vmatprep.mubr.msk.bf16.mxu0 %vm4828_vm0, %v4827_v37  ;;  %v2566_v45 = vsel %vm805_vm1, %v2561_v1, 0 }
 0x8c2   : > { %v2175_v44 = vpack.c.bf16 %v2171_v57, %v2170_v9  ;;  %4156 = vmatprep.subr.bf16.mxu0 %v4827_v37 }
 0x8c3   : > { %v2508_v5 = vpop.permute.xlu0 %2507 }
 0x8c4   : > { %4141 = vmatmul.mubr.msk.bf16.vlgmr.msra.gmra.mrb[56].mxu1 %vm1034_vm2, %v2175_v44  ;;  %v2559_v8 = vpop.permute.xlu1 %2558 }
 0x8c5   : > { %4151 = vmatpush3.bf16.xpose.msra.mxu1 %v2464_v58  ;;  %4152 = vmatprep.mubr.msk.bf16.mxu1 %vm4828_vm0, %v4827_v37 }
 0x8c6   : > { %4162 = vmatprep.subr.bf16.mxu1 %v4827_v37 }
 0x8c8   : > { %4147 = vmatmul.mubr.msk.bf16.vlgmr.msra.gmra.mrb[60].mxu0 %vm805_vm1, %v2406_v26 }
 0x8c9   : > { %4157 = vmatpush3.bf16.xpose.msra.mxu0 %v2515_v63  ;;  %4158 = vmatprep.mubr.msk.bf16.mxu0 %vm4828_vm0, %v4827_v37 }
 0x8ca   : > { %4168 = vmatprep.subr.bf16.mxu0 %v4827_v37 }
 0x8cc   : > { %4153 = vmatmul.mubr.msk.bf16.vlgmr.msra.gmra.mrb[60].mxu1 %vm805_vm1, %v2457_v41 }
 0x8cd   : > { %4163 = vmatpush3.bf16.xpose.msra.mxu1 %v2566_v45  ;;  %4164 = vmatprep.mubr.msk.bf16.mxu1 %vm4828_vm0, %v4827_v37 }
 0x8ce   : > { %4174 = vmatprep.subr.bf16.mxu1 %v4827_v37 }
 0x8d0   : > { %4159 = vmatmul.mubr.msk.bf16.vlgmr.msra.gmra.mrb[64].mxu0 %vm805_vm1, %v2508_v5 }
 0x8d1   : > { %4170 = vmatprep.mubr.msk.bf16.mxu0 %vm4828_vm0, %v4827_v37 }
 0x8d4   : > { %4165 = vmatmul.mubr.msk.bf16.vlgmr.msra.gmra.mrb[64].mxu1 %vm805_vm1, %v2559_v8 }
 0x8d5   : > { %4176 = vmatprep.mubr.msk.bf16.mxu1 %vm4828_vm0, %v4827_v37 }
 0x958   : > { %v5618_v4 = vpop.f32.mrb[52].mxu0 }
 0x959   : > { %v4124_v3 = vpop.f32.mrb[53].mxu0 }
 0x95a   : > { %v5620_v12 = vpop.f32.mrb[54].mxu0 }
 0x95b   : > { %v4125_v54 = vpop.f32.mrb[55].mxu0 }
 0x98e   : > { %v5622_v46 = vpop.f32.mrb[52].mxu1 }
 0x98f   : > { %v4130_v52 = vpop.f32.mrb[53].mxu1 }
 0x990   : > { %v5624_v13 = vpop.f32.mrb[54].mxu1 }
 0x991   : > { %v4131_v53 = vpop.f32.mrb[55].mxu1 }
 0x993   : > { %v5626_v14 = vpop.f32.mrb[56].mxu0 }
 0x994   : > { %v4136_v24 = vpop.f32.mrb[57].mxu0 }
 0x995   : > { %v5628_v25 = vpop.f32.mrb[58].mxu0 }
 0x996   : > { %v4137_v51 = vpop.f32.mrb[59].mxu0 }
 0x997   : > { %v5630_v49 = vpop.f32.mrb[56].mxu1 }
 0x998   : > { %v4142_v2 = vpop.f32.mrb[57].mxu1 }
 0x999   : > { %v5632_v15 = vpop.f32.mrb[58].mxu1 }
 0x99a   : > { %v4143_v7 = vpop.f32.mrb[59].mxu1 }
 0x99b   : > { %v2449_v17 = vpop.f32.mrb[60].mxu0 }
 0x99c   : > { %v2609_v18 = vmul.f32 0.17677669, %v2449_v17  ;;  %v4148_v19 = vpop.f32.mrb[61].mxu0 }
 0x99d   : > { %v2452_v31 = vpop.f32.mrb[62].mxu0 }
 0x99e   : > { %v2610_v21 = vmul.f32 0.17677669, %v2452_v31  ;;  %v4149_v27 = vpop.f32.mrb[63].mxu0  ;;  %v2617_v35 = vadd.f32 %v2609_v18, %v5293_v59 }
 0x99f   : > { %v2500_v32 = vpop.f32.mrb[60].mxu1 }
 0x9a0   : > { %v2611_v36 = vmul.f32 0.17677669, %v2500_v32  ;;  %v4154_v33 = vpop.f32.mrb[61].mxu1  ;;  %v2625_v47 = vsel %vm1034_vm2, %v2617_v35, -inf  ;;  %v2618_v43 = vadd.f32 %v2610_v21, %v5293_v59 }
 0x9a1   : > { %2626 = vmax.xlane.f32.xlu0 %v2625_v47  ;;  %v2503_v62 = vpop.f32.mrb[62].mxu1 }
 0x9a2   : > { %v2612_v9 = vmul.f32 0.17677669, %v2503_v62  ;;  %v4155_v26 = vpop.f32.mrb[63].mxu1  ;;  %v2628_v57 = vsel %vm1034_vm2, %v2618_v43, -inf  ;;  %v2619_v28 = vadd.f32 %v2611_v36, %v5300_v11 }
 0x9a3   : > { %2629 = vmax.xlane.f32.xlu1 %v2628_v57  ;;  %v2551_v44 = vpop.f32.mrb[64].mxu0 }
 0x9a4   : > { %v2613_v41 = vmul.f32 0.17677669, %v2551_v44  ;;  %v4160_v58 = vpop.f32.mrb[65].mxu0  ;;  %v2631_v60 = vsel %vm1034_vm2, %v2619_v28, -inf  ;;  %v2620_v63 = vadd.f32 %v2612_v9, %v5300_v11 }
 0x9a5   : > { %v2554_v1 = vpop.f32.mrb[66].mxu0  ;;  %2632 = vmax.xlane.f32.xlu0 %v2631_v60 }
 0x9a6   : > { %v2614_v45 = vmul.f32 0.17677669, %v2554_v1  ;;  %v4161_v59 = vpop.f32.mrb[67].mxu0  ;;  %v2634_v54 = vsel %vm1034_vm2, %v2620_v63, -inf  ;;  %v2621_v53 = vadd.f32 %v2613_v41, %v5308_v29 }
 0x9a7   : > { %v2602_v5 = vpop.f32.mrb[64].mxu1 }
 0x9a8   : > { %v2615_v8 = vmul.f32 0.17677669, %v2602_v5  ;;  %v4166_v3 = vpop.f32.mrb[65].mxu1  ;;  %v2622_v52 = vadd.f32 %v2614_v45, %v5308_v29  ;;  %v2637_v11 = vsel %vm1034_vm2, %v2621_v53, -inf }
 0x9a9   : > { %2635 = vmax.xlane.f32.xlu0 %v2634_v54  ;;  %v2605_v24 = vpop.f32.mrb[66].mxu1 }
 0x9aa   : > { %v2616_v51 = vmul.f32 0.17677669, %v2605_v24  ;;  %v4167_v2 = vpop.f32.mrb[67].mxu1  ;;  %v2640_v7 = vsel %vm1034_vm2, %v2622_v52, -inf  ;;  %v2623_v18 = vadd.f32 %v2615_v8, %v5316_v56 }
 0x9ab   : > { %2641 = vmax.xlane.f32.xlu1 %v2640_v7 }
 0x9ac   : > { %v5647_v17 = vadd.f32 %v2616_v51, %v5316_v56  ;;  %v2643_v29 = vsel %vm1034_vm2, %v2623_v18, -inf }
 0x9ad   : > { %2638 = vmax.xlane.f32.xlu0 %v2637_v11 }
 0x9ae   : > { %v2646_v19 = vsel %vm1034_vm2, %v5647_v17, -inf }
 0x9af   : > { %2647 = vmax.xlane.f32.xlu1 %v2646_v19 }
 0x9b1   : > { %2644 = vmax.xlane.f32.xlu0 %v2643_v29 }
 0xa2e   : > { %v2627_v31 = vpop.xlane.xlu0 %2626 }
 0xa2f   : > { %v2649_v21 = vsub.f32 %v2617_v35, %v2627_v31 }
 0xa30   : > { %v2630_v27 = vpop.xlane.xlu1 %2629 }
 0xa31   : > { %v2657_v32 = vmul.f32 1.442695, %v2649_v21  ;;  %v2650_v36 = vsub.f32 %v2618_v43, %v2630_v27 }
 0xa32   : > { %v2633_v33 = vpop.xlane.xlu0 %2632 }
 0xa33   : > { %4516 = vpow2.f32 %v2657_v32  ;;  %v2659_v47 = vmul.f32 1.442695, %v2650_v36  ;;  %v2651_v62 = vsub.f32 %v2619_v28, %v2633_v33 }
 0xa35   : > { %4518 = vpow2.f32 %v2659_v47  ;;  %v2661_v9 = vmul.f32 1.442695, %v2651_v62 }
 0xa36   : > { %v2636_v56 = vpop.xlane.xlu0 %2635 }
 0xa37   : > { %4520 = vpow2.f32 %v2661_v9  ;;  %v2652_v26 = vsub.f32 %v2620_v63, %v2636_v56 }
 0xa38   : > { %v2642_v57 = vpop.xlane.xlu1 %2641 }
 0xa39   : > { %v2663_v44 = vmul.f32 1.442695, %v2652_v26  ;;  %v2654_v41 = vsub.f32 %v2622_v52, %v2642_v57 }
 0xa3a   : > { %v2639_v58 = vpop.xlane.xlu0 %2638 }
 0xa3b   : > { %4522 = vpow2.f32 %v2663_v44  ;;  %v2667_v60 = vmul.f32 1.442695, %v2654_v41  ;;  %v2653_v1 = vsub.f32 %v2621_v53, %v2639_v58 }
 0xa3c   : > { %v2648_v19 = vpop.xlane.xlu1 %2647 }
 0xa3d   : > { %v5653_v35 = vpop.eup %4516  ;;  %4524 = vpow2.f32 %v2667_v60  ;;  %v2665_v43 = vmul.f32 1.442695, %v2653_v1  ;;  %v2656_v29 = vsub.f32 %v5647_v17, %v2648_v19  ;;  %v4378_v19 = vld [vmem:[#allocation9 + $0x30] sm:$0xff]  }
 0xa3e   : > { %v2645_v45 = vpop.xlane.xlu0 %2644  ;;  %v2673_v28 = vsel %vm1034_vm2, %v5653_v35, 0.0 }
 0xa3f   : > { %v5657_v59 = vpop.eup %4518  ;;  %4526 = vpow2.f32 %v2665_v43  ;;  %v2655_v5 = vsub.f32 %v2623_v18, %v2645_v45  ;;  %2674 = vadd.xlane.f32.xlu0 %v2673_v28  ;;  %v2671_v31 = vmul.f32 1.442695, %v2656_v29  ;;  %v4379_v29 = vld [vmem:[#allocation9 + $0x38] sm:$0xff]  }
 0xa40   : > { %v2676_v63 = vsel %vm1034_vm2, %v5657_v59, 0.0 }
 0xa41   : > { %v5661_v8 = vpop.eup %4520  ;;  %v2669_v3 = vmul.f32 1.442695, %v2655_v5  ;;  %2677 = vadd.xlane.f32.xlu1 %v2676_v63 }
 0xa42   : > { %v2679_v54 = vsel %vm1034_vm2, %v5661_v8, 0.0 }
 0xa43   : > { %4528 = vpow2.f32 %v2669_v3  ;;  %2680 = vadd.xlane.f32.xlu0 %v2679_v54 }
 0xa44   : > { %4530 = vpow2.f32 %v2671_v31 }
 0xa45   : > { %v4523_v52 = vpop.eup %4522 }
 0xa46   : > { %v2682_v53 = vsel %vm1034_vm2, %v4523_v52, 0.0 }
 0xa47   : > { %v5666_v24 = vpop.eup %4524  ;;  %2683 = vadd.xlane.f32.xlu1 %v2682_v53 }
 0xa48   : > { %v2688_v7 = vsel %vm1034_vm2, %v5666_v24, 0.0 }
 0xa49   : > { %v5668_v51 = vpop.eup %4526 }
 0xa4a   : > { %v2685_v2 = vsel %vm1034_vm2, %v5668_v51, 0.0 }
 0xa4b   : > { %2686 = vadd.xlane.f32.xlu0 %v2685_v2  ;;  %2689 = vadd.xlane.f32.xlu1 %v2688_v7  ;;  %v4374_v2 = vld [vmem:[#allocation9 + $0x10] sm:$0xff]   ;;  %v4375_v7 = vld [vmem:[#allocation9 + $0x18] sm:$0xff]  }
 0xa4d   : > { %v5674_v11 = vpop.eup %4528 }
 0xa4e   : > { %v2691_v18 = vsel %vm1034_vm2, %v5674_v11, 0.0 }
 0xa4f   : > { %2692 = vadd.xlane.f32.xlu0 %v2691_v18  ;;  %v4377_v18 = vld [vmem:[#allocation9 + $0x28] sm:$0xff]  }
 0xa5c   : > { %2764 = vrot.lane.b32.xlu1 %v5246_v20, %s4831_s22  ;;  %v5697_v20 = vpop.eup %4530 }
 0xa60   : > { %2811 = vrot.lane.b32.xlu1 %v5269_v50, %s4831_s22 }
 0xa65   : > { %2717 = vrot.lane.b32.xlu0 %v5250_v23, %s4831_s22  ;;  %v2694_v23 = vsel %vm1034_vm2, %v5697_v20, 0.0 }
 0xa69   : > { %1831 = vrot.lane.b32.xlu0 %v5502_v22, %s4831_s22 }
 0xa6d   : > { %1835 = vrot.lane.b32.xlu0 %v5506_v30, %s4831_s22 }
 0xa71   : > { %2372 = vrot.lane.b32.xlu0 %v5618_v4, %s4830_s16 }
 0xa75   : > { %2376 = vrot.lane.b32.xlu0 %v5622_v46, %s4830_s16 }
 0xa79   : > { %1839 = vrot.lane.b32.xlu0 %v5510_v34, %s4831_s22 }
 0xa7d   : > { %1843 = vrot.lane.b32.xlu0 %v5518_v61, %s4831_s22 }
 0xa84   : > { %2695 = vadd.xlane.f32.xlu1 %v2694_v23 }
 0xa95   : > { %2858 = vrot.lane.b32.xlu1 %v5266_v48, %s4831_s22 }
 0xa99   : > { %1833 = vrot.lane.b32.xlu1 %v5504_v16, %s4831_s22 }
 0xa9d   : > { %1837 = vrot.lane.b32.xlu1 %v5508_v10, %s4831_s22 }
 0xaa1   : > { %2374 = vrot.lane.b32.xlu1 %v5620_v12, %s4830_s16 }
 0xaa5   : > { %2378 = vrot.lane.b32.xlu1 %v5624_v13, %s4830_s16 }
 0xaa9   : > { %1841 = vrot.lane.b32.xlu1 %v5512_v6, %s4831_s22 }
 0xaad   : > { %1845 = vrot.lane.b32.xlu1 %v5520_v38, %s4831_s22 }
 0xacc   : > { %v2675_v50 = vpop.xlane.xlu0 %2674 }
 0xace   : > { %v2678_v48 = vpop.xlane.xlu1 %2677 }
 0xacf   : > { %4532 = vrcp.f32 %v2678_v48 }
 0xad0   : > { %v2681_v22 = vpop.xlane.xlu0 %2680  ;;  %4534 = vrcp.f32 %v2675_v50 }
 0xad1   : > { %4536 = vrcp.f32 %v2681_v22 }
 0xad4   : > { %v2684_v16 = vpop.xlane.xlu1 %2683 }
 0xad5   : > { %4538 = vrcp.f32 %v2684_v16 }
 0xad8   : > { %v2687_v30 = vpop.xlane.xlu0 %2686  ;;  %v2690_v10 = vpop.xlane.xlu1 %2689 }
 0xad9   : > { %4540 = vrcp.f32 %v2687_v30  ;;  %v4533_v34 = vpop.eup %4532 }
 0xada   : > { %4542 = vrcp.f32 %v2690_v10  ;;  %v4535_v61 = vpop.eup %4534  ;;  %v2706_v38 = vmul.f32 %v4533_v34, %v5657_v59 }
 0xadb   : > { %v4537_v6 = vpop.eup %4536  ;;  %v2705_v13 = vmul.f32 %v4535_v61, %v5653_v35 }
 0xadc   : > { %v2693_v4 = vpop.xlane.xlu0 %2692  ;;  %v2765_v12 = vpop.permute.xlu1 %2764  ;;  %v2707_v17 = vmul.f32 %v4537_v6, %v5661_v8  ;;  %v4380_v6 = vld [vmem:[#allocation11] ss:$8 sps:$4 sm:$0xff]  }
 0xadd   : > { %4175 = vmatpush3.bf16.msra.mxu1 %v2765_v12  ;;  %v2713_v32 = vpack.c.bf16 %v2706_v38, %v2705_v13  ;;  %4544 = vrcp.f32 %v2693_v4  ;;  %v4382_v38 = vld [vmem:[#allocation11 + $0x4] ss:$8 sps:$4 sm:$0xff]  }
 0xade   : > { %4186 = vmatprep.subr.bf16.mxu1 %v4827_v37 }
 0xadf   : > { %v4539_v46 = vpop.eup %4538 }
 0xae0   : > { %v2708_v21 = vmul.f32 %v4539_v46, %v4523_v52  ;;  %v2718_v27 = vpop.permute.xlu0 %2717  ;;  %v2812_v62 = vpop.permute.xlu1 %2811  ;;  %v4385_v46 = vld [vmem:[#allocation11 + $0x14] ss:$8 sps:$4 sm:$0xff]  }
 0xae1   : > { %4169 = vmatpush3.bf16.msra.mxu0 %v2718_v27  ;;  %v4389_v27 = vld [vmem:[#allocation11 + $0x30] ss:$8 sps:$4 sm:$0xff]  }
 0xae2   : > { %4180 = vmatprep.subr.bf16.mxu0 %v4827_v37  ;;  %v2714_v36 = vpack.c.bf16 %v2708_v21, %v2707_v17  ;;  %v4386_v17 = vld [vmem:[#allocation11 + $0x20] ss:$8 sps:$4 sm:$0xff]   ;;  %v4391_v21 = vld [vmem:[#allocation11 + $0x34] ss:$8 sps:$4 sm:$0xff]  }
 0xae3   : > { %v4541_v33 = vpop.eup %4540 }
 0xae4   : > { %v4543_v47 = vpop.eup %4542  ;;  %v1832_v9 = vpop.permute.xlu0 %1831  ;;  %4171 = vmatmul.mubr.msk.bf16.vlgmr.msra.gmra.mrb[68].mxu0 %vm1034_vm2, %v2713_v32  ;;  %4177 = vmatmul.mubr.msk.bf16.vlgmr.msra.gmra.mrb[68].mxu1 %vm1034_vm2, %v2714_v36  ;;  %v2709_v56 = vmul.f32 %v4541_v33, %v5668_v51  ;;  %v4373_v51 = vld [vmem:[#allocation9 + $0x8] sm:$0xff]  }
 0xae5   : > { %1856 = vst.msk [vmem:[#allocation2] sm:$0xff] %vm1855_vm3, %v1832_v9  ;;  %4181 = vmatpush3.bf16.msra.mxu0 %v2812_v62  ;;  %4182 = vmatprep.mubr.msk.bf16.mxu0 %vm4828_vm0, %v4827_v37  ;;  %v2710_v26 = vmul.f32 %v4543_v47, %v5666_v24  ;;  %v4372_v24 = vld [vmem:[#allocation9] sm:$0xff]  }
 0xae6   : > { %4188 = vmatprep.mubr.msk.bf16.mxu1 %vm4828_vm0, %v4827_v37  ;;  %4192 = vmatprep.subr.bf16.mxu0 %v4372_v24  ;;  %v4394_v32 = vld [vmem:[#allocation11 + $0x44] ss:$8 sps:$4 sm:$0xff]   ;;  %v4392_v36 = vld [vmem:[#allocation11 + $0x40] ss:$8 sps:$4 sm:$0xff]  }
 0xae7   : > { %v2715_v44 = vpack.c.bf16 %v2710_v26, %v2709_v56  ;;  %v4545_v45 = vpop.eup %4544 }
 0xae8   : > { %v1836_v57 = vpop.permute.xlu0 %1835  ;;  %v2711_v59 = vmul.f32 %v4545_v45, %v5674_v11  ;;  %v4376_v11 = vld [vmem:[#allocation9 + $0x20] sm:$0xff]  }
 0xae9   : > { %1858 = vst.msk [vmem:[#allocation2 + $0x10] sm:$0xff] %vm1855_vm3, %v1836_v57 }
 0xaec   : > { %v2373_v41 = vpop.permute.xlu0 %2372  ;;  %4183 = vmatmul.mubr.msk.bf16.vlgmr.msra.gmra.mrb[72].mxu0 %vm1034_vm2, %v2715_v44 }
 0xaed   : > { %2397 = vst.msk [vmem:[#allocation2] sm:$0xff] %vm2396_vm4, %v2373_v41  ;;  %4193 = vmatpush3.bf16.msra.mxu0 %v4372_v24  ;;  %v4395_v24 = vld [vmem:[#allocation11 + $0x50] ss:$8 sps:$4 sm:$0xff]  }
 0xaee   : > { %4194 = vmatprep.subr.bf16.mxu0 %v4373_v51 }
 0xaf0   : > { %v2377_v58 = vpop.permute.xlu0 %2376 }
 0xaf1   : > { %2399 = vst.msk [vmem:[#allocation2 + $0x10] sm:$0xff] %vm2396_vm4, %v2377_v58  ;;  %4195 = vmatpush3.bf16.msra.mxu0 %v4373_v51  ;;  %v4400_v51 = vld [vmem:[#allocation11 + $0x64] ss:$8 sps:$4 sm:$0xff]  }
 0xaf2   : > { %4196 = vmatprep.subr.bf16.mxu0 %v4374_v2 }
 0xaf4   : > { %v1840_v60 = vpop.permute.xlu0 %1839 }
 0xaf5   : > { %1860 = vst.msk [vmem:[#allocation2 + $0x20] sm:$0xff] %vm1855_vm3, %v1840_v60  ;;  %4197 = vmatpush3.bf16.msra.mxu0 %v4374_v2  ;;  %v4398_v2 = vld [vmem:[#allocation11 + $0x60] ss:$8 sps:$4 sm:$0xff]  }
 0xaf6   : > { %4198 = vmatprep.subr.bf16.mxu0 %v4375_v7 }
 0xaf8   : > { %v1844_v1 = vpop.permute.xlu0 %1843 }
 0xaf9   : > { %1862 = vst.msk [vmem:[#allocation2 + $0x30] sm:$0xff] %vm1855_vm3, %v1844_v1  ;;  %4199 = vmatpush3.bf16.msra.mxu0 %v4375_v7  ;;  %v4403_v7 = vld [vmem:[#allocation11 + $0x74] ss:$8 sps:$4 sm:$0xff]  }
 0xafa   : > { %4200 = vmatprep.subr.bf16.mxu0 %v4376_v11 }
 0xafd   : > { %4201 = vmatpush3.bf16.msra.mxu0 %v4376_v11  ;;  %v4401_v11 = vld [vmem:[#allocation11 + $0x70] ss:$8 sps:$4 sm:$0xff]  }
 0xafe   : > { %4202 = vmatprep.subr.bf16.mxu0 %v4377_v18 }
 0xb01   : > { %4203 = vmatpush3.bf16.msra.mxu0 %v4377_v18  ;;  %v4404_v18 = vld [vmem:[#allocation12 + $0x40] sm:$0xff]  }
 0xb02   : > { %4204 = vmatprep.subr.bf16.mxu0 %v4378_v19 }
 0xb05   : > { %4205 = vmatpush3.bf16.msra.mxu0 %v4378_v19  ;;  %v4405_v19 = vld [vmem:[#allocation12] sm:$0xff]  }
 0xb06   : > { %4206 = vmatprep.subr.bf16.mxu0 %v4379_v29 }
 0xb09   : > { %4207 = vmatpush3.bf16.msra.mxu0 %v4379_v29  ;;  %v4406_v29 = vld [vmem:[#allocation12 + $0x48] sm:$0xff]  }
 0xb0a   : > { %3936 = vmatprep.subr.bf16.mxu0 %v4404_v18 }
 0xb11   : > { %v2696_v37 = vpop.xlane.xlu1 %2695 }
 0xb12   : > { %4546 = vrcp.f32 %v2696_v37 }
 0xb15   : > { %v2859_v35 = vpop.permute.xlu1 %2858 }
 0xb16   : > { %4187 = vmatpush3.bf16.msra.mxu1 %v2859_v35 }
 0xb17   : > { %3236 = vmatprep.subr.bf16.mxu1 %v4382_v38  ;;  %v3114_v38 = vsub.s32 3, %v5198_v39 }
 0xb19   : > { %v1834_v43 = vpop.permute.xlu1 %1833 }
 0xb1a   : > { %1857 = vst.msk [vmem:[#allocation2 + $0x8] sm:$0xff] %vm1855_vm3, %v1834_v43 }
 0xb1c   : > { %v4547_v28 = vpop.eup %4546 }
 0xb1d   : > { %v2712_v5 = vmul.f32 %v4547_v28, %v5697_v20  ;;  %v1838_v63 = vpop.permute.xlu1 %1837 }
 0xb1e   : > { %1859 = vst.msk [vmem:[#allocation2 + $0x18] sm:$0xff] %vm1855_vm3, %v1838_v63 }
 0xb1f   : > { %v2716_v8 = vpack.c.bf16 %v2712_v5, %v2711_v59 }
 0xb21   : > { %4189 = vmatmul.mubr.msk.bf16.vlgmr.msra.gmra.mrb[72].mxu1 %vm1034_vm2, %v2716_v8  ;;  %v2375_v3 = vpop.permute.xlu1 %2374 }
 0xb22   : > { %2398 = vst.msk [vmem:[#allocation2 + $0x8] sm:$0xff] %vm2396_vm4, %v2375_v3  ;;  %3268 = vmatprep.mubr.bf16.mxu1 %v4826_v0  ;;  %3237 = vmatpush1.bf16.msra.mxu1 %v4380_v6 }
 0xb23   : > { %3238 = vmatprep.subr.bf16.mxu1 %v4385_v46 }
 0xb25   : > { %v2379_v54 = vpop.permute.xlu1 %2378 }
 0xb26   : > { %2400 = vst.msk [vmem:[#allocation2 + $0x18] sm:$0xff] %vm2396_vm4, %v2379_v54 }
 0xb29   : > { %v1842_v52 = vpop.permute.xlu1 %1841 }
 0xb2a   : > { %1861 = vst.msk [vmem:[#allocation2 + $0x28] sm:$0xff] %vm1855_vm3, %v1842_v52 }
 0xb2d   : > { %v1846_v53 = vpop.permute.xlu1 %1845 }
 0xb2e   : > { %1863 = vst.msk [vmem:[#allocation2 + $0x38] sm:$0xff] %vm1855_vm3, %v1846_v53  ;;  %v4397_v53 = vld [vmem:[#allocation11 + $0x54] ss:$8 sps:$4 sm:$0xff]  }
 0xbb7   : > { %v2757_v31 = vpop.f32.mrb[68].mxu0  ;;  %v2804_v20 = vpop.f32.mrb[68].mxu1 }
 0xbb8   : > { %2913 = vrot.lane.b32.xlu0 %v2757_v31, %s4829_s18  ;;  %v4172_v23 = vpop.f32.mrb[69].mxu0  ;;  %v4178_v50 = vpop.f32.mrb[69].mxu1  ;;  %v4407_v31 = vld [vmem:[#allocation12 + $0x8] sm:$0xff]  }
 0xbb9   : > { %v2760_v48 = vpop.f32.mrb[70].mxu0  ;;  %v2807_v22 = vpop.f32.mrb[70].mxu1  ;;  %v4409_v23 = vld [vmem:[#allocation12 + $0x10] sm:$0xff]   ;;  %v4410_v50 = vld [vmem:[#allocation12 + $0x58] sm:$0xff]  }
 0xbba   : > { %2915 = vrot.lane.b32.xlu1 %v2760_v48, %s4829_s18  ;;  %v4173_v16 = vpop.f32.mrb[71].mxu0  ;;  %v4179_v30 = vpop.f32.mrb[71].mxu1  ;;  %v4411_v48 = vld [vmem:[#allocation12 + $0x18] sm:$0xff]  }
 0xbbb   : > { %v4413_v16 = vld [vmem:[#allocation12 + $0x20] sm:$0xff]   ;;  %v4414_v30 = vld [vmem:[#allocation12 + $0x68] sm:$0xff]  }
 0xbbc   : > { %2917 = vrot.lane.b32.xlu0 %v2804_v20, %s4829_s18  ;;  %v4408_v20 = vld [vmem:[#allocation12 + $0x50] sm:$0xff]  }
 0xbbe   : > { %2919 = vrot.lane.b32.xlu1 %v2807_v22, %s4829_s18  ;;  %v4412_v22 = vld [vmem:[#allocation12 + $0x60] sm:$0xff]  }
 0xbbf   : > { %v2851_v10 = vpop.f32.mrb[72].mxu0 }
 0xbc0   : > { %v4184_v34 = vpop.f32.mrb[73].mxu0  ;;  %2380 = vrot.lane.b32.xlu0 %v5626_v14, %s4830_s16 }
 0xbc1   : > { %v2854_v61 = vpop.f32.mrb[74].mxu0 }
 0xbc2   : > { %v4185_v4 = vpop.f32.mrb[75].mxu0  ;;  %2382 = vrot.lane.b32.xlu1 %v5628_v25, %s4830_s16 }
 0xbc4   : > { %2384 = vrot.lane.b32.xlu0 %v5630_v49, %s4830_s16  ;;  %v4383_v49 = vld [vmem:[#allocation11 + $0x10] ss:$8 sps:$4 sm:$0xff]  }
 0xbc5   : > { %3239 = vmatpush1.bf16.msra.mxu1 %v4383_v49 }
 0xbc6   : > { %2386 = vrot.lane.b32.xlu1 %v5632_v15, %s4830_s16  ;;  %v4388_v15 = vld [vmem:[#allocation11 + $0x24] ss:$8 sps:$4 sm:$0xff]  }
 0xbc7   : > { %3240 = vmatprep.subr.bf16.mxu1 %v4388_v15 }
 0xbc8   : > { %2921 = vrot.lane.b32.xlu0 %v2851_v10, %s4829_s18  ;;  %v5776_v10 = vld [vmem:[%s5910_s8] sm:$0xff] }
 0xbc9   : > { %3241 = vmatpush1.bf16.msra.mxu1 %v4386_v17  ;;  %v2978_v34 = vrot.slane %v5776_v10, %v5201_v40 }
 0xbca   : > { %2923 = vrot.lane.b32.xlu1 %v2854_v61, %s4829_s18  ;;  %3242 = vmatprep.subr.bf16.mxu1 %v4391_v21 }
 0xbcd   : > { %3243 = vmatpush1.bf16.msra.mxu1 %v4389_v27  ;;  %v3115_v27 = vrot.slane %v5776_v10, %v3114_v38 }
 0xbce   : > { %3244 = vmatprep.subr.bf16.mxu1 %v4394_v32  ;;  %v4549_v32 = vld [vmem:[%s5154_s2 + $0x8] sm:$0xff] }
 0xbd1   : > { %3245 = vmatpush1.bf16.msra.mxu1 %v4392_v36 }
 0xbd2   : > { %3246 = vmatprep.subr.bf16.mxu1 %v4397_v53 }
 0xbd5   : > { %3247 = vmatpush1.bf16.msra.mxu1 %v4395_v24  ;;  %v4554_v24 = vld [vmem:[%s5154_s2 + $0x38] sm:$0xff] }
 0xbd6   : > { %3248 = vmatprep.subr.bf16.mxu1 %v4400_v51 }
 0xbd9   : > { %3249 = vmatpush1.bf16.msra.mxu1 %v4398_v2 }
 0xbda   : > { %3250 = vmatprep.subr.bf16.mxu1 %v4403_v7  ;;  %v4555_v7 = vld [vmem:[%s5154_s2 + $0x28] sm:$0xff] }
 0xbdd   : > { %3251 = vmatpush1.bf16.msra.mxu1 %v4401_v11 }
 0xbde   : > { %4216 = vmatprep.subr.bf16.mxu1 %v4404_v18 }
 0xbf4   : > { %v2898_v12 = vpop.f32.mrb[72].mxu1 }
 0xbf5   : > { %2925 = vrot.lane.b32.xlu0 %v2898_v12, %s4829_s18  ;;  %v4190_v14 = vpop.f32.mrb[73].mxu1  ;;  %v3103_v12 = vrot.slane %v5776_v10, %v510_v55  ;;  %v4551_v55 = vld [vmem:[%s5154_s2 + $0x10] sm:$0xff] }
 0xbf6   : > { %v2901_v13 = vpop.f32.mrb[74].mxu1 }
 0xbf7   : > { %2927 = vrot.lane.b32.xlu1 %v2901_v13, %s4829_s18  ;;  %v4191_v25 = vpop.f32.mrb[75].mxu1  ;;  %v4548_v13 = vld [vmem:[%s5154_s2] sm:$0xff] }
 0xc2a   : > { %v2914_v33 = vpop.permute.xlu0 %2913 }
 0xc2b   : > { %2938 = vst.msk [vmem:[#allocation2] sm:$0xff] %vm2937_vm5, %v2914_v33  ;;  %v4550_v33 = vld [vmem:[%s5154_s2 + $0x18] sm:$0xff] }
 0xc2c   : > { %v2916_v47 = vpop.permute.xlu1 %2915 }
 0xc2d   : > { %2939 = vst.msk [vmem:[#allocation2 + $0x8] sm:$0xff] %vm2937_vm5, %v2916_v47 }
 0xc2e   : > { %v2918_v62 = vpop.permute.xlu0 %2917 }
 0xc2f   : > { %2940 = vst.msk [vmem:[#allocation2 + $0x10] sm:$0xff] %vm2937_vm5, %v2918_v62 }
 0xc30   : > { %v2920_v9 = vpop.permute.xlu1 %2919 }
 0xc31   : > { %2941 = vst.msk [vmem:[#allocation2 + $0x18] sm:$0xff] %vm2937_vm5, %v2920_v9 }
 0xc32   : > { %v2381_v56 = vpop.permute.xlu0 %2380  ;;  %v2947_v57 = vld [vmem:[#allocation2] sm:$0xff] }
 0xc33   : > { %2401 = vst.msk [vmem:[#allocation2 + $0x20] sm:$0xff] %vm2396_vm4, %v2381_v56 }
 0xc34   : > { %v2383_v26 = vpop.permute.xlu1 %2382  ;;  %v2948_v44 = vld [vmem:[#allocation2 + $0x8] sm:$0xff] }
 0xc35   : > { %2402 = vst.msk [vmem:[#allocation2 + $0x28] sm:$0xff] %vm2396_vm4, %v2383_v26  ;;  %v2955_v41 = vpack.c.bf16 %v2948_v44, %v2947_v57 }
 0xc36   : > { %v2385_v58 = vpop.permute.xlu0 %2384  ;;  %v2949_v1 = vld [vmem:[#allocation2 + $0x10] sm:$0xff] }
 0xc37   : > { %2403 = vst.msk [vmem:[#allocation2 + $0x30] sm:$0xff] %vm2396_vm4, %v2385_v58  ;;  %4208 = vmatprep.mubr.bf16.mxu0 %v2955_v41 }
 0xc38   : > { %v2387_v60 = vpop.permute.xlu1 %2386  ;;  %v2950_v37 = vld [vmem:[#allocation2 + $0x18] sm:$0xff] }
 0xc39   : > { %2404 = vst.msk [vmem:[#allocation2 + $0x38] sm:$0xff] %vm2396_vm4, %v2387_v60  ;;  %v2956_v35 = vpack.c.bf16 %v2950_v37, %v2949_v1 }
 0xc3a   : > { %v2922_v43 = vpop.permute.xlu0 %2921 }
 0xc3b   : > { %2942 = vst.msk [vmem:[#allocation2 + $0x20] sm:$0xff] %vm2937_vm5, %v2922_v43  ;;  %4209 = vmatmul.mubr.bf16.vlgmr.msra.gmra.mrb[76].mxu0 %v2956_v35 }
 0xc3c   : > { %v2924_v45 = vpop.permute.xlu1 %2923  ;;  %3937 = vmatpush3.bf16.msra.mxu0 %v4405_v19 }
 0xc3d   : > { %2943 = vst.msk [vmem:[#allocation2 + $0x28] sm:$0xff] %vm2937_vm5, %v2924_v45  ;;  %3938 = vmatprep.subr.bf16.mxu0 %v4406_v29 }
 0xc40   : > { %3939 = vmatpush3.bf16.msra.mxu0 %v4407_v31 }
 0xc41   : > { %3940 = vmatprep.subr.bf16.mxu0 %v4408_v20 }
 0xc42   : > { %v2951_v28 = vld [vmem:[#allocation2 + $0x20] sm:$0xff] }
 0xc44   : > { %v2952_v59 = vld [vmem:[#allocation2 + $0x28] sm:$0xff]  ;;  %3941 = vmatpush3.bf16.msra.mxu0 %v4409_v23 }
 0xc45   : > { %v2957_v5 = vpack.c.bf16 %v2952_v59, %v2951_v28  ;;  %3942 = vmatprep.subr.bf16.mxu0 %v4410_v50  ;;  %v4552_v59 = vld [vmem:[%s5154_s2 + $0x30] sm:$0xff] }
 0xc47   : > { %4212 = vmatprep.mubr.bf16.mxu0 %v2957_v5 }
 0xc48   : > { %3943 = vmatpush3.bf16.msra.mxu0 %v4411_v48 }
 0xc49   : > { %3944 = vmatprep.subr.bf16.mxu0 %v4412_v22 }
 0xc4c   : > { %3945 = vmatpush3.bf16.msra.mxu0 %v4413_v16 }
 0xc4d   : > { %3946 = vmatprep.subr.bf16.mxu0 %v4414_v30 }
 0xc67   : > { %v2926_v63 = vpop.permute.xlu0 %2925 }
 0xc68   : > { %2944 = vst.msk [vmem:[#allocation2 + $0x30] sm:$0xff] %vm2937_vm5, %v2926_v63 }
 0xc69   : > { %v2928_v8 = vpop.permute.xlu1 %2927 }
 0xc6a   : > { %2945 = vst.msk [vmem:[#allocation2 + $0x38] sm:$0xff] %vm2937_vm5, %v2928_v8 }
 0xc6f   : > { %v2953_v3 = vld [vmem:[#allocation2 + $0x30] sm:$0xff] }
 0xc71   : > { %v2954_v54 = vld [vmem:[#allocation2 + $0x38] sm:$0xff] }
 0xc72   : > { %v2958_v52 = vpack.c.bf16 %v2954_v54, %v2953_v3  ;;  %v4553_v3 = vld [vmem:[%s5154_s2 + $0x20] sm:$0xff] }
 0xc74   : > { %4213 = vmatmul.mubr.bf16.gmra.mrb[80].mxu0 %v2958_v52 }
 0xd0e   : > { %v4210_v61 = vpop.f32.mrb[76].mxu0 }
 0xd0f   : > { %v3061_v4 = vpop.f32.mrb[77].mxu0  ;;  %v3070_v17 = vadd.f32 %v4210_v61, %v2978_v34  ;;  %v4419_v61 = vld [vmem:[#allocation12 + $0x38] sm:$0xff]  }
 0xd10   : > { %v3062_v6 = vadd.f32 %v3061_v4, %v2978_v34  ;;  %v4211_v14 = vpop.f32.mrb[78].mxu0 }
 0xd11   : > { %v3064_v46 = vpop.f32.mrb[79].mxu0  ;;  %v3073_v49 = vadd.f32 %v4211_v14, %v2978_v34  ;;  %v3094_v9 = vadd.f32 %v4551_v55, %v3070_v17 }
 0xd12   : > { %v3092_v25 = vadd.f32 %v4548_v13, %v3062_v6  ;;  %v3065_v15 = vadd.f32 %v3064_v46, %v2978_v34 }
 0xd13   : > { %v3095_v47 = vadd.f32 %v4550_v33, %v3073_v49  ;;  %v3106_v41 = vmul.f32 %v3103_v12, %v3094_v9 }
 0xd14   : > { %v3104_v21 = vmul.f32 %v3103_v12, %v3092_v25  ;;  %v3093_v36 = vadd.f32 %v4549_v32, %v3065_v15 }
 0xd15   : > { %v3107_v57 = vmul.f32 %v3103_v12, %v3095_v47  ;;  %v5798_v60 = vadd.f32 %v3115_v27, %v3106_v41 }
 0xd16   : > { %v3105_v62 = vmul.f32 %v3103_v12, %v3093_v36  ;;  %v5789_v56 = vadd.f32 %v3115_v27, %v3104_v21 }
 0xd17   : > { %v5796_v58 = vadd.f32 %v3115_v27, %v3107_v57 }
 0xd18   : > { %v5791_v26 = vadd.f32 %v3115_v27, %v3105_v62 }
 0xd19   : > { %v3125_v1 = vpack.c.bf16 %v5796_v58, %v5798_v60 }
 0xd1a   : > { %v3124_v44 = vpack.c.bf16 %v5791_v26, %v5789_v56 }
 0xd1c   : > { %3269 = vmatmul.mubr.bf16.vlgmr.msra.gmra.mrb[76].mxu1 %v3124_v44 }
 0xd1d   : > { %3278 = vmatprep.mubr.bf16.mxu1 %v4826_v0  ;;  %4224 = vmatpush3.bf16.msra.mxu1 %v4405_v19 }
 0xd1e   : > { %4217 = vmatprep.subr.bf16.mxu1 %v4406_v29 }
 0xd21   : > { %4225 = vmatpush3.bf16.msra.mxu1 %v4407_v31 }
 0xd22   : > { %4218 = vmatprep.subr.bf16.mxu1 %v4408_v20 }
 0xd24   : > { %3279 = vmatmul.mubr.bf16.gmra.mrb[80].mxu1 %v3125_v1 }
 0xd25   : > { %3288 = vmatprep.mubr.bf16.mxu1 %v4826_v0  ;;  %4226 = vmatpush3.bf16.msra.mxu1 %v4409_v23 }
 0xd26   : > { %4219 = vmatprep.subr.bf16.mxu1 %v4410_v50 }
 0xd29   : > { %4227 = vmatpush3.bf16.msra.mxu1 %v4411_v48 }
 0xd2a   : > { %4220 = vmatprep.subr.bf16.mxu1 %v4412_v22  ;;  %v4415_v22 = vld [vmem:[#allocation12 + $0x28] sm:$0xff]  }
 0xd2b   : > { %3947 = vmatpush3.bf16.msra.mxu0 %v4415_v22 }
 0xd2d   : > { %4228 = vmatpush3.bf16.msra.mxu1 %v4413_v16  ;;  %v4416_v16 = vld [vmem:[#allocation12 + $0x70] sm:$0xff]  }
 0xd2e   : > { %4221 = vmatprep.subr.bf16.mxu1 %v4414_v30  ;;  %v4417_v30 = vld [vmem:[#allocation12 + $0x30] sm:$0xff]   ;;  %3948 = vmatprep.subr.bf16.mxu0 %v4416_v16 }
 0xd2f   : > { %3949 = vmatpush3.bf16.msra.mxu0 %v4417_v30 }
 0xd31   : > { %4229 = vmatpush3.bf16.msra.mxu1 %v4415_v22 }
 0xd32   : > { %4222 = vmatprep.subr.bf16.mxu1 %v4416_v16 }
 0xd35   : > { %4230 = vmatpush3.bf16.msra.mxu1 %v4417_v30 }
 0xd47   : > { %v4214_v37 = vpop.f32.mrb[80].mxu0 }
 0xd48   : > { %v3086_v35 = vadd.f32 %v4214_v37, %v2978_v34  ;;  %v3077_v43 = vpop.f32.mrb[81].mxu0 }
 0xd49   : > { %v3078_v45 = vadd.f32 %v3077_v43, %v2978_v34  ;;  %v4215_v28 = vpop.f32.mrb[82].mxu0 }
 0xd4a   : > { %v3098_v5 = vadd.f32 %v4552_v59, %v3086_v35  ;;  %v3089_v63 = vadd.f32 %v4215_v28, %v2978_v34  ;;  %v3080_v8 = vpop.f32.mrb[83].mxu0 }
 0xd4b   : > { %v3096_v54 = vadd.f32 %v4553_v3, %v3078_v45  ;;  %v3081_v52 = vadd.f32 %v3080_v8, %v2978_v34  ;;  %v4418_v34 = vld [vmem:[#allocation12 + $0x78] sm:$0xff]  }
 0xd4c   : > { %v3110_v53 = vmul.f32 %v3103_v12, %v3098_v5  ;;  %v3099_v51 = vadd.f32 %v4554_v24, %v3089_v63  ;;  %3950 = vmatprep.subr.bf16.mxu0 %v4418_v34  ;;  %4223 = vmatprep.subr.bf16.mxu1 %v4418_v34 }
 0xd4d   : > { %v3108_v2 = vmul.f32 %v3103_v12, %v3096_v54  ;;  %v3097_v11 = vadd.f32 %v4555_v7, %v3081_v52  ;;  %3951 = vmatpush3.bf16.msra.mxu0 %v4419_v61  ;;  %4231 = vmatpush3.bf16.msra.mxu1 %v4419_v61 }
 0xd4e   : > { %v3111_v18 = vmul.f32 %v3103_v12, %v3099_v51  ;;  %v5807_v19 = vadd.f32 %v3115_v27, %v3110_v53 }
 0xd4f   : > { %v3109_v29 = vmul.f32 %v3103_v12, %v3097_v11  ;;  %v5811_v20 = vadd.f32 %v3115_v27, %v3108_v2 }
 0xd50   : > { %v5809_v31 = vadd.f32 %v3115_v27, %v3111_v18 }
 0xd51   : > { %v5813_v23 = vadd.f32 %v3115_v27, %v3109_v29 }
 0xd52   : > { %v3127_v48 = vpack.c.bf16 %v5809_v31, %v5807_v19 }
 0xd53   : > { %v3126_v50 = vpack.c.bf16 %v5813_v23, %v5811_v20 }
 0xd55   : > { %3289 = vmatmul.mubr.bf16.gmra.mrb[84].mxu1 %v3126_v50 }
 0xd56   : > { %3298 = vmatprep.mubr.bf16.mxu1 %v4826_v0  ;;  %v3144_v0 = vld [vmem:[%s5908_s6] sm:$0x3] }
 0xd57   : > { %v3149_v4 = vrot.slane %v3144_v0, %v5201_v40  ;;  %v3153_v12 = vrot.slane %v3144_v0, %v5207_v42 }
 0xd5d   : > { %3299 = vmatmul.mubr.bf16.gmra.mrb[88].mxu1 %v3127_v48 }
 0xdef   : > { %v3270_v6 = vpop.f32.mrb[76].mxu1 }
 0xdf0   : > { %v3271_v38 = vadd.f32 %v3270_v6, %v3149_v4  ;;  %v3272_v14 = vpop.f32.mrb[77].mxu1 }
 0xdf1   : > { %v3273_v46 = vadd.f32 %v3272_v14, %v3153_v12  ;;  %v3274_v13 = vpop.f32.mrb[78].mxu1 }
 0xdf2   : > { %v3275_v25 = vadd.f32 %v3274_v13, %v3149_v4  ;;  %v3276_v49 = vpop.f32.mrb[79].mxu1  ;;  %v3309_v17 = vmax.f32 %v3271_v38, 0.0 }
 0xdf3   : > { %v3277_v15 = vadd.f32 %v3276_v49, %v3153_v12  ;;  %v3310_v27 = vmax.f32 %v3273_v46, 0.0  ;;  %v3368_v49 = vrot.slane %v5776_v10, %v5207_v42 }
 0xdf4   : > { %v3311_v21 = vmax.f32 %v3275_v25, 0.0 }
 0xdf5   : > { %v3312_v32 = vmax.f32 %v3277_v15, 0.0  ;;  %v3540_v15 = vsub.s32 4, %v5198_v39 }
 0xdf6   : > { %v3325_v36 = vpack.c.bf16 %v3311_v21, %v3309_v17 }
 0xdf7   : > { %v3326_v33 = vpack.c.bf16 %v3312_v32, %v3310_v27  ;;  %v3280_v47 = vpop.f32.mrb[80].mxu1 }
 0xdf8   : > { %v3281_v62 = vadd.f32 %v3280_v47, %v3149_v4  ;;  %v3282_v55 = vpop.f32.mrb[81].mxu1 }
 0xdf9   : > { %v3283_v40 = vadd.f32 %v3282_v55, %v3153_v12  ;;  %v3284_v9 = vpop.f32.mrb[82].mxu1  ;;  %3497 = vmatprep.mubr.bf16.mxu0 %v3326_v33 }
 0xdfa   : > { %v3285_v57 = vadd.f32 %v3284_v9, %v3149_v4  ;;  %v3286_v44 = vpop.f32.mrb[83].mxu1  ;;  %3498 = vmatmul.mubr.bf16.vlgmr.msra.gmra.mrb[84].mxu0 %v3325_v36  ;;  %v3313_v1 = vmax.f32 %v3281_v62, 0.0  ;;  %v3541_v36 = vrot.slane %v5776_v10, %v3540_v15 }
 0xdfb   : > { %v3287_v41 = vadd.f32 %v3286_v44, %v3153_v12  ;;  %v3314_v35 = vmax.f32 %v3283_v40, 0.0 }
 0xdfc   : > { %v3315_v37 = vmax.f32 %v3285_v57, 0.0 }
 0xdfd   : > { %v3316_v43 = vmax.f32 %v3287_v41, 0.0 }
 0xdfe   : > { %v3327_v45 = vpack.c.bf16 %v3315_v37, %v3313_v1 }
 0xdff   : > { %v3328_v28 = vpack.c.bf16 %v3316_v43, %v3314_v35 }
 0xe01   : > { %3505 = vmatprep.mubr.bf16.mxu0 %v3328_v28 }
 0xe02   : > { %3506 = vmatmul.mubr.bf16.gmra.mrb[88].mxu0 %v3327_v45 }
 0xe28   : > { %v3290_v59 = vpop.f32.mrb[84].mxu1 }
 0xe29   : > { %v3291_v5 = vadd.f32 %v3290_v59, %v3149_v4  ;;  %v3292_v63 = vpop.f32.mrb[85].mxu1 }
 0xe2a   : > { %v3293_v8 = vadd.f32 %v3292_v63, %v3153_v12  ;;  %v3294_v3 = vpop.f32.mrb[86].mxu1 }
 0xe2b   : > { %v3295_v54 = vadd.f32 %v3294_v3, %v3149_v4  ;;  %v3296_v52 = vpop.f32.mrb[87].mxu1  ;;  %v3317_v24 = vmax.f32 %v3291_v5, 0.0 }
 0xe2c   : > { %v3297_v53 = vadd.f32 %v3296_v52, %v3153_v12  ;;  %v3318_v2 = vmax.f32 %v3293_v8, 0.0 }
 0xe2d   : > { %v3319_v51 = vmax.f32 %v3295_v54, 0.0 }
 0xe2e   : > { %v3320_v7 = vmax.f32 %v3297_v53, 0.0 }
 0xe2f   : > { %v3329_v11 = vpack.c.bf16 %v3319_v51, %v3317_v24 }
 0xe30   : > { %v3330_v18 = vpack.c.bf16 %v3320_v7, %v3318_v2  ;;  %v3300_v29 = vpop.f32.mrb[88].mxu1 }
 0xe31   : > { %v3301_v50 = vadd.f32 %v3300_v29, %v3149_v4  ;;  %v3302_v48 = vpop.f32.mrb[89].mxu1 }
 0xe32   : > { %v3303_v22 = vadd.f32 %v3302_v48, %v3153_v12  ;;  %v3304_v16 = vpop.f32.mrb[90].mxu1  ;;  %3513 = vmatprep.mubr.bf16.mxu1 %v3330_v18 }
 0xe33   : > { %v3305_v30 = vadd.f32 %v3304_v16, %v3149_v4  ;;  %v3306_v34 = vpop.f32.mrb[91].mxu1  ;;  %3514 = vmatmul.mubr.bf16.vlgmr.msra.gmra.mrb[92].mxu1 %v3329_v11  ;;  %v3321_v0 = vmax.f32 %v3301_v50, 0.0  ;;  %v3552_v4 = vsub.s32 5, %v5198_v39 }
 0xe34   : > { %v3307_v61 = vadd.f32 %v3306_v34, %v3153_v12  ;;  %v3322_v38 = vmax.f32 %v3303_v22, 0.0 }
 0xe35   : > { %v3323_v6 = vmax.f32 %v3305_v30, 0.0  ;;  %v3553_v62 = vrot.slane %v5776_v10, %v3552_v4 }
 0xe36   : > { %v3324_v14 = vmax.f32 %v3307_v61, 0.0 }
 0xe37   : > { %v3331_v46 = vpack.c.bf16 %v3323_v6, %v3321_v0 }
 0xe38   : > { %v3332_v13 = vpack.c.bf16 %v3324_v14, %v3322_v38 }
 0xe3a   : > { %3521 = vmatprep.mubr.bf16.mxu1 %v3332_v13 }
 0xe3b   : > { %3522 = vmatmul.mubr.bf16.gmra.mrb[96].mxu1 %v3331_v46 }
 0xecd   : > { %v3952_v25 = vpop.f32.mrb[84].mxu0 }
 0xece   : > { %v3953_v17 = vpop.f32.mrb[85].mxu0 }
 0xecf   : > { %v3954_v21 = vadd.f32 %v3953_v17, %v3952_v25  ;;  %v3955_v27 = vpop.f32.mrb[86].mxu0 }
 0xed0   : > { %v3956_v12 = vpop.f32.mrb[87].mxu0 }
 0xed1   : > { %v3500_v32 = vadd.f32 %v3954_v21, %v3368_v49  ;;  %v3957_v33 = vadd.f32 %v3956_v12, %v3955_v27 }
 0xed3   : > { %v3530_v47 = vadd.f32 %v3500_v32, %v5789_v56  ;;  %v3503_v55 = vadd.f32 %v3957_v33, %v3368_v49 }
 0xed5   : > { %v3542_v40 = vmul.f32 %v3541_v36, %v3530_v47  ;;  %v3531_v42 = vadd.f32 %v3503_v55, %v5791_v26  ;;  %v3958_v9 = vpop.f32.mrb[88].mxu0 }
 0xed6   : > { %v3959_v57 = vpop.f32.mrb[89].mxu0 }
 0xed7   : > { %v3554_v44 = vadd.f32 %v3553_v62, %v3542_v40  ;;  %v3543_v41 = vmul.f32 %v3541_v36, %v3531_v42  ;;  %v3960_v39 = vadd.f32 %v3959_v57, %v3958_v9  ;;  %v3961_v1 = vpop.f32.mrb[90].mxu0 }
 0xed8   : > { %v3962_v37 = vpop.f32.mrb[91].mxu0 }
 0xed9   : > { %3562 = vst [vmem:[%s5835_s7] sm:$0xff] %v3554_v44  ;;  %v3555_v10 = vadd.f32 %v3553_v62, %v3543_v41  ;;  %v3508_v56 = vadd.f32 %v3960_v39, %v3368_v49  ;;  %v3963_v35 = vadd.f32 %v3962_v37, %v3961_v1 }
 0xedb   : > { %3563 = vst [vmem:[%s5835_s7 + $0x8] sm:$0xff] %v3555_v10  ;;  %v3532_v26 = vadd.f32 %v3508_v56, %v5798_v60  ;;  %v3511_v43 = vadd.f32 %v3963_v35, %v3368_v49 }
 0xedd   : > { %v3544_v45 = vmul.f32 %v3541_v36, %v3532_v26  ;;  %v3533_v28 = vadd.f32 %v3511_v43, %v5796_v58 }
 0xedf   : > { %v3556_v59 = vadd.f32 %v3553_v62, %v3544_v45  ;;  %v3545_v5 = vmul.f32 %v3541_v36, %v3533_v28 }
 0xee1   : > { %3564 = vst [vmem:[%s5835_s7 + $0x10] sm:$0xff] %v3556_v59  ;;  %v3557_v63 = vadd.f32 %v3553_v62, %v3545_v5 }
 0xee3   : > { %3565 = vst [vmem:[%s5835_s7 + $0x18] sm:$0xff] %v3557_v63 }
 0xf06   : > { %v3964_v8 = vpop.f32.mrb[92].mxu1 }
 0xf07   : > { %v3965_v3 = vpop.f32.mrb[93].mxu1 }
 0xf08   : > { %v3966_v54 = vadd.f32 %v3965_v3, %v3964_v8  ;;  %v3967_v52 = vpop.f32.mrb[94].mxu1 }
 0xf09   : > { %v3968_v53 = vpop.f32.mrb[95].mxu1 }
 0xf0a   : > { %v3516_v24 = vadd.f32 %v3966_v54, %v3368_v49  ;;  %v3969_v51 = vadd.f32 %v3968_v53, %v3967_v52 }
 0xf0c   : > { %v3534_v60 = vadd.f32 %v3516_v24, %v5811_v20  ;;  %v3519_v2 = vadd.f32 %v3969_v51, %v3368_v49 }
 0xf0e   : > { %v3546_v7 = vmul.f32 %v3541_v36, %v3534_v60  ;;  %v3535_v58 = vadd.f32 %v3519_v2, %v5813_v23  ;;  %v3970_v11 = vpop.f32.mrb[96].mxu1 }
 0xf0f   : > { %v3971_v18 = vpop.f32.mrb[97].mxu1 }
 0xf10   : > { %v3558_v29 = vadd.f32 %v3553_v62, %v3546_v7  ;;  %v3547_v50 = vmul.f32 %v3541_v36, %v3535_v58  ;;  %v3972_v48 = vadd.f32 %v3971_v18, %v3970_v11  ;;  %v3973_v22 = vpop.f32.mrb[98].mxu1 }
 0xf11   : > { %v3974_v16 = vpop.f32.mrb[99].mxu1 }
 0xf12   : > { %3566 = vst [vmem:[%s5835_s7 + $0x20] sm:$0xff] %v3558_v29  ;;  %v3559_v30 = vadd.f32 %v3553_v62, %v3547_v50  ;;  %v3524_v34 = vadd.f32 %v3972_v48, %v3368_v49  ;;  %v3975_v20 = vadd.f32 %v3974_v16, %v3973_v22 }
 0xf14   : > { %3567 = vst [vmem:[%s5835_s7 + $0x28] sm:$0xff] %v3559_v30  ;;  %v3536_v61 = vadd.f32 %v3524_v34, %v5807_v19  ;;  %v3527_v23 = vadd.f32 %v3975_v20, %v3368_v49 }
 0xf16   : > { %v3548_v0 = vmul.f32 %v3541_v36, %v3536_v61  ;;  %v3537_v6 = vadd.f32 %v3527_v23, %v5809_v31 }
 0xf18   : > { %v3560_v38 = vadd.f32 %v3553_v62, %v3548_v0  ;;  %v3549_v14 = vmul.f32 %v3541_v36, %v3537_v6 }
 0xf1a   : > { %3568 = vst [vmem:[%s5835_s7 + $0x30] sm:$0xff] %v3560_v38  ;;  %v3561_v19 = vadd.f32 %v3553_v62, %v3549_v14 }
 0xf1c   : > { %3569 = vst [vmem:[%s5835_s7 + $0x38] sm:$0xff] %v3561_v19 }
 0xf1d   : > { %4741 = shalt.err (!%p4738_p8)
}
 0xf1e   : > { %s4742_s19 = scalar_lea.hbm %s5854_s0, 1024  ;;  %s4746_s22 = scalar_lea.hbm %s5911_s9, 2048 }
 0xf1f   : > { %p4743_p11 = scmp.ne.s32.totalorder %s5854_s0, %s4742_s19  ;;  %p4747_p2 = scmp.lt.u32.totalorder %s5854_s0, %s5911_s9 }
 0xf20   : > { %p4748_p1 = scmp.lt.u32.totalorder %s4746_s22, %s4742_s19  ;;  %p4750_p0 = scmp.lt.u32.totalorder %s4742_s19, %s5854_s0 }
 0xf21   : > { %p4744_p7 = pnand %p4743_p11, %p5050_p10 }
 0xf22   : > { %p4749_p13 = por %p4748_p1, %p4747_p2 }
 0xf23   : > { %p4745_p12 = pneg %p4744_p7 }
 0xf24   : > { %p4751_p4 = por %p4750_p0, %p4749_p13 }
 0xf26   : > { %p4752_p6 = pnand %p4751_p4, %p4745_p12 }
 0xf28   : > { %4755 = shalt.err (!%p4752_p6)
}
 0xf29   : > { %s4833_s25 = smov 128   ;;  %s4834_s24 = smov 8  }
 0xf2a   : > { %4252 = dma.vmem_to_hbm [thread:$0]  (%p5050_p10), %s5856_s23, 1024, %s5854_s0, %s3571_s5, %s4833_s25, %s4833_s25, %s4834_s24  }
 0xf2b PF: > { %s5954_s7 = sld [smem:[#allocation21_spill]]  ;;  %s5955_s27 = sld [smem:[#allocation22_spill]] }
 0xf2c   : > { %p5957_p5 = scmp.ge.s32.totalorder %s4810_s12, 2 }
 0xf31   : > { %s3600_s21 = sand.u32 1, %s5954_s7   ;;  %p5956_p3 = scmp.ne.s32.totalorder %s5955_s27, 0 }
 0xf32   : > { %s3601_s2 = scalar_lea.sflag [#allocation5], %s3600_s21 }
 0xf33   : > { %p4275_p9 = pnand %p5957_p5, %p5956_p3 }
 0xf35   : > { %4793 = dma.done.wait (!%p4275_p9), %s3601_s2, 1024  }
 0xf36   : > { %4795 = vsyncadd (!%p4275_p9), %s3601_s2, 4294966272  ;;  %p27_p8 = scmp.ge.s32.totalorder %s5040_s28, 4   ;;  %s5958_s30 = smov %s4802_s10 }
 0xf37   : > { %s5959_s10 = smov %s4806_s11  ;;  %s5960_s11 = smov %s5056_s14 }
 0xf38   : > { %s5961_s12 = smov %s5040_s28  ;;  %29 = sbr.rel (!%p27_p8) target bundleno = 15 (0xf), region = 130 }
 0xf3f   :  { %3606 = vsyncpa [#allocation4], 1 }
 0xf40   :  { %3608 = vsyncpa [#allocation4 + $0x1], 1 }
 0xf41   :  { %3609 = vsyncpa [#allocation7], 1 }
 0xf42   :  { %3611 = vsyncpa [#allocation7 + $0x1], 1 }
 0xf43   :  { %3612 = vsyncpa [#allocation10], 1 }
 0xf44   :  { %3613 = vsyncpa [#allocation13], 1 }
 0xf45   :  { %3614 = vsyncpa [#allocation5], 1 }
 0xf46   :  { %3616 = vsyncpa [#allocation5 + $0x1], 1 }

</bundles_post_ra>
